<compile_context>
chip_gen: v5e
topology: v5e:2x2
jax: 0.10.0
libtpu: 0.0.40
codegen_flags: <defaults>
</compile_context>

<pallas_src>
import functools

import jax
import jax.numpy as jnp
from jax import lax
from jax.experimental import pallas as pl
from jax.experimental.pallas import tpu as pltpu

# MXU operand dtype. bf16 -> 2x MXU throughput on v6e/v7x and half the DMA /
# VMEM bytes; accumulation stays f32.  Set to jnp.float32 for 1e-4 agreement
# with the f32 reference.
MATMUL_DTYPE = jnp.bfloat16


def _round_up(x, m):
    return ((x + m - 1) // m) * m


def _bilstm_fc_kernel(x_f_ref, x_r_ref,
                      wih_f_ref, whh_f_ref, b_f_ref,
                      wih_r_ref, whh_r_ref, b_r_ref,
                      fcw_f_ref, fcw_r_ref, fcb_ref,
                      out_ref,
                      xp_f_ref, xp_r_ref,
                      h_f_ref, c_f_ref, h_r_ref, c_r_ref,
                      *, seq_len, unroll):
    """One time-chunk of the fused bidirectional LSTM + final FC.

    x_f_ref: (Tc*Bp, E) flattened time-major chunk, forward time order.
    x_r_ref: (Tc*Bp, E) mirrored chunk (grid walks the chunks back-to-front).
    Scratch h_*/c_* (Bp, Hp) carry the LSTM state across grid iterations.
    Gate column order is (i, f, o, g); each gate block is Hp (128-aligned).
    """
    Bp, Hp = h_f_ref.shape
    Tc = x_f_ref.shape[0] // Bp
    nc = -(-seq_len // Tc)                  # number of time chunks (static)
    ragged = (seq_len % Tc) != 0            # static Python bool

    # ---- init carries on the first time-chunk ---------------------------
    @pl.when(pl.program_id(0) == 0)
    def _():
        h_f_ref[...] = jnp.zeros_like(h_f_ref)
        c_f_ref[...] = jnp.zeros_like(c_f_ref)
        h_r_ref[...] = jnp.zeros_like(h_r_ref)
        c_r_ref[...] = jnp.zeros_like(c_r_ref)

    # ---- hoisted input projection: one large MXU matmul per direction ---
    # Bias folded once; stored bf16 (halves VMEM + per-step vld bytes).
    xp_f_ref[...] = (jnp.dot(x_f_ref[...], wih_f_ref[...],
                             preferred_element_type=jnp.float32)
                     + b_f_ref[...]).astype(xp_f_ref.dtype)
    xp_r_ref[...] = (jnp.dot(x_r_ref[...], wih_r_ref[...],
                             preferred_element_type=jnp.float32)
                     + b_r_ref[...]).astype(xp_r_ref.dtype)

    whh_f = whh_f_ref[...]
    whh_r = whh_r_ref[...]

    if ragged:
        # valid timestep counts for this grid step (ragged only on the
        # forward's LAST chunk and the backward's FIRST chunk).
        gi = pl.program_id(0)
        valid_f = jnp.minimum(Tc, seq_len - gi * Tc)
        valid_r = jnp.minimum(Tc, seq_len - (nc - 1 - gi) * Tc)

    def cell(xp_row, h, c, whh):
        # Only h @ W_hh remains on the serial path; elementwise math in f32.
        # TODO(synk): hold whh stationary on the MXU via matmul_push_rhs.
        gates = xp_row.astype(jnp.float32) + jnp.dot(
            h.astype(whh.dtype), whh, preferred_element_type=jnp.float32)
        sig = jax.nn.sigmoid(gates[:, :3 * Hp])     # contiguous (i,f,o) slab
        i_g = sig[:, 0:Hp]
        f_g = sig[:, Hp:2 * Hp]
        o_g = sig[:, 2 * Hp:3 * Hp]
        g_g = jnp.tanh(gates[:, 3 * Hp:])
        c_new = f_g * c + i_g * g_g
        h_new = o_g * jnp.tanh(c_new)
        return h_new, c_new

    def body(s, carry):
        h_f, c_f, h_r, c_r = carry
        # Forward walks the chunk front-to-back.
        row_f = pl.multiple_of(s * Bp, Bp)
        h_fn, c_fn = cell(xp_f_ref[pl.ds(row_f, Bp), :], h_f, c_f, whh_f)
        # Backward walks the mirrored chunk back-to-front (from its last
        # VALID row when the chunk is ragged).
        if ragged:
            back = jnp.maximum(valid_r - 1 - s, 0)
        else:
            back = Tc - 1 - s
        row_r = pl.multiple_of(back * Bp, Bp)
        h_rn, c_rn = cell(xp_r_ref[pl.ds(row_r, Bp), :], h_r, c_r, whh_r)
        if ragged:
            keep_f = s < valid_f
            keep_r = s < valid_r
            h_fn = jnp.where(keep_f, h_fn, h_f)
            c_fn = jnp.where(keep_f, c_fn, c_f)
            h_rn = jnp.where(keep_r, h_rn, h_r)
            c_rn = jnp.where(keep_r, c_rn, c_r)
        return h_fn, c_fn, h_rn, c_rn

    carry0 = (h_f_ref[...], c_f_ref[...], h_r_ref[...], c_r_ref[...])
    # Partial unroll: dual-chain ILP without the spill-bound full unroll.
    h_f, c_f, h_r, c_r = lax.fori_loop(0, Tc, body, carry0, unroll=unroll)
    h_f_ref[...] = h_f
    c_f_ref[...] = c_f
    h_r_ref[...] = h_r
    c_r_ref[...] = c_r

    # ---- final FC on the last chunk (no lane concat: split fc weight) ---
    @pl.when(pl.program_id(0) == pl.num_programs(0) - 1)
    def _():
        out_ref[...] = (
            jnp.dot(h_f.astype(fcw_f_ref.dtype), fcw_f_ref[...],
                    preferred_element_type=jnp.float32)
            + jnp.dot(h_r.astype(fcw_r_ref.dtype), fcw_r_ref[...],
                      preferred_element_type=jnp.float32)
            + fcb_ref[...])


def _reorder_and_pad_gates(w, H, Hp):
    """(..., 4H) in PyTorch gate order (i,f,g,o) -> kernel order (i,f,o,g),
    each gate block zero-padded from H to Hp columns -> (..., 4Hp)."""
    pad_width = [(0, 0)] * (w.ndim - 1) + [(0, Hp - H)]
    blocks = [jnp.pad(w[..., k * H:(k + 1) * H], pad_width) for k in (0, 1, 3, 2)]
    return jnp.concatenate(blocks, axis=-1)


@functools.partial(jax.jit, static_argnames=("output_dim", "time_chunk"))
def lstm_classifier_forward(text, params, *, output_dim, time_chunk=None):
    B, T = text.shape
    emb_table = params["embedding"]                       # (V, E)
    E = emb_table.shape[1]
    H = params["whh_f"].shape[0]

    itemsize = jnp.dtype(MATMUL_DTYPE).itemsize
    # bf16 packs 16 sublanes per vreg -> pad batch to 16; f32 -> 8.
    sub = 16 if itemsize == 2 else 8
    Bp = max(sub, _round_up(B, sub))
    Hp = _round_up(H, 128)                                # lane-aligned gates
    out_pad = _round_up(max(output_dim, 1), 128)          # lane-dense store

    # Time chunking (bounds VMEM residency; DMA of next chunk overlaps the
    # recurrence). Ragged last chunk handled in-kernel -> Tc stays large.
    Tc = min(T, 128) if time_chunk is None else min(int(time_chunk), T)
    nc = -(-T // Tc)
    Tp = nc * Tc

    # --- glue (plain XLA): gather straight into padded kernel layout ------
    # Only the tiny (B,T) id matrix is padded/transposed; the gather writes
    # the activations once, directly in flattened time-major (Tp*Bp, E).
    # Padded batch rows / timesteps never influence the returned logits
    # (sliced off / masked in-kernel).
    ids = jnp.pad(text, ((0, Bp - B), (0, Tp - T)))       # pad with id 0
    ids_tm = jnp.transpose(ids)                           # (Tp, Bp)
    x2d = jnp.take(emb_table, ids_tm, axis=0).reshape(Tp * Bp, E)
    x2d = x2d.astype(MATMUL_DTYPE)

    # LSTM weights: transposed (in, 4H) layout, gate cols reordered to
    # (i,f,o,g) and padded to Hp; biases stay f32 (added to f32 accumulator).
    wih_f = _reorder_and_pad_gates(params["wih_f"], H, Hp).astype(MATMUL_DTYPE)
    wih_r = _reorder_and_pad_gates(params["wih_r"], H, Hp).astype(MATMUL_DTYPE)
    whh_f = jnp.pad(_reorder_and_pad_gates(params["whh_f"], H, Hp),
                    ((0, Hp - H), (0, 0))).astype(MATMUL_DTYPE)
    whh_r = jnp.pad(_reorder_and_pad_gates(params["whh_r"], H, Hp),
                    ((0, Hp - H), (0, 0))).astype(MATMUL_DTYPE)
    b_f = _reorder_and_pad_gates(params["b_f"], H, Hp).astype(jnp.float32)
    b_r = _reorder_and_pad_gates(params["b_r"], H, Hp).astype(jnp.float32)

    # FC weight split per direction -> no lane concat of (h_f, h_r).
    fcw = jnp.pad(params["fcw"], ((0, 0), (0, out_pad - output_dim)))
    fcw_f = jnp.pad(fcw[:H], ((0, Hp - H), (0, 0))).astype(MATMUL_DTYPE)
    fcw_r = jnp.pad(fcw[H:], ((0, Hp - H), (0, 0))).astype(MATMUL_DTYPE)
    fcb = jnp.pad(params["fcb"],
                  ((0, 0), (0, out_pad - output_dim))).astype(jnp.float32)

    # --- VMEM budget derived from actual tile bytes -----------------------
    xp_dtype = MATMUL_DTYPE
    chunk_bytes = Tc * Bp * E * itemsize
    xp_bytes = Tc * Bp * 4 * Hp * jnp.dtype(xp_dtype).itemsize
    weight_bytes = sum(int(a.size) * a.dtype.itemsize
                       for a in (wih_f, wih_r, whh_f, whh_r, b_f, b_r,
                                 fcw_f, fcw_r, fcb))
    carry_bytes = 4 * Bp * Hp * 4
    out_bytes = 2 * Bp * out_pad * 4
    vmem_needed = (2 * 2 * chunk_bytes      # two chunk streams, double-buffered
                   + 2 * weight_bytes       # resident operands (double-buffered)
                   + 2 * xp_bytes + carry_bytes + out_bytes)
    vmem_limit = int(min(max(vmem_needed * 5 // 4 + (4 << 20), 32 << 20),
                         100 << 20))

    def full_spec(a):
        # whole array resident, same block every grid step
        # TODO(synk): pipeline_mode=pl.Buffered(1) to single-buffer these.
        return pl.BlockSpec(a.shape, lambda i, nd=a.ndim: (0,) * nd)

    grid_spec = pltpu.PrefetchScalarGridSpec(
        num_scalar_prefetch=0,
        grid=(nc,),
        in_specs=[
            # forward chunks, front to back
            pl.BlockSpec((Tc * Bp, E), lambda i: (i, 0)),
            # backward chunks, back to front (same array, mirrored index_map)
            pl.BlockSpec((Tc * Bp, E), lambda i: (nc - 1 - i, 0)),
            full_spec(wih_f), full_spec(whh_f), full_spec(b_f),
            full_spec(wih_r), full_spec(whh_r), full_spec(b_r),
            full_spec(fcw_f), full_spec(fcw_r), full_spec(fcb),
        ],
        out_specs=pl.BlockSpec((Bp, out_pad), lambda i: (0, 0)),
        scratch_shapes=[
            pltpu.VMEM((Tc * Bp, 4 * Hp), xp_dtype),      # xp_f (proj + bias)
            pltpu.VMEM((Tc * Bp, 4 * Hp), xp_dtype),      # xp_r
            pltpu.VMEM((Bp, Hp), jnp.float32),            # h_fwd carry
            pltpu.VMEM((Bp, Hp), jnp.float32),            # c_fwd carry
            pltpu.VMEM((Bp, Hp), jnp.float32),            # h_bwd carry
            pltpu.VMEM((Bp, Hp), jnp.float32),            # c_bwd carry
        ],
    )

    kernel = functools.partial(_bilstm_fc_kernel,
                               seq_len=T, unroll=min(Tc, 8))

    logits_full = pl.pallas_call(
        kernel,
        out_shape=jax.ShapeDtypeStruct((Bp, out_pad), jnp.float32),
        grid_spec=grid_spec,
        compiler_params=pltpu.CompilerParams(
            # time axis carries h/c -> must stay sequential ("arbitrary").
            # TODO(synk): v7x dual-TC split (batch-parallel axis or core_map
            # with fwd on core 0 / bwd on core 1).
            dimension_semantics=("arbitrary",),
            vmem_limit_bytes=vmem_limit,
        ),
    )(x2d, x2d, wih_f, whh_f, b_f, wih_r, whh_r, b_r, fcw_f, fcw_r, fcb)

    return logits_full[:B, :output_dim]


def init_params(key, vocab_size, embedding_dim, hidden_dim, output_dim, pad_idx):
    ks = jax.random.split(key, 12)
    k = 1.0 / jnp.sqrt(hidden_dim)

    def uni(key, shape):
        return jax.random.uniform(key, shape, jnp.float32, -k, k)

    emb = jax.random.normal(ks[0], (vocab_size, embedding_dim), jnp.float32)
    emb = emb.at[pad_idx].set(0.0)                        # padding_idx row zero

    params = {
        "embedding": emb,
        # forward direction (weights stored transposed: (in, 4H), PyTorch
        # gate order i,f,g,o; b = b_ih + b_hh)
        "wih_f": uni(ks[1], (embedding_dim, 4 * hidden_dim)),
        "whh_f": uni(ks[2], (hidden_dim, 4 * hidden_dim)),
        "b_f": uni(ks[3], (1, 4 * hidden_dim)) + uni(ks[4], (1, 4 * hidden_dim)),
        # reverse direction
        "wih_r": uni(ks[5], (embedding_dim, 4 * hidden_dim)),
        "whh_r": uni(ks[6], (hidden_dim, 4 * hidden_dim)),
        "b_r": uni(ks[7], (1, 4 * hidden_dim)) + uni(ks[8], (1, 4 * hidden_dim)),
        # fc: (2H, out), (1, out)
        "fcw": uni(ks[9], (2 * hidden_dim, output_dim)),
        "fcb": uni(ks[10], (1, output_dim)),
    }
    return params


def reference_forward(text, params):
    """Pure-JAX f32 reference (same math) for a correctness check."""
    emb = jnp.take(params["embedding"], text, axis=0)     # (B, T, E)
    B, T, _ = emb.shape
    H = params["whh_f"].shape[0]

    def run(direction_x, wih, whh, b):
        def step(carry, x_t):
            h, c = carry
            gates = x_t @ wih + h @ whh + b
            i = jax.nn.sigmoid(gates[:, 0:H])
            f = jax.nn.sigmoid(gates[:, H:2 * H])
            g = jnp.tanh(gates[:, 2 * H:3 * H])
            o = jax.nn.sigmoid(gates[:, 3 * H:4 * H])
            c = f * c + i * g
            h = o * jnp.tanh(c)
            return (h, c), None
        h0 = jnp.zeros((B, H), jnp.float32)
        (h, _), _ = lax.scan(step, (h0, h0), direction_x)
        return h

    x_tm = jnp.transpose(emb, (1, 0, 2))
    h_f = run(x_tm, params["wih_f"], params["whh_f"], params["b_f"])
    h_r = run(x_tm[::-1], params["wih_r"], params["whh_r"], params["b_r"])
    hidden = jnp.concatenate([h_f, h_r], axis=1)
    return hidden @ params["fcw"] + params["fcb"]


if __name__ == "__main__":
    VOCAB, EMB, HID, OUT = 50, 16, 32, 2
    B = 2
    PAD_IDX = 0
    # n_layers=1, bidirectional=True; dropout is identity in eval mode.

    key = jax.random.PRNGKey(0)
    pkey, t1key, t2key = jax.random.split(key, 3)
    params = init_params(pkey, VOCAB, EMB, HID, OUT, PAD_IDX)

    # bf16 matmul operands + bf16 xp scratch (f32 accumulation) need a
    # relaxed tolerance vs the pure-f32 reference; MATMUL_DTYPE=f32 -> 1e-4.
    tol = 1e-4 if MATMUL_DTYPE is jnp.float32 else 1e-1

    # Case 1: T divisible by the time chunk -> exercises the cross-chunk
    # h/c carry (two grid steps, no ragged masking).
    text1 = jax.random.randint(t1key, (B, 8), 0, VOCAB, dtype=jnp.int32)
    out1 = jax.block_until_ready(
        lstm_classifier_forward(text1, params, output_dim=OUT, time_chunk=4))
    ref1 = reference_forward(text1, params)
    assert out1.shape == (B, OUT)
    assert jnp.allclose(out1, ref1, atol=tol, rtol=tol), (out1, ref1)

    # Case 2: ragged T (7 with chunk 4) -> exercises the in-kernel masked
    # handling of the partial last/first chunk for both directions.
    text2 = jax.random.randint(t2key, (B, 7), 0, VOCAB, dtype=jnp.int32)
    out2 = jax.block_until_ready(
        lstm_classifier_forward(text2, params, output_dim=OUT, time_chunk=4))
    ref2 = reference_forward(text2, params)
    assert out2.shape == (B, OUT)
    assert jnp.allclose(out2, ref2, atol=tol, rtol=tol), (out2, ref2)

    print("KERNEL_OK")
</pallas_src>

<mosaic_0001>
module attributes {stable_mosaic.version = 11 : i64} {
  func.func @_bilstm_fc_kernel(%arg0: i32, %arg1: memref<64x16xbf16, #tpu.memory_space<vmem>>, %arg2: memref<64x16xbf16, #tpu.memory_space<vmem>>, %arg3: memref<16x512xbf16, #tpu.memory_space<vmem>>, %arg4: memref<128x512xbf16, #tpu.memory_space<vmem>>, %arg5: memref<1x512xf32, #tpu.memory_space<vmem>>, %arg6: memref<16x512xbf16, #tpu.memory_space<vmem>>, %arg7: memref<128x512xbf16, #tpu.memory_space<vmem>>, %arg8: memref<1x512xf32, #tpu.memory_space<vmem>>, %arg9: memref<128x128xbf16, #tpu.memory_space<vmem>>, %arg10: memref<128x128xbf16, #tpu.memory_space<vmem>>, %arg11: memref<1x128xf32, #tpu.memory_space<vmem>>, %arg12: memref<16x128xf32, #tpu.memory_space<vmem>>, %arg13: memref<64x512xbf16, #tpu.memory_space<vmem>>, %arg14: memref<64x512xbf16, #tpu.memory_space<vmem>>, %arg15: memref<16x128xf32, #tpu.memory_space<vmem>>, %arg16: memref<16x128xf32, #tpu.memory_space<vmem>>, %arg17: memref<16x128xf32, #tpu.memory_space<vmem>>, %arg18: memref<16x128xf32, #tpu.memory_space<vmem>>) attributes {dimension_semantics = [#tpu.dimension_semantics<arbitrary>], iteration_bounds = array<i64: 2>, scalar_prefetch = 0 : i64, scratch_operands = 6 : i64, tpu.core_type = #tpu.core_type<tc>, window_params = [{transform_indices = @transform_0, window_bounds = array<i64: 64, 16>}, {transform_indices = @transform_1, window_bounds = array<i64: 64, 16>}, {pipeline_mode = #tpu.pipeline_mode<synchronous>, transform_indices = @transform_2, window_bounds = array<i64: 16, 512>}, {pipeline_mode = #tpu.pipeline_mode<synchronous>, transform_indices = @transform_3, window_bounds = array<i64: 128, 512>}, {pipeline_mode = #tpu.pipeline_mode<synchronous>, transform_indices = @transform_4, window_bounds = array<i64: 1, 512>}, {pipeline_mode = #tpu.pipeline_mode<synchronous>, transform_indices = @transform_5, window_bounds = array<i64: 16, 512>}, {pipeline_mode = #tpu.pipeline_mode<synchronous>, transform_indices = @transform_6, window_bounds = array<i64: 128, 512>}, {pipeline_mode = #tpu.pipeline_mode<synchronous>, transform_indices = @transform_7, window_bounds = array<i64: 1, 512>}, {pipeline_mode = #tpu.pipeline_mode<synchronous>, transform_indices = @transform_8, window_bounds = array<i64: 128, 128>}, {pipeline_mode = #tpu.pipeline_mode<synchronous>, transform_indices = @transform_9, window_bounds = array<i64: 128, 128>}, {pipeline_mode = #tpu.pipeline_mode<synchronous>, transform_indices = @transform_10, window_bounds = array<i64: 1, 128>}, {pipeline_mode = #tpu.pipeline_mode<synchronous>, transform_indices = @transform_11, window_bounds = array<i64: 16, 128>}]} {
    %c0_i32 = arith.constant 0 : i32
    %0 = arith.cmpi eq, %arg0, %c0_i32 : i32
    %1 = arith.extui %0 : i1 to i32
    %c0_i32_0 = arith.constant 0 : i32
    %2 = arith.cmpi ne, %1, %c0_i32_0 : i32
    scf.if %2 {
      %cst_75 = arith.constant 0.000000e+00 : f32
      %228 = vector.broadcast %cst_75 : f32 to vector<16x128xf32>
      %c0_76 = arith.constant 0 : index
      %c0_77 = arith.constant 0 : index
      %229 = vector.load %arg15[%c0_76, %c0_77] : memref<16x128xf32, #tpu.memory_space<vmem>>, vector<16x128xf32>
      tpu.vector_store %arg15[%c0_76, %c0_77], %228 {strides = array<i32>} : memref<16x128xf32, #tpu.memory_space<vmem>>, vector<16x128xf32>,
      %cst_78 = arith.constant 0.000000e+00 : f32
      %230 = vector.broadcast %cst_78 : f32 to vector<16x128xf32>
      %c0_79 = arith.constant 0 : index
      %c0_80 = arith.constant 0 : index
      %231 = vector.load %arg16[%c0_79, %c0_80] : memref<16x128xf32, #tpu.memory_space<vmem>>, vector<16x128xf32>
      tpu.vector_store %arg16[%c0_79, %c0_80], %230 {strides = array<i32>} : memref<16x128xf32, #tpu.memory_space<vmem>>, vector<16x128xf32>,
      %cst_81 = arith.constant 0.000000e+00 : f32
      %232 = vector.broadcast %cst_81 : f32 to vector<16x128xf32>
      %c0_82 = arith.constant 0 : index
      %c0_83 = arith.constant 0 : index
      %233 = vector.load %arg17[%c0_82, %c0_83] : memref<16x128xf32, #tpu.memory_space<vmem>>, vector<16x128xf32>
      tpu.vector_store %arg17[%c0_82, %c0_83], %232 {strides = array<i32>} : memref<16x128xf32, #tpu.memory_space<vmem>>, vector<16x128xf32>,
      %cst_84 = arith.constant 0.000000e+00 : f32
      %234 = vector.broadcast %cst_84 : f32 to vector<16x128xf32>
      %c0_85 = arith.constant 0 : index
      %c0_86 = arith.constant 0 : index
      %235 = vector.load %arg18[%c0_85, %c0_86] : memref<16x128xf32, #tpu.memory_space<vmem>>, vector<16x128xf32>
      tpu.vector_store %arg18[%c0_85, %c0_86], %234 {strides = array<i32>} : memref<16x128xf32, #tpu.memory_space<vmem>>, vector<16x128xf32>,
    } else {
    }
    %c0 = arith.constant 0 : index
    %c0_1 = arith.constant 0 : index
    %3 = vector.load %arg1[%c0, %c0_1] : memref<64x16xbf16, #tpu.memory_space<vmem>>, vector<64x16xbf16>
    %c0_2 = arith.constant 0 : index
    %c0_3 = arith.constant 0 : index
    %4 = vector.load %arg3[%c0_2, %c0_3] : memref<16x512xbf16, #tpu.memory_space<vmem>>, vector<16x512xbf16>
    %cst = arith.constant dense<0.000000e+00> : vector<64x512xf32>
    %5 = tpu.matmul %3, %4, %cst {dimension_numbers = #tpu.dot_dimension_numbers<[1], [0], [0], [1], [0, 0, 1, 1], [], []>} : vector<64x16xbf16>, vector<16x512xbf16>, vector<64x512xf32> -> vector<64x512xf32>
    %c0_4 = arith.constant 0 : index
    %c0_5 = arith.constant 0 : index
    %6 = vector.load %arg5[%c0_4, %c0_5] : memref<1x512xf32, #tpu.memory_space<vmem>>, vector<1x512xf32>
    %7 = vector.broadcast %6 : vector<1x512xf32> to vector<64x512xf32>
    %8 = arith.addf %5, %7 : vector<64x512xf32>
    %9 = arith.truncf %8 : vector<64x512xf32> to vector<64x512xbf16>
    %c0_6 = arith.constant 0 : index
    %c0_7 = arith.constant 0 : index
    %10 = vector.load %arg13[%c0_6, %c0_7] : memref<64x512xbf16, #tpu.memory_space<vmem>>, vector<64x512xbf16>
    tpu.vector_store %arg13[%c0_6, %c0_7], %9 {strides = array<i32>} : memref<64x512xbf16, #tpu.memory_space<vmem>>, vector<64x512xbf16>,
    %c0_8 = arith.constant 0 : index
    %c0_9 = arith.constant 0 : index
    %11 = vector.load %arg2[%c0_8, %c0_9] : memref<64x16xbf16, #tpu.memory_space<vmem>>, vector<64x16xbf16>
    %c0_10 = arith.constant 0 : index
    %c0_11 = arith.constant 0 : index
    %12 = vector.load %arg6[%c0_10, %c0_11] : memref<16x512xbf16, #tpu.memory_space<vmem>>, vector<16x512xbf16>
    %cst_12 = arith.constant dense<0.000000e+00> : vector<64x512xf32>
    %13 = tpu.matmul %11, %12, %cst_12 {dimension_numbers = #tpu.dot_dimension_numbers<[1], [0], [0], [1], [0, 0, 1, 1], [], []>} : vector<64x16xbf16>, vector<16x512xbf16>, vector<64x512xf32> -> vector<64x512xf32>
    %c0_13 = arith.constant 0 : index
    %c0_14 = arith.constant 0 : index
    %14 = vector.load %arg8[%c0_13, %c0_14] : memref<1x512xf32, #tpu.memory_space<vmem>>, vector<1x512xf32>
    %15 = vector.broadcast %14 : vector<1x512xf32> to vector<64x512xf32>
    %16 = arith.addf %13, %15 : vector<64x512xf32>
    %17 = arith.truncf %16 : vector<64x512xf32> to vector<64x512xbf16>
    %c0_15 = arith.constant 0 : index
    %c0_16 = arith.constant 0 : index
    %18 = vector.load %arg14[%c0_15, %c0_16] : memref<64x512xbf16, #tpu.memory_space<vmem>>, vector<64x512xbf16>
    tpu.vector_store %arg14[%c0_15, %c0_16], %17 {strides = array<i32>} : memref<64x512xbf16, #tpu.memory_space<vmem>>, vector<64x512xbf16>,
    %c0_17 = arith.constant 0 : index
    %c0_18 = arith.constant 0 : index
    %19 = vector.load %arg4[%c0_17, %c0_18] : memref<128x512xbf16, #tpu.memory_space<vmem>>, vector<128x512xbf16>
    %c0_19 = arith.constant 0 : index
    %c0_20 = arith.constant 0 : index
    %20 = vector.load %arg7[%c0_19, %c0_20] : memref<128x512xbf16, #tpu.memory_space<vmem>>, vector<128x512xbf16>
    %c0_21 = arith.constant 0 : index
    %c0_22 = arith.constant 0 : index
    %21 = vector.load %arg15[%c0_21, %c0_22] : memref<16x128xf32, #tpu.memory_space<vmem>>, vector<16x128xf32>
    %c0_23 = arith.constant 0 : index
    %c0_24 = arith.constant 0 : index
    %22 = vector.load %arg16[%c0_23, %c0_24] : memref<16x128xf32, #tpu.memory_space<vmem>>, vector<16x128xf32>
    %c0_25 = arith.constant 0 : index
    %c0_26 = arith.constant 0 : index
    %23 = vector.load %arg17[%c0_25, %c0_26] : memref<16x128xf32, #tpu.memory_space<vmem>>, vector<16x128xf32>
    %c0_27 = arith.constant 0 : index
    %c0_28 = arith.constant 0 : index
    %24 = vector.load %arg18[%c0_27, %c0_28] : memref<16x128xf32, #tpu.memory_space<vmem>>, vector<16x128xf32>
    %c0_i32_29 = arith.constant 0 : i32
    %c16_i32 = arith.constant 16 : i32
    %25 = arith.muli %c0_i32_29, %c16_i32 : i32
    %26 = tpu.assume_multiple %25, 16 : i32
    %27 = arith.index_cast %26 : i32 to index
    %c0_30 = arith.constant 0 : index
    %28 = vector.load %arg13[%27, %c0_30] : memref<64x512xbf16, #tpu.memory_space<vmem>>, vector<16x512xbf16>
    %29 = arith.extf %28 : vector<16x512xbf16> to vector<16x512xf32>
    %30 = arith.truncf %21 : vector<16x128xf32> to vector<16x128xbf16>
    %cst_31 = arith.constant dense<0.000000e+00> : vector<16x512xf32>
    %31 = tpu.matmul %30, %19, %cst_31 {dimension_numbers = #tpu.dot_dimension_numbers<[1], [0], [0], [1], [0, 0, 1, 1], [], []>} : vector<16x128xbf16>, vector<128x512xbf16>, vector<16x512xf32> -> vector<16x512xf32>
    %32 = arith.addf %29, %31 : vector<16x512xf32>
    %33 = vector.extract_strided_slice %32 {offsets = [0, 0], sizes = [16, 384], strides = [1, 1]} : vector<16x512xf32> to vector<16x384xf32>
    %34 = arith.negf %33 : vector<16x384xf32>
    %35 = math.exp %34 : vector<16x384xf32>
    %cst_32 = arith.constant 1.000000e+00 : f32
    %36 = vector.broadcast %cst_32 : f32 to vector<16x384xf32>
    %37 = arith.addf %36, %35 : vector<16x384xf32>
    %38 = arith.divf %36, %37 : vector<16x384xf32>
    %39 = vector.extract_strided_slice %38 {offsets = [0, 0], sizes = [16, 128], strides = [1, 1]} : vector<16x384xf32> to vector<16x128xf32>
    %40 = vector.extract_strided_slice %38 {offsets = [0, 128], sizes = [16, 128], strides = [1, 1]} : vector<16x384xf32> to vector<16x128xf32>
    %41 = vector.extract_strided_slice %38 {offsets = [0, 256], sizes = [16, 128], strides = [1, 1]} : vector<16x384xf32> to vector<16x128xf32>
    %42 = vector.extract_strided_slice %32 {offsets = [0, 384], sizes = [16, 128], strides = [1, 1]} : vector<16x512xf32> to vector<16x128xf32>
    %43 = math.tanh %42 : vector<16x128xf32>
    %44 = arith.mulf %40, %22 : vector<16x128xf32>
    %45 = arith.mulf %39, %43 : vector<16x128xf32>
    %46 = arith.addf %44, %45 : vector<16x128xf32>
    %47 = math.tanh %46 : vector<16x128xf32>
    %48 = arith.mulf %41, %47 : vector<16x128xf32>
    %c3_i32 = arith.constant 3 : i32
    %49 = arith.subi %c3_i32, %c0_i32_29 : i32
    %c16_i32_33 = arith.constant 16 : i32
    %50 = arith.muli %49, %c16_i32_33 : i32
    %51 = tpu.assume_multiple %50, 16 : i32
    %52 = arith.index_cast %51 : i32 to index
    %c0_34 = arith.constant 0 : index
    %53 = vector.load %arg14[%52, %c0_34] : memref<64x512xbf16, #tpu.memory_space<vmem>>, vector<16x512xbf16>
    %54 = arith.extf %53 : vector<16x512xbf16> to vector<16x512xf32>
    %55 = arith.truncf %23 : vector<16x128xf32> to vector<16x128xbf16>
    %cst_35 = arith.constant dense<0.000000e+00> : vector<16x512xf32>
    %56 = tpu.matmul %55, %20, %cst_35 {dimension_numbers = #tpu.dot_dimension_numbers<[1], [0], [0], [1], [0, 0, 1, 1], [], []>} : vector<16x128xbf16>, vector<128x512xbf16>, vector<16x512xf32> -> vector<16x512xf32>
    %57 = arith.addf %54, %56 : vector<16x512xf32>
    %58 = vector.extract_strided_slice %57 {offsets = [0, 0], sizes = [16, 384], strides = [1, 1]} : vector<16x512xf32> to vector<16x384xf32>
    %59 = arith.negf %58 : vector<16x384xf32>
    %60 = math.exp %59 : vector<16x384xf32>
    %cst_36 = arith.constant 1.000000e+00 : f32
    %61 = vector.broadcast %cst_36 : f32 to vector<16x384xf32>
    %62 = arith.addf %61, %60 : vector<16x384xf32>
    %63 = arith.divf %61, %62 : vector<16x384xf32>
    %64 = vector.extract_strided_slice %63 {offsets = [0, 0], sizes = [16, 128], strides = [1, 1]} : vector<16x384xf32> to vector<16x128xf32>
    %65 = vector.extract_strided_slice %63 {offsets = [0, 128], sizes = [16, 128], strides = [1, 1]} : vector<16x384xf32> to vector<16x128xf32>
    %66 = vector.extract_strided_slice %63 {offsets = [0, 256], sizes = [16, 128], strides = [1, 1]} : vector<16x384xf32> to vector<16x128xf32>
    %67 = vector.extract_strided_slice %57 {offsets = [0, 384], sizes = [16, 128], strides = [1, 1]} : vector<16x512xf32> to vector<16x128xf32>
    %68 = math.tanh %67 : vector<16x128xf32>
    %69 = arith.mulf %65, %24 : vector<16x128xf32>
    %70 = arith.mulf %64, %68 : vector<16x128xf32>
    %71 = arith.addf %69, %70 : vector<16x128xf32>
    %72 = math.tanh %71 : vector<16x128xf32>
    %73 = arith.mulf %66, %72 : vector<16x128xf32>
    %c1_i32 = arith.constant 1 : i32
    %c16_i32_37 = arith.constant 16 : i32
    %74 = arith.muli %c1_i32, %c16_i32_37 : i32
    %75 = tpu.assume_multiple %74, 16 : i32
    %76 = arith.index_cast %75 : i32 to index
    %c0_38 = arith.constant 0 : index
    %77 = vector.load %arg13[%76, %c0_38] : memref<64x512xbf16, #tpu.memory_space<vmem>>, vector<16x512xbf16>
    %78 = arith.extf %77 : vector<16x512xbf16> to vector<16x512xf32>
    %79 = arith.truncf %48 : vector<16x128xf32> to vector<16x128xbf16>
    %cst_39 = arith.constant dense<0.000000e+00> : vector<16x512xf32>
    %80 = tpu.matmul %79, %19, %cst_39 {dimension_numbers = #tpu.dot_dimension_numbers<[1], [0], [0], [1], [0, 0, 1, 1], [], []>} : vector<16x128xbf16>, vector<128x512xbf16>, vector<16x512xf32> -> vector<16x512xf32>
    %81 = arith.addf %78, %80 : vector<16x512xf32>
    %82 = vector.extract_strided_slice %81 {offsets = [0, 0], sizes = [16, 384], strides = [1, 1]} : vector<16x512xf32> to vector<16x384xf32>
    %83 = arith.negf %82 : vector<16x384xf32>
    %84 = math.exp %83 : vector<16x384xf32>
    %cst_40 = arith.constant 1.000000e+00 : f32
    %85 = vector.broadcast %cst_40 : f32 to vector<16x384xf32>
    %86 = arith.addf %85, %84 : vector<16x384xf32>
    %87 = arith.divf %85, %86 : vector<16x384xf32>
    %88 = vector.extract_strided_slice %87 {offsets = [0, 0], sizes = [16, 128], strides = [1, 1]} : vector<16x384xf32> to vector<16x128xf32>
    %89 = vector.extract_strided_slice %87 {offsets = [0, 128], sizes = [16, 128], strides = [1, 1]} : vector<16x384xf32> to vector<16x128xf32>
    %90 = vector.extract_strided_slice %87 {offsets = [0, 256], sizes = [16, 128], strides = [1, 1]} : vector<16x384xf32> to vector<16x128xf32>
    %91 = vector.extract_strided_slice %81 {offsets = [0, 384], sizes = [16, 128], strides = [1, 1]} : vector<16x512xf32> to vector<16x128xf32>
    %92 = math.tanh %91 : vector<16x128xf32>
    %93 = arith.mulf %89, %46 : vector<16x128xf32>
    %94 = arith.mulf %88, %92 : vector<16x128xf32>
    %95 = arith.addf %93, %94 : vector<16x128xf32>
    %96 = math.tanh %95 : vector<16x128xf32>
    %97 = arith.mulf %90, %96 : vector<16x128xf32>
    %c3_i32_41 = arith.constant 3 : i32
    %98 = arith.subi %c3_i32_41, %c1_i32 : i32
    %c16_i32_42 = arith.constant 16 : i32
    %99 = arith.muli %98, %c16_i32_42 : i32
    %100 = tpu.assume_multiple %99, 16 : i32
    %101 = arith.index_cast %100 : i32 to index
    %c0_43 = arith.constant 0 : index
    %102 = vector.load %arg14[%101, %c0_43] : memref<64x512xbf16, #tpu.memory_space<vmem>>, vector<16x512xbf16>
    %103 = arith.extf %102 : vector<16x512xbf16> to vector<16x512xf32>
    %104 = arith.truncf %73 : vector<16x128xf32> to vector<16x128xbf16>
    %cst_44 = arith.constant dense<0.000000e+00> : vector<16x512xf32>
    %105 = tpu.matmul %104, %20, %cst_44 {dimension_numbers = #tpu.dot_dimension_numbers<[1], [0], [0], [1], [0, 0, 1, 1], [], []>} : vector<16x128xbf16>, vector<128x512xbf16>, vector<16x512xf32> -> vector<16x512xf32>
    %106 = arith.addf %103, %105 : vector<16x512xf32>
    %107 = vector.extract_strided_slice %106 {offsets = [0, 0], sizes = [16, 384], strides = [1, 1]} : vector<16x512xf32> to vector<16x384xf32>
    %108 = arith.negf %107 : vector<16x384xf32>
    %109 = math.exp %108 : vector<16x384xf32>
    %cst_45 = arith.constant 1.000000e+00 : f32
    %110 = vector.broadcast %cst_45 : f32 to vector<16x384xf32>
    %111 = arith.addf %110, %109 : vector<16x384xf32>
    %112 = arith.divf %110, %111 : vector<16x384xf32>
    %113 = vector.extract_strided_slice %112 {offsets = [0, 0], sizes = [16, 128], strides = [1, 1]} : vector<16x384xf32> to vector<16x128xf32>
    %114 = vector.extract_strided_slice %112 {offsets = [0, 128], sizes = [16, 128], strides = [1, 1]} : vector<16x384xf32> to vector<16x128xf32>
    %115 = vector.extract_strided_slice %112 {offsets = [0, 256], sizes = [16, 128], strides = [1, 1]} : vector<16x384xf32> to vector<16x128xf32>
    %116 = vector.extract_strided_slice %106 {offsets = [0, 384], sizes = [16, 128], strides = [1, 1]} : vector<16x512xf32> to vector<16x128xf32>
    %117 = math.tanh %116 : vector<16x128xf32>
    %118 = arith.mulf %114, %71 : vector<16x128xf32>
    %119 = arith.mulf %113, %117 : vector<16x128xf32>
    %120 = arith.addf %118, %119 : vector<16x128xf32>
    %121 = math.tanh %120 : vector<16x128xf32>
    %122 = arith.mulf %115, %121 : vector<16x128xf32>
    %c2_i32 = arith.constant 2 : i32
    %c16_i32_46 = arith.constant 16 : i32
    %123 = arith.muli %c2_i32, %c16_i32_46 : i32
    %124 = tpu.assume_multiple %123, 16 : i32
    %125 = arith.index_cast %124 : i32 to index
    %c0_47 = arith.constant 0 : index
    %126 = vector.load %arg13[%125, %c0_47] : memref<64x512xbf16, #tpu.memory_space<vmem>>, vector<16x512xbf16>
    %127 = arith.extf %126 : vector<16x512xbf16> to vector<16x512xf32>
    %128 = arith.truncf %97 : vector<16x128xf32> to vector<16x128xbf16>
    %cst_48 = arith.constant dense<0.000000e+00> : vector<16x512xf32>
    %129 = tpu.matmul %128, %19, %cst_48 {dimension_numbers = #tpu.dot_dimension_numbers<[1], [0], [0], [1], [0, 0, 1, 1], [], []>} : vector<16x128xbf16>, vector<128x512xbf16>, vector<16x512xf32> -> vector<16x512xf32>
    %130 = arith.addf %127, %129 : vector<16x512xf32>
    %131 = vector.extract_strided_slice %130 {offsets = [0, 0], sizes = [16, 384], strides = [1, 1]} : vector<16x512xf32> to vector<16x384xf32>
    %132 = arith.negf %131 : vector<16x384xf32>
    %133 = math.exp %132 : vector<16x384xf32>
    %cst_49 = arith.constant 1.000000e+00 : f32
    %134 = vector.broadcast %cst_49 : f32 to vector<16x384xf32>
    %135 = arith.addf %134, %133 : vector<16x384xf32>
    %136 = arith.divf %134, %135 : vector<16x384xf32>
    %137 = vector.extract_strided_slice %136 {offsets = [0, 0], sizes = [16, 128], strides = [1, 1]} : vector<16x384xf32> to vector<16x128xf32>
    %138 = vector.extract_strided_slice %136 {offsets = [0, 128], sizes = [16, 128], strides = [1, 1]} : vector<16x384xf32> to vector<16x128xf32>
    %139 = vector.extract_strided_slice %136 {offsets = [0, 256], sizes = [16, 128], strides = [1, 1]} : vector<16x384xf32> to vector<16x128xf32>
    %140 = vector.extract_strided_slice %130 {offsets = [0, 384], sizes = [16, 128], strides = [1, 1]} : vector<16x512xf32> to vector<16x128xf32>
    %141 = math.tanh %140 : vector<16x128xf32>
    %142 = arith.mulf %138, %95 : vector<16x128xf32>
    %143 = arith.mulf %137, %141 : vector<16x128xf32>
    %144 = arith.addf %142, %143 : vector<16x128xf32>
    %145 = math.tanh %144 : vector<16x128xf32>
    %146 = arith.mulf %139, %145 : vector<16x128xf32>
    %c3_i32_50 = arith.constant 3 : i32
    %147 = arith.subi %c3_i32_50, %c2_i32 : i32
    %c16_i32_51 = arith.constant 16 : i32
    %148 = arith.muli %147, %c16_i32_51 : i32
    %149 = tpu.assume_multiple %148, 16 : i32
    %150 = arith.index_cast %149 : i32 to index
    %c0_52 = arith.constant 0 : index
    %151 = vector.load %arg14[%150, %c0_52] : memref<64x512xbf16, #tpu.memory_space<vmem>>, vector<16x512xbf16>
    %152 = arith.extf %151 : vector<16x512xbf16> to vector<16x512xf32>
    %153 = arith.truncf %122 : vector<16x128xf32> to vector<16x128xbf16>
    %cst_53 = arith.constant dense<0.000000e+00> : vector<16x512xf32>
    %154 = tpu.matmul %153, %20, %cst_53 {dimension_numbers = #tpu.dot_dimension_numbers<[1], [0], [0], [1], [0, 0, 1, 1], [], []>} : vector<16x128xbf16>, vector<128x512xbf16>, vector<16x512xf32> -> vector<16x512xf32>
    %155 = arith.addf %152, %154 : vector<16x512xf32>
    %156 = vector.extract_strided_slice %155 {offsets = [0, 0], sizes = [16, 384], strides = [1, 1]} : vector<16x512xf32> to vector<16x384xf32>
    %157 = arith.negf %156 : vector<16x384xf32>
    %158 = math.exp %157 : vector<16x384xf32>
    %cst_54 = arith.constant 1.000000e+00 : f32
    %159 = vector.broadcast %cst_54 : f32 to vector<16x384xf32>
    %160 = arith.addf %159, %158 : vector<16x384xf32>
    %161 = arith.divf %159, %160 : vector<16x384xf32>
    %162 = vector.extract_strided_slice %161 {offsets = [0, 0], sizes = [16, 128], strides = [1, 1]} : vector<16x384xf32> to vector<16x128xf32>
    %163 = vector.extract_strided_slice %161 {offsets = [0, 128], sizes = [16, 128], strides = [1, 1]} : vector<16x384xf32> to vector<16x128xf32>
    %164 = vector.extract_strided_slice %161 {offsets = [0, 256], sizes = [16, 128], strides = [1, 1]} : vector<16x384xf32> to vector<16x128xf32>
    %165 = vector.extract_strided_slice %155 {offsets = [0, 384], sizes = [16, 128], strides = [1, 1]} : vector<16x512xf32> to vector<16x128xf32>
    %166 = math.tanh %165 : vector<16x128xf32>
    %167 = arith.mulf %163, %120 : vector<16x128xf32>
    %168 = arith.mulf %162, %166 : vector<16x128xf32>
    %169 = arith.addf %167, %168 : vector<16x128xf32>
    %170 = math.tanh %169 : vector<16x128xf32>
    %171 = arith.mulf %164, %170 : vector<16x128xf32>
    %c3_i32_55 = arith.constant 3 : i32
    %c16_i32_56 = arith.constant 16 : i32
    %172 = arith.muli %c3_i32_55, %c16_i32_56 : i32
    %173 = tpu.assume_multiple %172, 16 : i32
    %174 = arith.index_cast %173 : i32 to index
    %c0_57 = arith.constant 0 : index
    %175 = vector.load %arg13[%174, %c0_57] : memref<64x512xbf16, #tpu.memory_space<vmem>>, vector<16x512xbf16>
    %176 = arith.extf %175 : vector<16x512xbf16> to vector<16x512xf32>
    %177 = arith.truncf %146 : vector<16x128xf32> to vector<16x128xbf16>
    %cst_58 = arith.constant dense<0.000000e+00> : vector<16x512xf32>
    %178 = tpu.matmul %177, %19, %cst_58 {dimension_numbers = #tpu.dot_dimension_numbers<[1], [0], [0], [1], [0, 0, 1, 1], [], []>} : vector<16x128xbf16>, vector<128x512xbf16>, vector<16x512xf32> -> vector<16x512xf32>
    %179 = arith.addf %176, %178 : vector<16x512xf32>
    %180 = vector.extract_strided_slice %179 {offsets = [0, 0], sizes = [16, 384], strides = [1, 1]} : vector<16x512xf32> to vector<16x384xf32>
    %181 = arith.negf %180 : vector<16x384xf32>
    %182 = math.exp %181 : vector<16x384xf32>
    %cst_59 = arith.constant 1.000000e+00 : f32
    %183 = vector.broadcast %cst_59 : f32 to vector<16x384xf32>
    %184 = arith.addf %183, %182 : vector<16x384xf32>
    %185 = arith.divf %183, %184 : vector<16x384xf32>
    %186 = vector.extract_strided_slice %185 {offsets = [0, 0], sizes = [16, 128], strides = [1, 1]} : vector<16x384xf32> to vector<16x128xf32>
    %187 = vector.extract_strided_slice %185 {offsets = [0, 128], sizes = [16, 128], strides = [1, 1]} : vector<16x384xf32> to vector<16x128xf32>
    %188 = vector.extract_strided_slice %185 {offsets = [0, 256], sizes = [16, 128], strides = [1, 1]} : vector<16x384xf32> to vector<16x128xf32>
    %189 = vector.extract_strided_slice %179 {offsets = [0, 384], sizes = [16, 128], strides = [1, 1]} : vector<16x512xf32> to vector<16x128xf32>
    %190 = math.tanh %189 : vector<16x128xf32>
    %191 = arith.mulf %187, %144 : vector<16x128xf32>
    %192 = arith.mulf %186, %190 : vector<16x128xf32>
    %193 = arith.addf %191, %192 : vector<16x128xf32>
    %194 = math.tanh %193 : vector<16x128xf32>
    %195 = arith.mulf %188, %194 : vector<16x128xf32>
    %c3_i32_60 = arith.constant 3 : i32
    %196 = arith.subi %c3_i32_60, %c3_i32_55 : i32
    %c16_i32_61 = arith.constant 16 : i32
    %197 = arith.muli %196, %c16_i32_61 : i32
    %198 = tpu.assume_multiple %197, 16 : i32
    %199 = arith.index_cast %198 : i32 to index
    %c0_62 = arith.constant 0 : index
    %200 = vector.load %arg14[%199, %c0_62] : memref<64x512xbf16, #tpu.memory_space<vmem>>, vector<16x512xbf16>
    %201 = arith.extf %200 : vector<16x512xbf16> to vector<16x512xf32>
    %202 = arith.truncf %171 : vector<16x128xf32> to vector<16x128xbf16>
    %cst_63 = arith.constant dense<0.000000e+00> : vector<16x512xf32>
    %203 = tpu.matmul %202, %20, %cst_63 {dimension_numbers = #tpu.dot_dimension_numbers<[1], [0], [0], [1], [0, 0, 1, 1], [], []>} : vector<16x128xbf16>, vector<128x512xbf16>, vector<16x512xf32> -> vector<16x512xf32>
    %204 = arith.addf %201, %203 : vector<16x512xf32>
    %205 = vector.extract_strided_slice %204 {offsets = [0, 0], sizes = [16, 384], strides = [1, 1]} : vector<16x512xf32> to vector<16x384xf32>
    %206 = arith.negf %205 : vector<16x384xf32>
    %207 = math.exp %206 : vector<16x384xf32>
    %cst_64 = arith.constant 1.000000e+00 : f32
    %208 = vector.broadcast %cst_64 : f32 to vector<16x384xf32>
    %209 = arith.addf %208, %207 : vector<16x384xf32>
    %210 = arith.divf %208, %209 : vector<16x384xf32>
    %211 = vector.extract_strided_slice %210 {offsets = [0, 0], sizes = [16, 128], strides = [1, 1]} : vector<16x384xf32> to vector<16x128xf32>
    %212 = vector.extract_strided_slice %210 {offsets = [0, 128], sizes = [16, 128], strides = [1, 1]} : vector<16x384xf32> to vector<16x128xf32>
    %213 = vector.extract_strided_slice %210 {offsets = [0, 256], sizes = [16, 128], strides = [1, 1]} : vector<16x384xf32> to vector<16x128xf32>
    %214 = vector.extract_strided_slice %204 {offsets = [0, 384], sizes = [16, 128], strides = [1, 1]} : vector<16x512xf32> to vector<16x128xf32>
    %215 = math.tanh %214 : vector<16x128xf32>
    %216 = arith.mulf %212, %169 : vector<16x128xf32>
    %217 = arith.mulf %211, %215 : vector<16x128xf32>
    %218 = arith.addf %216, %217 : vector<16x128xf32>
    %219 = math.tanh %218 : vector<16x128xf32>
    %220 = arith.mulf %213, %219 : vector<16x128xf32>
    %c4_i32 = arith.constant 4 : i32
    %c0_65 = arith.constant 0 : index
    %c0_66 = arith.constant 0 : index
    %221 = vector.load %arg15[%c0_65, %c0_66] : memref<16x128xf32, #tpu.memory_space<vmem>>, vector<16x128xf32>
    tpu.vector_store %arg15[%c0_65, %c0_66], %195 {strides = array<i32>} : memref<16x128xf32, #tpu.memory_space<vmem>>, vector<16x128xf32>,
    %c0_67 = arith.constant 0 : index
    %c0_68 = arith.constant 0 : index
    %222 = vector.load %arg16[%c0_67, %c0_68] : memref<16x128xf32, #tpu.memory_space<vmem>>, vector<16x128xf32>
    tpu.vector_store %arg16[%c0_67, %c0_68], %193 {strides = array<i32>} : memref<16x128xf32, #tpu.memory_space<vmem>>, vector<16x128xf32>,
    %c0_69 = arith.constant 0 : index
    %c0_70 = arith.constant 0 : index
    %223 = vector.load %arg17[%c0_69, %c0_70] : memref<16x128xf32, #tpu.memory_space<vmem>>, vector<16x128xf32>
    tpu.vector_store %arg17[%c0_69, %c0_70], %220 {strides = array<i32>} : memref<16x128xf32, #tpu.memory_space<vmem>>, vector<16x128xf32>,
    %c0_71 = arith.constant 0 : index
    %c0_72 = arith.constant 0 : index
    %224 = vector.load %arg18[%c0_71, %c0_72] : memref<16x128xf32, #tpu.memory_space<vmem>>, vector<16x128xf32>
    tpu.vector_store %arg18[%c0_71, %c0_72], %218 {strides = array<i32>} : memref<16x128xf32, #tpu.memory_space<vmem>>, vector<16x128xf32>,
    %c1_i32_73 = arith.constant 1 : i32
    %225 = arith.cmpi eq, %arg0, %c1_i32_73 : i32
    %226 = arith.extui %225 : i1 to i32
    %c0_i32_74 = arith.constant 0 : i32
    %227 = arith.cmpi ne, %226, %c0_i32_74 : i32
    scf.if %227 {
      %228 = arith.truncf %195 : vector<16x128xf32> to vector<16x128xbf16>
      %c0_75 = arith.constant 0 : index
      %c0_76 = arith.constant 0 : index
      %229 = vector.load %arg9[%c0_75, %c0_76] : memref<128x128xbf16, #tpu.memory_space<vmem>>, vector<128x128xbf16>
      %cst_77 = arith.constant dense<0.000000e+00> : vector<16x128xf32>
      %230 = tpu.matmul %228, %229, %cst_77 {dimension_numbers = #tpu.dot_dimension_numbers<[1], [0], [0], [1], [0, 0, 1, 1], [], []>} : vector<16x128xbf16>, vector<128x128xbf16>, vector<16x128xf32> -> vector<16x128xf32>
      %231 = arith.truncf %220 : vector<16x128xf32> to vector<16x128xbf16>
      %c0_78 = arith.constant 0 : index
      %c0_79 = arith.constant 0 : index
      %232 = vector.load %arg10[%c0_78, %c0_79] : memref<128x128xbf16, #tpu.memory_space<vmem>>, vector<128x128xbf16>
      %cst_80 = arith.constant dense<0.000000e+00> : vector<16x128xf32>
      %233 = tpu.matmul %231, %232, %cst_80 {dimension_numbers = #tpu.dot_dimension_numbers<[1], [0], [0], [1], [0, 0, 1, 1], [], []>} : vector<16x128xbf16>, vector<128x128xbf16>, vector<16x128xf32> -> vector<16x128xf32>
      %234 = arith.addf %230, %233 : vector<16x128xf32>
      %c0_81 = arith.constant 0 : index
      %c0_82 = arith.constant 0 : index
      %235 = vector.load %arg11[%c0_81, %c0_82] : memref<1x128xf32, #tpu.memory_space<vmem>>, vector<1x128xf32>
      %236 = vector.broadcast %235 : vector<1x128xf32> to vector<16x128xf32>
      %237 = arith.addf %234, %236 : vector<16x128xf32>
      %c0_83 = arith.constant 0 : index
      %c0_84 = arith.constant 0 : index
      %238 = vector.load %arg12[%c0_83, %c0_84] : memref<16x128xf32, #tpu.memory_space<vmem>>, vector<16x128xf32>
      tpu.vector_store %arg12[%c0_83, %c0_84], %237 {strides = array<i32>} : memref<16x128xf32, #tpu.memory_space<vmem>>, vector<16x128xf32>,
    } else {
    }
    return
  }
  func.func @transform_0(%arg0: i32) -> (i32, i32) {
    %c0_i32 = arith.constant 0 : i32
    %c0_i32_0 = arith.constant 0 : i32
    return %arg0, %c0_i32 : i32, i32
  }
  func.func @transform_1(%arg0: i32) -> (i32, i32) {
    %c1_i32 = arith.constant 1 : i32
    %0 = arith.subi %c1_i32, %arg0 : i32
    %c0_i32 = arith.constant 0 : i32
    %c0_i32_0 = arith.constant 0 : i32
    return %0, %c0_i32 : i32, i32
  }
  func.func @transform_2(%arg0: i32) -> (i32, i32) {
    %c0_i32 = arith.constant 0 : i32
    %c0_i32_0 = arith.constant 0 : i32
    %c0_i32_1 = arith.constant 0 : i32
    return %c0_i32, %c0_i32_0 : i32, i32
  }
  func.func @transform_3(%arg0: i32) -> (i32, i32) {
    %c0_i32 = arith.constant 0 : i32
    %c0_i32_0 = arith.constant 0 : i32
    %c0_i32_1 = arith.constant 0 : i32
    return %c0_i32, %c0_i32_0 : i32, i32
  }
  func.func @transform_4(%arg0: i32) -> (i32, i32) {
    %c0_i32 = arith.constant 0 : i32
    %c0_i32_0 = arith.constant 0 : i32
    %c0_i32_1 = arith.constant 0 : i32
    return %c0_i32, %c0_i32_0 : i32, i32
  }
  func.func @transform_5(%arg0: i32) -> (i32, i32) {
    %c0_i32 = arith.constant 0 : i32
    %c0_i32_0 = arith.constant 0 : i32
    %c0_i32_1 = arith.constant 0 : i32
    return %c0_i32, %c0_i32_0 : i32, i32
  }
  func.func @transform_6(%arg0: i32) -> (i32, i32) {
    %c0_i32 = arith.constant 0 : i32
    %c0_i32_0 = arith.constant 0 : i32
    %c0_i32_1 = arith.constant 0 : i32
    return %c0_i32, %c0_i32_0 : i32, i32
  }
  func.func @transform_7(%arg0: i32) -> (i32, i32) {
    %c0_i32 = arith.constant 0 : i32
    %c0_i32_0 = arith.constant 0 : i32
    %c0_i32_1 = arith.constant 0 : i32
    return %c0_i32, %c0_i32_0 : i32, i32
  }
  func.func @transform_8(%arg0: i32) -> (i32, i32) {
    %c0_i32 = arith.constant 0 : i32
    %c0_i32_0 = arith.constant 0 : i32
    %c0_i32_1 = arith.constant 0 : i32
    return %c0_i32, %c0_i32_0 : i32, i32
  }
  func.func @transform_9(%arg0: i32) -> (i32, i32) {
    %c0_i32 = arith.constant 0 : i32
    %c0_i32_0 = arith.constant 0 : i32
    %c0_i32_1 = arith.constant 0 : i32
    return %c0_i32, %c0_i32_0 : i32, i32
  }
  func.func @transform_10(%arg0: i32) -> (i32, i32) {
    %c0_i32 = arith.constant 0 : i32
    %c0_i32_0 = arith.constant 0 : i32
    %c0_i32_1 = arith.constant 0 : i32
    return %c0_i32, %c0_i32_0 : i32, i32
  }
  func.func @transform_11(%arg0: i32) -> (i32, i32) {
    %c0_i32 = arith.constant 0 : i32
    %c0_i32_0 = arith.constant 0 : i32
    %c0_i32_1 = arith.constant 0 : i32
    return %c0_i32, %c0_i32_0 : i32, i32
  }
}

</mosaic_0001>

<bundles_post_ra>
// kernel: lstm_classifier_forward.1
= control target key start
LH: loop header
LB: loop body
LE: loop exit
PB: predicated region body
PF: predicated region fallthrough
CT: control target
= control target key end

     0   :  { %s4028_s17 = smov 0   ;;  %s5983_s0 = inlined_call_operand.vmem [shape: bf16[128,16], index: 0, kind: input, shape index: {}, may-alias: {0,1}]   ;;  %s5984_s1 = inlined_call_operand.vmem [shape: bf16[128,16], index: 1, kind: input, shape index: {}, may-alias: {0,1}]   ;;  %s5985_s2 = inlined_call_operand.vmem [shape: bf16[16,512], index: 2, kind: input, shape index: {}]   ;;  %s5986_s3 = inlined_call_operand.vmem [shape: bf16[128,512], index: 3, kind: input, shape index: {}]   ;;  %s5987_s4 = inlined_call_operand.vmem [shape: f32[1,512], index: 4, kind: input, shape index: {}]   ;;  %s5988_s5 = inlined_call_operand.vmem [shape: bf16[16,512], index: 5, kind: input, shape index: {}]   ;;  %s5989_s6 = inlined_call_operand.vmem [shape: bf16[128,512], index: 6, kind: input, shape index: {}]   ;;  %s5990_s7 = inlined_call_operand.vmem [shape: f32[1,512], index: 7, kind: input, shape index: {}]   ;;  %s5991_s8 = inlined_call_operand.vmem [shape: bf16[128,128], index: 8, kind: input, shape index: {}]   ;;  %s5992_s9 = inlined_call_operand.vmem [shape: bf16[128,128], index: 9, kind: input, shape index: {}]   ;;  %s5993_s10 = inlined_call_operand.vmem [shape: f32[1,128], index: 10, kind: input, shape index: {}]   ;;  %s5994_s11 = inlined_call_operand.vmem [shape: f32[16,128], index: 11, kind: output, shape index: {}]  }
   0x1 LB: > { %s4034_s18 = sadd.s32 4294967295, %s3965_s17   ;;  %p3124_p0 = scmp.ge.s32.totalorder %s3965_s17, 1  ;;  %s3965_s17 = sphi %s4028_s17, %s21_s17  }
   0x2   : > { %p348_p1 = scmp.lt.s32.totalorder %s3965_s17, 3 }
   0x4   : > { %p349_p2 = pnand %p3124_p0, %p348_p1 }
   0x6   : > { %352 = sbr.rel (%p349_p2) target bundleno = 1095 (0x447), region = 64 }
   0xb   : > { %s3125_s19 = sshll.u32 %s4034_s18, 3  ;;  %s395_s20 = ssub.s32 1, %s4034_s18 }
   0xc   : > { %p390_p3 = scmp.lt.s32.totalorder %s3125_s19, 15  ;;  %s3127_s21 = sshll.u32 %s395_s20, 3 }
   0xd   : > { %p397_p4 = scmp.lt.s32.totalorder %s3127_s21, 15  ;;  %p3129_p5 = scmp.ne.s32.totalorder %s4034_s18, 0 }
   0xe   : > { %s6357_s19 = smov (!%p390_p3, %s3125_s19), 15 }
   0xf   : > { %s6359_s21 = smov (!%p397_p4, %s3127_s21), 15  ;;  %s3126_s22 = sshll.u32 %s6357_s19, 2 }
  0x10   : > { %s4043_s25 = scalar_lea.vmem %s5983_s0, %s3126_s22  ;;  %s3128_s26 = sshll.u32 %s6359_s21, 2 }
  0x11   : > { %s4048_s29 = scalar_lea.vmem %s5984_s1, %s3128_s26  ;;  %407 = sbr.rel (%p3129_p5) target bundleno = 31 (0x1f), region = 68 }
  0x16   : > { %v3967_v0 = vmov 0.0  }
  0x17   : > { %408 = vst [vmem:[#allocation4] sm:$0xff] %v3967_v0 }
  0x18   : > { %409 = vst [vmem:[#allocation4 + $0x8] sm:$0xff] %v3967_v0 }
  0x19   : > { %410 = vst [vmem:[#allocation5 + $0x8] sm:$0xff] %v3967_v0 }
  0x1a   : > { %411 = vst [vmem:[#allocation5] sm:$0xff] %v3967_v0 }
  0x1b   : > { %412 = vst [vmem:[#allocation6 + $0x8] sm:$0xff] %v3967_v0 }
  0x1c   : > { %413 = vst [vmem:[#allocation6] sm:$0xff] %v3967_v0 }
  0x1d   : > { %414 = vst [vmem:[#allocation7] sm:$0xff] %v3967_v0 }
  0x1e   : > { %415 = vst [vmem:[#allocation7 + $0x8] sm:$0xff] %v3967_v0 }
  0x1f PF: > { %v3148_v1 = vld [vmem:[%s5985_s2] sm:$0xf]  ;;  %v3603_v2 = vld [vmem:[%s5985_s2 + $0xc] sm:$0xf0]  ;;  %v3601_v3 = vld [vmem:[%s5985_s2 + $0x4] sm:$0xf] }
  0x20   : > { %v3149_v4 = vor.u32 %v3603_v2, %v3148_v1  ;;  %v3150_v5 = vld [vmem:[%s5985_s2 + $0x10] sm:$0xf0]  ;;  %v3156_v6 = vld [vmem:[%s5985_s2 + $0x8] sm:$0xf]  ;;  %v3604_v7 = vld [vmem:[%s5985_s2 + $0x14] sm:$0xf0] }
  0x21   : > { %v3153_v8 = vor.u32 %v3601_v3, %v3150_v5  ;;  %v3157_v9 = vor.u32 %v3604_v7, %v3156_v6  ;;  %v3602_v10 = vld [vmem:[%s5985_s2 + $0xc] sm:$0xf]  ;;  %v3158_v11 = vld [vmem:[%s5985_s2 + $0x18] sm:$0xf0]  ;;  %v3597_v12 = vld [vmem:[%s4043_s25] sm:$0xff]  ;;  %vm478_vm0 = vcmask 130048  }
  0x22   : > { %498 = vmatpush.bf16.msra.mxu0 %v3149_v4  ;;  %v3161_v13 = vor.u32 %v3602_v10, %v3158_v11  ;;  %v3196_v14 = vld [vmem:[%s5988_s5] sm:$0xf]  ;;  %v3611_v15 = vld [vmem:[%s5988_s5 + $0xc] sm:$0xf0]  ;;  %v3609_v16 = vld [vmem:[%s5988_s5 + $0x4] sm:$0xf] }
  0x23   : > { %527 = vmatpush.bf16.msra.mxu1 %v3153_v8  ;;  %556 = vmatpush.bf16.msra.mxu2 %v3157_v9  ;;  %v3197_v17 = vor.u32 %v3611_v15, %v3196_v14  ;;  %v3198_v18 = vld [vmem:[%s5988_s5 + $0x10] sm:$0xf0]  ;;  %v3204_v19 = vld [vmem:[%s5988_s5 + $0x8] sm:$0xf]  ;;  %v3612_v20 = vld [vmem:[%s5988_s5 + $0x14] sm:$0xf0] }
  0x24   : > { %585 = vmatpush.bf16.msra.mxu3 %v3161_v13  ;;  %v3201_v21 = vor.u32 %v3609_v16, %v3198_v18  ;;  %v3205_v22 = vor.u32 %v3612_v20, %v3204_v19  ;;  %v3610_v23 = vld [vmem:[%s5988_s5 + $0xc] sm:$0xf]  ;;  %v3206_v24 = vld [vmem:[%s5988_s5 + $0x18] sm:$0xf0]  ;;  %v3599_v27 = vld [vmem:[%s4043_s25 + $0x10] sm:$0xff]  ;;  %p3530_p6 = scmp.ne.s32.totalorder %s4034_s18, 1 }
  0x25   : > { %3162 = vmatmul.msk.bf16.vlgmr.msra.gmra.mxu0 %vm478_vm0, %v3597_v12  ;;  %v3209_v25 = vor.u32 %v3610_v23, %v3206_v24  ;;  %v3598_v26 = vld [vmem:[%s4043_s25 + $0x8] sm:$0xff]  ;;  %v3340_v28 = vld [vmem:[%s5986_s3 + $0xe0] sm:$0xf]  ;;  %v3643_v29 = vld [vmem:[%s5986_s3 + $0xec] sm:$0xf0] }
  0x26   : > { %3166 = vmatmul.msk.bf16.vlgmr.msra.gmra.mxu1 %vm478_vm0, %v3597_v12  ;;  %3170 = vmatmul.msk.bf16.vlgmr.msra.gmra.mxu2 %vm478_vm0, %v3597_v12  ;;  %v3641_v30 = vld [vmem:[%s5986_s3 + $0xe4] sm:$0xf]  ;;  %v4123_v31 = vor.u32 %v3643_v29, %v3340_v28  ;;  %v3342_v32 = vld [vmem:[%s5986_s3 + $0xf0] sm:$0xf0]  ;;  %v3348_v33 = vld [vmem:[%s5986_s3 + $0xe8] sm:$0xf] }
  0x27   : > { %3174 = vmatmul.msk.bf16.vlgmr.msra.gmra.mxu3 %vm478_vm0, %v3597_v12  ;;  %720 = vmatpush.bf16.msrb.mxu0 %v3197_v17  ;;  %v3644_v34 = vld [vmem:[%s5986_s3 + $0xf4] sm:$0xf0]  ;;  %v4134_v35 = vor.u32 %v3641_v30, %v3342_v32  ;;  %v3324_v37 = vld [vmem:[%s5986_s3 + $0xc0] sm:$0xf]  ;;  %v3639_v38 = vld [vmem:[%s5986_s3 + $0xcc] sm:$0xf0] }
  0x28   : > { %749 = vmatpush.bf16.msrb.mxu1 %v3201_v21  ;;  %778 = vmatpush.bf16.msrb.mxu2 %v3205_v22  ;;  %v4136_v36 = vor.u32 %v3644_v34, %v3348_v33  ;;  %v3637_v39 = vld [vmem:[%s5986_s3 + $0xc4] sm:$0xf]  ;;  %v4148_v40 = vor.u32 %v3639_v38, %v3324_v37  ;;  %v3326_v41 = vld [vmem:[%s5986_s3 + $0xd0] sm:$0xf0]  ;;  %v3332_v42 = vld [vmem:[%s5986_s3 + $0xc8] sm:$0xf] }
  0x29   : > { %807 = vmatpush.bf16.msrb.mxu3 %v3209_v25  ;;  %v3640_v43 = vld [vmem:[%s5986_s3 + $0xd4] sm:$0xf0]  ;;  %v4161_v44 = vor.u32 %v3637_v39, %v3326_v41  ;;  %v3642_v46 = vld [vmem:[%s5986_s3 + $0xec] sm:$0xf]  ;;  %v3350_v47 = vld [vmem:[%s5986_s3 + $0xf8] sm:$0xf0] }
  0x2a   : > { %v4163_v45 = vor.u32 %v3640_v43, %v3332_v42  ;;  %v4171_v48 = vor.u32 %v3642_v46, %v3350_v47  ;;  %v3600_v49 = vld [vmem:[%s4043_s25 + $0x18] sm:$0xff]  ;;  %v3308_v50 = vld [vmem:[%s5986_s3 + $0xa0] sm:$0xf]  ;;  %v3635_v51 = vld [vmem:[%s5986_s3 + $0xac] sm:$0xf0] }
  0x2b   : > { %1109 = vmatpush.bf16.msra.mxu0 %v4123_v31  ;;  %6103 = vst [vmem:[#allocation8_spill] sm:$0xff] %v4161_v44  ;;  %v3633_v52 = vld [vmem:[%s5986_s3 + $0xa4] sm:$0xf]  ;;  %v4191_v53 = vor.u32 %v3635_v51, %v3308_v50  ;;  %v3310_v54 = vld [vmem:[%s5986_s3 + $0xb0] sm:$0xf0] }
  0x2c   : > { %1123 = vmatpush.bf16.msra.mxu1 %v4134_v35  ;;  %1137 = vmatpush.bf16.msra.mxu2 %v4136_v36  ;;  %6104 = vst [vmem:[#allocation9_spill] sm:$0xff] %v4163_v45  ;;  %v3316_v55 = vld [vmem:[%s5986_s3 + $0xa8] sm:$0xf]  ;;  %v3636_v56 = vld [vmem:[%s5986_s3 + $0xb4] sm:$0xf0]  ;;  %v4202_v57 = vor.u32 %v3633_v52, %v3310_v54  ;;  %v3605_v10 = vld [vmem:[%s4048_s29] sm:$0xff] }
  0x2d   : > { %6105 = vst [vmem:[#allocation10_spill] sm:$0xff] %v4171_v48  ;;  %1151 = vmatpush.bf16.msra.mxu3 %v4171_v48  ;;  %v4204_v58 = vor.u32 %v3636_v56, %v3316_v55  ;;  %v3638_v59 = vld [vmem:[%s5986_s3 + $0xcc] sm:$0xf]  ;;  %v3334_v60 = vld [vmem:[%s5986_s3 + $0xd8] sm:$0xf0] }
  0x2e   : > { %v3292_v61 = vld [vmem:[%s5986_s3 + $0x80] sm:$0xf]  ;;  %v4216_v62 = vor.u32 %v3638_v59, %v3334_v60  ;;  %v3631_v63 = vld [vmem:[%s5986_s3 + $0x8c] sm:$0xf0]  ;;  %v3629_v0 = vld [vmem:[%s5986_s3 + $0x84] sm:$0xf] }
  0x2f   : > { %1110 = vmatpush.bf16.msra.mxu0 %v4148_v40  ;;  %v3294_v1 = vld [vmem:[%s5986_s3 + $0x90] sm:$0xf0]  ;;  %v4229_v2 = vor.u32 %v3631_v63, %v3292_v61  ;;  %v3634_v4 = vld [vmem:[%s5986_s3 + $0xac] sm:$0xf]  ;;  %v3318_v5 = vld [vmem:[%s5986_s3 + $0xb8] sm:$0xf0] }
  0x30   : > { %1124 = vmatpush.bf16.msra.mxu1 %v4161_v44  ;;  %1138 = vmatpush.bf16.msra.mxu2 %v4163_v45  ;;  %6106 = vst [vmem:[#allocation11_spill] sm:$0xff] %v4216_v62  ;;  %v4231_v3 = vor.u32 %v3629_v0, %v3294_v1  ;;  %v3300_v6 = vld [vmem:[%s5986_s3 + $0x88] sm:$0xf]  ;;  %v4243_v7 = vor.u32 %v3634_v4, %v3318_v5  ;;  %v3632_v8 = vld [vmem:[%s5986_s3 + $0x94] sm:$0xf0] }
  0x31   : > { %1152 = vmatpush.bf16.msra.mxu3 %v4216_v62  ;;  %v4248_v9 = vor.u32 %v3632_v8, %v3300_v6  ;;  %v3630_v11 = vld [vmem:[%s5986_s3 + $0x8c] sm:$0xf]  ;;  %v3302_v12 = vld [vmem:[%s5986_s3 + $0x98] sm:$0xf0]  ;;  %v3276_v14 = vld [vmem:[%s5986_s3 + $0x60] sm:$0xf] }
  0x32   : > { %v4262_v13 = vor.u32 %v3630_v11, %v3302_v12  ;;  %v3627_v15 = vld [vmem:[%s5986_s3 + $0x6c] sm:$0xf0]  ;;  %v3625_v16 = vld [vmem:[%s5986_s3 + $0x64] sm:$0xf]  ;;  %v3278_v18 = vld [vmem:[%s5986_s3 + $0x70] sm:$0xf0] }
  0x33   : > { %1111 = vmatpush.bf16.msra.mxu0 %v4191_v53  ;;  %6107 = vst [vmem:[#allocation12_spill] sm:$0xff] %v4248_v9  ;;  %v4276_v17 = vor.u32 %v3627_v15, %v3276_v14  ;;  %v3284_v19 = vld [vmem:[%s5986_s3 + $0x68] sm:$0xf]  ;;  %v3628_v20 = vld [vmem:[%s5986_s3 + $0x74] sm:$0xf0]  ;;  %v4288_v21 = vor.u32 %v3625_v16, %v3278_v18 }
  0x34   : > { %1125 = vmatpush.bf16.msra.mxu1 %v4202_v57  ;;  %1139 = vmatpush.bf16.msra.mxu2 %v4204_v58  ;;  %6108 = vst [vmem:[#allocation13_spill] sm:$0xff] %v4262_v13  ;;  %v4290_v22 = vor.u32 %v3628_v20, %v3284_v19  ;;  %v3626_v23 = vld [vmem:[%s5986_s3 + $0x6c] sm:$0xf]  ;;  %v3286_v24 = vld [vmem:[%s5986_s3 + $0x78] sm:$0xf0] }
  0x35   : > { %3163 = vmatmul.msk.bf16.gmra.mxu0 %vm478_vm0, %v3598_v26  ;;  %1153 = vmatpush.bf16.msra.mxu3 %v4243_v7  ;;  %v3260_v25 = vld [vmem:[%s5986_s3 + $0x40] sm:$0xf]  ;;  %v3621_v28 = vld [vmem:[%s5986_s3 + $0x44] sm:$0xf]  ;;  %v3262_v29 = vld [vmem:[%s5986_s3 + $0x50] sm:$0xf0] }
  0x36   : > { %3167 = vmatmul.msk.bf16.gmra.mxu1 %vm478_vm0, %v3598_v26  ;;  %3171 = vmatmul.msk.bf16.gmra.mxu2 %vm478_vm0, %v3598_v26  ;;  %v4317_v32 = vor.u32 %v3621_v28, %v3262_v29  ;;  %v3268_v33 = vld [vmem:[%s5986_s3 + $0x48] sm:$0xf]  ;;  %v3624_v34 = vld [vmem:[%s5986_s3 + $0x54] sm:$0xf0]  ;;  %v3622_v37 = vld [vmem:[%s5986_s3 + $0x4c] sm:$0xf] }
  0x37   : > { %3175 = vmatmul.msk.bf16.gmra.mxu3 %vm478_vm0, %v3598_v26  ;;  %1112 = vmatpush.bf16.msra.mxu0 %v4229_v2  ;;  %v4302_v26 = vor.u32 %v3626_v23, %v3286_v24  ;;  %v4329_v38 = vor.u32 %v3624_v34, %v3268_v33  ;;  %v3270_v39 = vld [vmem:[%s5986_s3 + $0x58] sm:$0xf0]  ;;  %v3244_v41 = vld [vmem:[%s5986_s3 + $0x20] sm:$0xf]  ;;  %v3619_v42 = vld [vmem:[%s5986_s3 + $0x2c] sm:$0xf0] }
  0x38   : > { %1126 = vmatpush.bf16.msra.mxu1 %v4231_v3  ;;  %1140 = vmatpush.bf16.msra.mxu2 %v4248_v9  ;;  %6109 = vst [vmem:[#allocation14_spill] sm:$0xff] %v4317_v32  ;;  %v4340_v43 = vor.u32 %v3622_v37, %v3270_v39  ;;  %v3617_v46 = vld [vmem:[%s5986_s3 + $0x24] sm:$0xf]  ;;  %v3246_v47 = vld [vmem:[%s5986_s3 + $0x30] sm:$0xf0]  ;;  %v4352_v50 = vor.u32 %v3619_v42, %v3244_v41  ;;  %v3606_v60 = vld [vmem:[%s4048_s29 + $0x8] sm:$0xff] }
  0x39   : > { %1154 = vmatpush.bf16.msra.mxu3 %v4262_v13  ;;  %v3620_v51 = vld [vmem:[%s5986_s3 + $0x34] sm:$0xf0]  ;;  %v3618_v52 = vld [vmem:[%s5986_s3 + $0x2c] sm:$0xf]  ;;  %v3254_v54 = vld [vmem:[%s5986_s3 + $0x38] sm:$0xf0]  ;;  %v4365_v55 = vor.u32 %v3617_v46, %v3246_v47 }
  0x3a   : > { %6110 = vst [vmem:[#allocation15_spill] sm:$0xff] %v4352_v50  ;;  %v4370_v59 = vor.u32 %v3618_v52, %v3254_v54  ;;  %v3228_v61 = vld [vmem:[%s5986_s3] sm:$0xf]  ;;  %v3615_v63 = vld [vmem:[%s5986_s3 + $0xc] sm:$0xf0] }
  0x3b   : > { %1113 = vmatpush.bf16.msra.mxu0 %v4276_v17  ;;  %6111 = vst [vmem:[#allocation16_spill] sm:$0xff] %v4365_v55  ;;  %v3613_v0 = vld [vmem:[%s5986_s3 + $0x4] sm:$0xf]  ;;  %v4387_v1 = vor.u32 %v3615_v63, %v3228_v61  ;;  %v3230_v4 = vld [vmem:[%s5986_s3 + $0x10] sm:$0xf0] }
  0x3c   : > { %1127 = vmatpush.bf16.msra.mxu1 %v4288_v21  ;;  %1141 = vmatpush.bf16.msra.mxu2 %v4290_v22  ;;  %6113 = vst [vmem:[#allocation18_spill] sm:$0xff] %v4370_v59  ;;  %v3236_v5 = vld [vmem:[%s5986_s3 + $0x8] sm:$0xf]  ;;  %v3616_v6 = vld [vmem:[%s5986_s3 + $0x14] sm:$0xf0]  ;;  %v4400_v8 = vor.u32 %v3613_v0, %v3230_v4 }
  0x3d   : > { %1155 = vmatpush.bf16.msra.mxu3 %v4302_v26  ;;  %6114 = vst [vmem:[#allocation19_spill] sm:$0xff] %v4387_v1  ;;  %v3614_v11 = vld [vmem:[%s5986_s3 + $0xc] sm:$0xf]  ;;  %v3238_v12 = vld [vmem:[%s5986_s3 + $0x18] sm:$0xf0] }
  0x3e   : > { %6115 = vst [vmem:[#allocation20_spill] sm:$0xff] %v4400_v8  ;;  %v3474_v14 = vld [vmem:[%s5989_s6 + $0xe0] sm:$0xf]  ;;  %v4415_v15 = vor.u32 %v3614_v11, %v3238_v12  ;;  %v3675_v16 = vld [vmem:[%s5989_s6 + $0xec] sm:$0xf0] }
  0x3f   : > { %v3673_v18 = vld [vmem:[%s5989_s6 + $0xe4] sm:$0xf]  ;;  %v3476_v19 = vld [vmem:[%s5989_s6 + $0xf0] sm:$0xf0]  ;;  %v4428_v20 = vor.u32 %v3675_v16, %v3474_v14  ;;  %v3482_v24 = vld [vmem:[%s5989_s6 + $0xe8] sm:$0xf] }
  0x40   : > { %1128 = vmatpush.bf16.msra.mxu1 %v4317_v32  ;;  %1142 = vmatpush.bf16.msra.mxu2 %v4329_v38  ;;  %6117 = vst [vmem:[#allocation22_spill] sm:$0xff] %v4415_v15  ;;  %v4430_v23 = vor.u32 %v3673_v18, %v3476_v19  ;;  %v3484_v29 = vld [vmem:[%s5989_s6 + $0xf8] sm:$0xf0]  ;;  %v3458_v33 = vld [vmem:[%s5989_s6 + $0xc0] sm:$0xf]  ;;  %v3607_v19 = vld [vmem:[%s4048_s29 + $0x10] sm:$0xff] }
  0x41   : > { %1156 = vmatpush.bf16.msra.mxu3 %v4340_v43  ;;  %6118 = vst [vmem:[#allocation23_spill] sm:$0xff] %v4428_v20  ;;  %v3671_v34 = vld [vmem:[%s5989_s6 + $0xcc] sm:$0xf0]  ;;  %v3669_v41 = vld [vmem:[%s5989_s6 + $0xc4] sm:$0xf] }
  0x42   : > { %6119 = vst [vmem:[#allocation24_spill] sm:$0xff] %v4430_v23  ;;  %v4457_v39 = vor.u32 %v3671_v34, %v3458_v33  ;;  %v3460_v42 = vld [vmem:[%s5989_s6 + $0xd0] sm:$0xf0]  ;;  %v3466_v46 = vld [vmem:[%s5989_s6 + $0xc8] sm:$0xf] }
  0x43   : > { %v4469_v47 = vor.u32 %v3669_v41, %v3460_v42  ;;  %v3468_v52 = vld [vmem:[%s5989_s6 + $0xd8] sm:$0xf0]  ;;  %v3442_v61 = vld [vmem:[%s5989_s6 + $0xa0] sm:$0xf]  ;;  %v3667_v63 = vld [vmem:[%s5989_s6 + $0xac] sm:$0xf0] }
  0x44   : > { %1129 = vmatpush.bf16.msra.mxu1 %v4365_v55  ;;  %6122 = vst [vmem:[#allocation27_spill] sm:$0xff] %v4457_v39  ;;  %v3665_v0 = vld [vmem:[%s5989_s6 + $0xa4] sm:$0xf]  ;;  %v3444_v4 = vld [vmem:[%s5989_s6 + $0xb0] sm:$0xf0]  ;;  %v4505_v11 = vor.u32 %v3667_v63, %v3442_v61 }
  0x45   : > { %3164 = vmatmul.msk.bf16.gmra.mxu0 %vm478_vm0, %v3599_v27  ;;  %1157 = vmatpush.bf16.msra.mxu3 %v4370_v59  ;;  %6123 = vst [vmem:[#allocation28_spill] sm:$0xff] %v4469_v47  ;;  %v4507_v12 = vor.u32 %v3665_v0, %v3444_v4  ;;  %v3666_v14 = vld [vmem:[%s5989_s6 + $0xac] sm:$0xf]  ;;  %v3452_v16 = vld [vmem:[%s5989_s6 + $0xb8] sm:$0xf0] }
  0x46   : > { %3168 = vmatmul.msk.bf16.gmra.mxu1 %vm478_vm0, %v3599_v27  ;;  %3172 = vmatmul.msk.bf16.gmra.mxu2 %vm478_vm0, %v3599_v27  ;;  %6126 = vst [vmem:[#allocation31_spill] sm:$0xff] %v4505_v11  ;;  %v3428_v33 = vld [vmem:[%s5989_s6 + $0x90] sm:$0xf0]  ;;  %v3434_v34 = vld [vmem:[%s5989_s6 + $0x88] sm:$0xf] }
  0x47   : > { %3176 = vmatmul.msk.bf16.gmra.mxu3 %vm478_vm0, %v3599_v27  ;;  %v3623_v27 = vld [vmem:[%s5986_s3 + $0x4c] sm:$0xf0]  ;;  %6127 = vst [vmem:[#allocation32_spill] sm:$0xff] %v4507_v12  ;;  %v3664_v41 = vld [vmem:[%s5989_s6 + $0x94] sm:$0xf0] }
  0x48   : > { %v4315_v30 = vor.u32 %v3623_v27, %v3260_v25  ;;  %1130 = vmatpush.bf16.msra.mxu1 %v4400_v8  ;;  %v3676_v25 = vld [vmem:[%s5989_s6 + $0xf4] sm:$0xf0]  ;;  %v3674_v27 = vld [vmem:[%s5989_s6 + $0xec] sm:$0xf]  ;;  %v3410_v63 = vld [vmem:[%s5989_s6 + $0x60] sm:$0xf] }
  0x49   : > { %1158 = vmatpush.bf16.msra.mxu3 %v4415_v15  ;;  %v4442_v28 = vor.u32 %v3676_v25, %v3482_v24  ;;  %v4455_v37 = vor.u32 %v3674_v27, %v3484_v29  ;;  %v4520_v24 = vor.u32 %v3666_v14, %v3452_v16  ;;  %v3426_v25 = vld [vmem:[%s5989_s6 + $0x80] sm:$0xf]  ;;  %v3663_v27 = vld [vmem:[%s5989_s6 + $0x8c] sm:$0xf0]  ;;  %v3661_v29 = vld [vmem:[%s5989_s6 + $0x84] sm:$0xf] }
  0x4a   : > { %1114 = vmatpush.bf16.msra.mxu0 %v4315_v30  ;;  %v4543_v42 = vor.u32 %v3663_v27, %v3426_v25  ;;  %v3659_v0 = vld [vmem:[%s5989_s6 + $0x6c] sm:$0xf0]  ;;  %v3657_v4 = vld [vmem:[%s5989_s6 + $0x64] sm:$0xf]  ;;  %v3660_v14 = vld [vmem:[%s5989_s6 + $0x74] sm:$0xf0] }
  0x4b   : > { %6120 = vst [vmem:[#allocation25_spill] sm:$0xff] %v4442_v28  ;;  %v4581_v16 = vor.u32 %v3659_v0, %v3410_v63  ;;  %v3658_v25 = vld [vmem:[%s5989_s6 + $0x6c] sm:$0xf]  ;;  %v3420_v27 = vld [vmem:[%s5989_s6 + $0x78] sm:$0xf0] }
  0x4c   : > { %6121 = vst [vmem:[#allocation26_spill] sm:$0xff] %v4455_v37  ;;  %v3402_v63 = vld [vmem:[%s5989_s6 + $0x48] sm:$0xf] }
  0x4d   : > { %6129 = vst [vmem:[#allocation34_spill] sm:$0xff] %v4520_v24 }
  0x4e   : > { %1115 = vmatpush.bf16.msra.mxu0 %v4352_v50  ;;  %6130 = vst [vmem:[#allocation35_spill] sm:$0xff] %v4543_v42 }
  0x4f   : > { %6134 = vst [vmem:[#allocation39_spill] sm:$0xff] %v4581_v16 }
  0x52   : > { %1116 = vmatpush.bf16.msra.mxu0 %v4387_v1 }
  0x55   : > { %3165 = vmatmul.msk.bf16.gmra.mxu0 %vm478_vm0, %v3600_v49 }
  0x56   : > { %3169 = vmatmul.msk.bf16.gmra.mxu1 %vm478_vm0, %v3600_v49  ;;  %3173 = vmatmul.msk.bf16.gmra.mxu2 %vm478_vm0, %v3600_v49 }
  0x57   : > { %3177 = vmatmul.msk.bf16.gmra.mxu3 %vm478_vm0, %v3600_v49  ;;  %v3252_v49 = vld [vmem:[%s5986_s3 + $0x28] sm:$0xf] }
  0x58   : > { %v4367_v56 = vor.u32 %v3620_v51, %v3252_v49  ;;  %v3672_v49 = vld [vmem:[%s5989_s6 + $0xd4] sm:$0xf0]  ;;  %v3670_v51 = vld [vmem:[%s5989_s6 + $0xcc] sm:$0xf] }
  0x59   : > { %v4481_v54 = vor.u32 %v3672_v49, %v3466_v46  ;;  %v3662_v46 = vld [vmem:[%s5989_s6 + $0x8c] sm:$0xf]  ;;  %v3436_v49 = vld [vmem:[%s5989_s6 + $0x98] sm:$0xf0] }
  0x5a   : > { %6112 = vst [vmem:[#allocation17_spill] sm:$0xff] %v4367_v56  ;;  %1143 = vmatpush.bf16.msra.mxu2 %v4367_v56  ;;  %v4557_v61 = vor.u32 %v3662_v46, %v3436_v49  ;;  %v3653_v46 = vld [vmem:[%s5989_s6 + $0x44] sm:$0xf]  ;;  %v3396_v49 = vld [vmem:[%s5989_s6 + $0x50] sm:$0xf0] }
  0x5b   : > { %6124 = vst [vmem:[#allocation29_spill] sm:$0xff] %v4481_v54 }
  0x5c   : > { %6133 = vst [vmem:[#allocation38_spill] sm:$0xff] %v4557_v61 }
  0x65   : > { %3210 = vmatmul.msk.bf16.vlgmr.msrb.gmra.mxu0 %vm478_vm0, %v3605_v10 }
  0x66   : > { %3214 = vmatmul.msk.bf16.vlgmr.msrb.gmra.mxu1 %vm478_vm0, %v3605_v10  ;;  %3218 = vmatmul.msk.bf16.vlgmr.msrb.gmra.mxu2 %vm478_vm0, %v3605_v10 }
  0x67   : > { %3222 = vmatmul.msk.bf16.vlgmr.msrb.gmra.mxu3 %vm478_vm0, %v3605_v10  ;;  %v4402_v10 = vor.u32 %v3616_v6, %v3236_v5  ;;  %1475 = vmatpush.bf16.msrb.mxu0 %v4428_v20  ;;  %v3450_v5 = vld [vmem:[%s5989_s6 + $0xa8] sm:$0xf]  ;;  %v3668_v6 = vld [vmem:[%s5989_s6 + $0xb4] sm:$0xf0] }
  0x68   : > { %1489 = vmatpush.bf16.msrb.mxu1 %v4430_v23  ;;  %1517 = vmatpush.bf16.msrb.mxu3 %v4455_v37  ;;  %v4516_v18 = vor.u32 %v3668_v6, %v3450_v5  ;;  %v3412_v5 = vld [vmem:[%s5989_s6 + $0x70] sm:$0xf0]  ;;  %v3418_v6 = vld [vmem:[%s5989_s6 + $0x68] sm:$0xf] }
  0x69   : > { %6116 = vst [vmem:[#allocation21_spill] sm:$0xff] %v4402_v10  ;;  %1144 = vmatpush.bf16.msra.mxu2 %v4402_v10 }
  0x6a   : > { %6128 = vst [vmem:[#allocation33_spill] sm:$0xff] %v4516_v18 }
  0x6b   : > { %1476 = vmatpush.bf16.msrb.mxu0 %v4457_v39 }
  0x6c   : > { %1490 = vmatpush.bf16.msrb.mxu1 %v4469_v47 }
  0x6d   : > { %1503 = vmatpush.bf16.msrb.mxu2 %v4442_v28 }
  0x6f   : > { %1477 = vmatpush.bf16.msrb.mxu0 %v4505_v11 }
  0x70   : > { %1491 = vmatpush.bf16.msrb.mxu1 %v4507_v12 }
  0x71   : > { %1504 = vmatpush.bf16.msrb.mxu2 %v4481_v54 }
  0x73   : > { %1478 = vmatpush.bf16.msrb.mxu0 %v4543_v42 }
  0x75   : > { %3211 = vmatmul.msk.bf16.gmra.mxu0 %vm478_vm0, %v3606_v60  ;;  %1505 = vmatpush.bf16.msrb.mxu2 %v4516_v18 }
  0x76   : > { %3215 = vmatmul.msk.bf16.gmra.mxu1 %vm478_vm0, %v3606_v60  ;;  %3219 = vmatmul.msk.bf16.gmra.mxu2 %vm478_vm0, %v3606_v60 }
  0x77   : > { %3223 = vmatmul.msk.bf16.gmra.mxu3 %vm478_vm0, %v3606_v60  ;;  %v4483_v60 = vor.u32 %v3670_v51, %v3468_v52  ;;  %v4552_v51 = vor.u32 %v3661_v29, %v3428_v33  ;;  %v4554_v52 = vor.u32 %v3664_v41, %v3434_v34  ;;  %v4591_v29 = vor.u32 %v3657_v4, %v3412_v5  ;;  %v3394_v34 = vld [vmem:[%s5989_s6 + $0x40] sm:$0xf]  ;;  %v3655_v41 = vld [vmem:[%s5989_s6 + $0x4c] sm:$0xf0]  ;;  %v3656_v4 = vld [vmem:[%s5989_s6 + $0x54] sm:$0xf0] }
  0x78   : > { %v4593_v33 = vor.u32 %v3660_v14, %v3418_v6  ;;  %1479 = vmatpush.bf16.msrb.mxu0 %v4581_v16  ;;  %v4614_v0 = vor.u32 %v3655_v41, %v3394_v34  ;;  %v3654_v5 = vld [vmem:[%s5989_s6 + $0x4c] sm:$0xf]  ;;  %v3404_v6 = vld [vmem:[%s5989_s6 + $0x58] sm:$0xf0]  ;;  %v4627_v14 = vor.u32 %v3653_v46, %v3396_v49  ;;  %v3378_v34 = vld [vmem:[%s5989_s6 + $0x20] sm:$0xf] }
  0x79   : > { %6125 = vst [vmem:[#allocation30_spill] sm:$0xff] %v4483_v60  ;;  %1518 = vmatpush.bf16.msrb.mxu3 %v4483_v60  ;;  %1492 = vmatpush.bf16.msrb.mxu1 %v4552_v51  ;;  %v3651_v41 = vld [vmem:[%s5989_s6 + $0x2c] sm:$0xf0]  ;;  %v3380_v46 = vld [vmem:[%s5989_s6 + $0x30] sm:$0xf0] }
  0x7a   : > { %6131 = vst [vmem:[#allocation36_spill] sm:$0xff] %v4552_v51  ;;  %1506 = vmatpush.bf16.msrb.mxu2 %v4554_v52  ;;  %v3386_v49 = vld [vmem:[%s5989_s6 + $0x28] sm:$0xf] }
  0x7b   : > { %6132 = vst [vmem:[#allocation37_spill] sm:$0xff] %v4554_v52 }
  0x7c   : > { %6135 = vst [vmem:[#allocation40_spill] sm:$0xff] %v4591_v29  ;;  %1480 = vmatpush.bf16.msrb.mxu0 %v4614_v0 }
  0x7d   : > { %1519 = vmatpush.bf16.msrb.mxu3 %v4520_v24  ;;  %6136 = vst [vmem:[#allocation41_spill] sm:$0xff] %v4593_v33  ;;  %1493 = vmatpush.bf16.msrb.mxu1 %v4591_v29 }
  0x7e   : > { %6138 = vst [vmem:[#allocation43_spill] sm:$0xff] %v4614_v0  ;;  %1507 = vmatpush.bf16.msrb.mxu2 %v4593_v33  ;;  %v3649_v33 = vld [vmem:[%s5989_s6 + $0x24] sm:$0xf]  ;;  %v3647_v0 = vld [vmem:[%s5989_s6 + $0xc] sm:$0xf0] }
  0x7f   : > { %6139 = vst [vmem:[#allocation44_spill] sm:$0xff] %v4627_v14  ;;  %v4664_v29 = vor.u32 %v3649_v33, %v3380_v46  ;;  %v3364_v33 = vld [vmem:[%s5989_s6 + $0x10] sm:$0xf0]  ;;  %v3370_v46 = vld [vmem:[%s5989_s6 + $0x8] sm:$0xf] }
  0x81   : > { %1520 = vmatpush.bf16.msrb.mxu3 %v4557_v61  ;;  %1494 = vmatpush.bf16.msrb.mxu1 %v4627_v14  ;;  %6143 = vst [vmem:[#allocation48_spill] sm:$0xff] %v4664_v29 }
  0x85   : > { %3212 = vmatmul.msk.bf16.gmra.mxu0 %vm478_vm0, %v3607_v19  ;;  %1495 = vmatpush.bf16.msrb.mxu1 %v4664_v29 }
  0x86   : > { %3216 = vmatmul.msk.bf16.gmra.mxu1 %vm478_vm0, %v3607_v19  ;;  %3220 = vmatmul.msk.bf16.gmra.mxu2 %vm478_vm0, %v3607_v19 }
  0x87   : > { %3224 = vmatmul.msk.bf16.gmra.mxu3 %vm478_vm0, %v3607_v19  ;;  %v4596_v19 = vor.u32 %v3658_v25, %v3420_v27  ;;  %v4629_v25 = vor.u32 %v3656_v4, %v3402_v63  ;;  %v4632_v27 = vor.u32 %v3654_v5, %v3404_v6  ;;  %v3652_v63 = vld [vmem:[%s5989_s6 + $0x34] sm:$0xf0]  ;;  %v4653_v4 = vor.u32 %v3651_v41, %v3378_v34  ;;  %v3650_v5 = vld [vmem:[%s5989_s6 + $0x2c] sm:$0xf]  ;;  %v3388_v6 = vld [vmem:[%s5989_s6 + $0x38] sm:$0xf0] }
  0x88   : > { %v4666_v16 = vor.u32 %v3652_v63, %v3386_v49  ;;  %v4669_v34 = vor.u32 %v3650_v5, %v3388_v6  ;;  %v3362_v41 = vld [vmem:[%s5989_s6] sm:$0xf]  ;;  %v3648_v49 = vld [vmem:[%s5989_s6 + $0x14] sm:$0xf0]  ;;  %v3646_v5 = vld [vmem:[%s5989_s6 + $0xc] sm:$0xf] }
  0x89   : > { %6137 = vst [vmem:[#allocation42_spill] sm:$0xff] %v4596_v19  ;;  %1521 = vmatpush.bf16.msrb.mxu3 %v4596_v19  ;;  %v3608_v19 = vld [vmem:[%s4048_s29 + $0x18] sm:$0xff]  ;;  %1508 = vmatpush.bf16.msrb.mxu2 %v4629_v25  ;;  %v4690_v63 = vor.u32 %v3647_v0, %v3362_v41  ;;  %v4702_v14 = vor.u32 %v3648_v49, %v3370_v46  ;;  %v925_v41 = vld [vmem:[#allocation4] sm:$0xff] }
  0x8a   : > { %6140 = vst [vmem:[#allocation45_spill] sm:$0xff] %v4629_v25  ;;  %v3645_v25 = vld [vmem:[%s5989_s6 + $0x4] sm:$0xf]  ;;  %1481 = vmatpush.bf16.msrb.mxu0 %v4653_v4  ;;  %v3372_v6 = vld [vmem:[%s5989_s6 + $0x18] sm:$0xf0] }
  0x8b   : > { %6141 = vst [vmem:[#allocation46_spill] sm:$0xff] %v4632_v27  ;;  %v4706_v0 = vor.u32 %v3646_v5, %v3372_v6 }
  0x8c   : > { %6142 = vst [vmem:[#allocation47_spill] sm:$0xff] %v4653_v4 }
  0x8d   : > { %6144 = vst [vmem:[#allocation49_spill] sm:$0xff] %v4666_v16  ;;  %1522 = vmatpush.bf16.msrb.mxu3 %v4632_v27  ;;  %1509 = vmatpush.bf16.msrb.mxu2 %v4666_v16  ;;  %v4700_v27 = vor.u32 %v3645_v25, %v3364_v33  ;;  %v428_v25 = vld [vmem:[%s5987_s4] sm:$0xf]  ;;  %v926_v33 = vld [vmem:[#allocation4 + $0x8] sm:$0xff] }
  0x8e   : > { %6145 = vst [vmem:[#allocation50_spill] sm:$0xff] %v4669_v34  ;;  %1482 = vmatpush.bf16.msrb.mxu0 %v4690_v63  ;;  %v4718_v46 = vperm.slane %v428_v25, 0  ;;  %v4720_v49 = vperm.slane %v428_v25, 1  ;;  %v948_v5 = vpack.c.bf16 %v926_v33, %v925_v41 }
  0x8f   : > { %6146 = vst [vmem:[#allocation51_spill] sm:$0xff] %v4690_v63  ;;  %1496 = vmatpush.bf16.msrb.mxu1 %v4700_v27 }
  0x90   : > { %6147 = vst [vmem:[#allocation52_spill] sm:$0xff] %v4700_v27 }
  0x91   : > { %6148 = vst [vmem:[#allocation53_spill] sm:$0xff] %v4702_v14  ;;  %1523 = vmatpush.bf16.msrb.mxu3 %v4669_v34  ;;  %1510 = vmatpush.bf16.msrb.mxu2 %v4702_v14  ;;  %v4728_v34 = vperm.slane %v428_v25, 3 }
  0x92   : > { %6149 = vst [vmem:[#allocation54_spill] sm:$0xff] %v4706_v0 }
  0x95   : > { %3213 = vmatmul.msk.bf16.gmra.mxu0 %vm478_vm0, %v3608_v19  ;;  %1524 = vmatpush.bf16.msrb.mxu3 %v4706_v0  ;;  %v4726_v0 = vperm.slane %v428_v25, 2 }
  0x96   : > { %3217 = vmatmul.msk.bf16.gmra.mxu1 %vm478_vm0, %v3608_v19  ;;  %3221 = vmatmul.msk.bf16.gmra.mxu2 %vm478_vm0, %v3608_v19 }
  0x97   : > { %3225 = vmatmul.msk.bf16.gmra.mxu3 %vm478_vm0, %v3608_v19 }
  0xa2   : > { %v500_v19 = vpop.f32.mrf.mxu0 }
  0xa3   : > { %v501_v6 = vadd.f32 %v500_v19, %v4718_v46  ;;  %v529_v63 = vpop.f32.mrf.mxu1 }
  0xa4   : > { %v530_v27 = vadd.f32 %v529_v63, %v4720_v49 }
  0xa5   : > { %1117 = vmatmul.bf16.vlgmr.msra.gmra.mxu0 %v948_v5 }
  0xa6   : > { %v4724_v14 = vpack.c.bf16 %v530_v27, %v501_v6  ;;  %1131 = vmatmul.bf16.vlgmr.msra.gmra.mxu1 %v948_v5  ;;  %1145 = vmatmul.bf16.vlgmr.msra.gmra.mxu2 %v948_v5 }
  0xa7   : > { %1159 = vmatmul.bf16.vlgmr.msra.gmra.mxu3 %v948_v5  ;;  %1681 = vmatpush.bf16.msra.mxu0 %v4123_v31  ;;  %v929_v5 = vld [vmem:[#allocation6 + $0x8] sm:$0xff] }
  0xa8   : > { %1695 = vmatpush.bf16.msra.mxu1 %v4134_v35  ;;  %1709 = vmatpush.bf16.msra.mxu2 %v4136_v36 }
  0xa9   : > { %v558_v41 = vpop.f32.mrf.mxu2  ;;  %1723 = vmatpush.bf16.msra.mxu3 %v4171_v48  ;;  %v930_v48 = vld [vmem:[#allocation6] sm:$0xff] }
  0xaa   : > { %v559_v63 = vadd.f32 %v558_v41, %v4726_v0  ;;  %v587_v27 = vpop.f32.mrf.mxu3  ;;  %v4735_v33 = vpop.f32.mrf.mxu0 }
  0xab   : > { %v588_v19 = vadd.f32 %v587_v27, %v4728_v34  ;;  %v4738_v6 = vpop.f32.mrf.mxu1  ;;  %1682 = vmatpush.bf16.msra.mxu0 %v4148_v40  ;;  %v1314_v27 = vpack.c.bf16 %v930_v48, %v929_v5 }
  0xac   : > { %1696 = vmatpush.bf16.msra.mxu1 %v4161_v44  ;;  %1710 = vmatpush.bf16.msra.mxu2 %v4163_v45 }
  0xad   : > { %v4743_v25 = vpack.c.bf16 %v588_v19, %v559_v63  ;;  %1724 = vmatpush.bf16.msra.mxu3 %v4216_v62 }
  0xaf   : > { %1683 = vmatpush.bf16.msra.mxu0 %v4191_v53 }
  0xb0   : > { %1697 = vmatpush.bf16.msra.mxu1 %v4202_v57  ;;  %1711 = vmatpush.bf16.msra.mxu2 %v4204_v58 }
  0xb1   : > { %v4749_v41 = vpop.f32.mrf.mxu2  ;;  %1725 = vmatpush.bf16.msra.mxu3 %v4243_v7 }
  0xb2   : > { %v4752_v44 = vpop.f32.mrf.mxu3  ;;  %v505_v45 = vpop.f32.mrf.mxu0 }
  0xb3   : > { %v506_v63 = vadd.f32 %v505_v45, %v4718_v46  ;;  %v534_v19 = vpop.f32.mrf.mxu1  ;;  %1684 = vmatpush.bf16.msra.mxu0 %v4229_v2 }
  0xb4   : > { %v535_v62 = vadd.f32 %v534_v19, %v4720_v49  ;;  %1698 = vmatpush.bf16.msra.mxu1 %v4231_v3  ;;  %1712 = vmatpush.bf16.msra.mxu2 %v4248_v9 }
  0xb5   : > { %1483 = vmatmul.bf16.vlgmr.msrb.gmra.mxu0 %v1314_v27  ;;  %1726 = vmatpush.bf16.msra.mxu3 %v4262_v13 }
  0xb6   : > { %v4760_v48 = vpack.c.bf16 %v535_v62, %v506_v63  ;;  %1497 = vmatmul.bf16.vlgmr.msrb.gmra.mxu1 %v1314_v27  ;;  %1511 = vmatmul.bf16.vlgmr.msrb.gmra.mxu2 %v1314_v27 }
  0xb7   : > { %1525 = vmatmul.bf16.vlgmr.msrb.gmra.mxu3 %v1314_v27  ;;  %1685 = vmatpush.bf16.msra.mxu0 %v4276_v17 }
  0xb8   : > { %6150 = vst [vmem:[#allocation55_spill] sm:$0xff] %v4760_v48  ;;  %1699 = vmatpush.bf16.msra.mxu1 %v4288_v21  ;;  %1713 = vmatpush.bf16.msra.mxu2 %v4290_v22 }
  0xb9   : > { %v563_v45 = vpop.f32.mrf.mxu2  ;;  %1727 = vmatpush.bf16.msra.mxu3 %v4302_v26 }
  0xba   : > { %v564_v5 = vadd.f32 %v563_v45, %v4726_v0  ;;  %v592_v19 = vpop.f32.mrf.mxu3  ;;  %v507_v9 = vpop.f32.mrf.mxu0 }
  0xbb   : > { %v593_v13 = vadd.f32 %v592_v19, %v4728_v34  ;;  %v508_v62 = vadd.f32 %v507_v9, %v4718_v46  ;;  %v536_v63 = vpop.f32.mrf.mxu1  ;;  %1686 = vmatpush.bf16.msra.mxu0 %v4315_v30 }
  0xbc   : > { %v537_v27 = vadd.f32 %v536_v63, %v4720_v49  ;;  %1700 = vmatpush.bf16.msra.mxu1 %v4317_v32  ;;  %1714 = vmatpush.bf16.msra.mxu2 %v4329_v38 }
  0xbd   : > { %v4773_v48 = vpack.c.bf16 %v593_v13, %v564_v5  ;;  %1728 = vmatpush.bf16.msra.mxu3 %v4340_v43 }
  0xbe   : > { %v4776_v45 = vpack.c.bf16 %v537_v27, %v508_v62 }
  0xbf   : > { %6151 = vst [vmem:[#allocation56_spill] sm:$0xff] %v4773_v48  ;;  %1687 = vmatpush.bf16.msra.mxu0 %v4352_v50 }
  0xc0   : > { %6152 = vst [vmem:[#allocation57_spill] sm:$0xff] %v4776_v45  ;;  %1701 = vmatpush.bf16.msra.mxu1 %v4365_v55  ;;  %1715 = vmatpush.bf16.msra.mxu2 %v4367_v56 }
  0xc1   : > { %v565_v9 = vpop.f32.mrf.mxu2  ;;  %1729 = vmatpush.bf16.msra.mxu3 %v4370_v59 }
  0xc2   : > { %v566_v19 = vadd.f32 %v565_v9, %v4726_v0  ;;  %v594_v63 = vpop.f32.mrf.mxu3  ;;  %v510_v32 = vpop.f32.mrf.mxu0 }
  0xc3   : > { %v595_v13 = vadd.f32 %v594_v63, %v4728_v34  ;;  %v511_v5 = vadd.f32 %v510_v32, %v4718_v46  ;;  %v539_v48 = vpop.f32.mrf.mxu1  ;;  %1688 = vmatpush.bf16.msra.mxu0 %v4387_v1 }
  0xc4   : > { %v540_v62 = vadd.f32 %v539_v48, %v4720_v49  ;;  %1702 = vmatpush.bf16.msra.mxu1 %v4400_v8  ;;  %1716 = vmatpush.bf16.msra.mxu2 %v4402_v10 }
  0xc5   : > { %v4789_v27 = vpack.c.bf16 %v595_v13, %v566_v19  ;;  %1730 = vmatpush.bf16.msra.mxu3 %v4415_v15 }
  0xc6   : > { %v4793_v9 = vpack.c.bf16 %v540_v62, %v511_v5 }
  0xc7   : > { %6153 = vst [vmem:[#allocation58_spill] sm:$0xff] %v4789_v27  ;;  %1887 = vmatpush.bf16.msrb.mxu0 %v4428_v20 }
  0xc8   : > { %6154 = vst [vmem:[#allocation59_spill] sm:$0xff] %v4793_v9  ;;  %1901 = vmatpush.bf16.msrb.mxu1 %v4430_v23  ;;  %1915 = vmatpush.bf16.msrb.mxu2 %v4442_v28 }
  0xc9   : > { %1929 = vmatpush.bf16.msrb.mxu3 %v4455_v37  ;;  %v568_v32 = vpop.f32.mrf.mxu2 }
  0xca   : > { %v569_v48 = vadd.f32 %v568_v32, %v4726_v0  ;;  %v597_v63 = vpop.f32.mrf.mxu3  ;;  %v512_v19 = vpop.f32.mrf.mxu0 }
  0xcb   : > { %1888 = vmatpush.bf16.msrb.mxu0 %v4457_v39  ;;  %v598_v13 = vadd.f32 %v597_v63, %v4728_v34  ;;  %v513_v5 = vadd.f32 %v512_v19, %v4718_v46  ;;  %v541_v62 = vpop.f32.mrf.mxu1 }
  0xcc   : > { %1902 = vmatpush.bf16.msrb.mxu1 %v4469_v47  ;;  %1916 = vmatpush.bf16.msrb.mxu2 %v4481_v54  ;;  %v542_v9 = vadd.f32 %v541_v62, %v4720_v49 }
  0xcd   : > { %1930 = vmatpush.bf16.msrb.mxu3 %v4483_v60  ;;  %v4806_v27 = vpack.c.bf16 %v598_v13, %v569_v48 }
  0xce   : > { %v4809_v32 = vpack.c.bf16 %v542_v9, %v513_v5 }
  0xcf   : > { %6155 = vst [vmem:[#allocation60_spill] sm:$0xff] %v4806_v27  ;;  %1889 = vmatpush.bf16.msrb.mxu0 %v4505_v11  ;;  %v6160_v27 = vld [vmem:[#allocation40_spill] sm:$0xff] }
  0xd0   : > { %6156 = vst [vmem:[#allocation61_spill] sm:$0xff] %v4809_v32  ;;  %1903 = vmatpush.bf16.msrb.mxu1 %v4507_v12  ;;  %1917 = vmatpush.bf16.msrb.mxu2 %v4516_v18  ;;  %v6158_v32 = vld [vmem:[#allocation39_spill] sm:$0xff] }
  0xd1   : > { %1931 = vmatpush.bf16.msrb.mxu3 %v4520_v24  ;;  %v570_v63 = vpop.f32.mrf.mxu2 }
  0xd2   : > { %v571_v19 = vadd.f32 %v570_v63, %v4726_v0  ;;  %v599_v45 = vpop.f32.mrf.mxu3  ;;  %v515_v60 = vpop.f32.mrf.mxu0 }
  0xd3   : > { %1890 = vmatpush.bf16.msrb.mxu0 %v4543_v42  ;;  %v600_v9 = vadd.f32 %v599_v45, %v4728_v34  ;;  %v516_v48 = vadd.f32 %v515_v60, %v4718_v46  ;;  %v544_v13 = vpop.f32.mrf.mxu1  ;;  %v6163_v42 = vld [vmem:[#allocation43_spill] sm:$0xff] }
  0xd4   : > { %1904 = vmatpush.bf16.msrb.mxu1 %v4552_v51  ;;  %1918 = vmatpush.bf16.msrb.mxu2 %v4554_v52  ;;  %v545_v5 = vadd.f32 %v544_v13, %v4720_v49  ;;  %v6161_v51 = vld [vmem:[#allocation41_spill] sm:$0xff]  ;;  %v6162_v52 = vld [vmem:[#allocation42_spill] sm:$0xff]  ;;  %v6164_v13 = vld [vmem:[#allocation44_spill] sm:$0xff] }
  0xd5   : > { %1932 = vmatpush.bf16.msrb.mxu3 %v4557_v61  ;;  %v4822_v62 = vpack.c.bf16 %v600_v9, %v571_v19  ;;  %v6165_v19 = vld [vmem:[#allocation45_spill] sm:$0xff] }
  0xd6   : > { %v4825_v63 = vpack.c.bf16 %v545_v5, %v516_v48 }
  0xd7   : > { %6157 = vst [vmem:[#allocation62_spill] sm:$0xff] %v4822_v62  ;;  %1891 = vmatpush.bf16.msrb.mxu0 %v6158_v32 }
  0xd8   : > { %6159 = vst [vmem:[#allocation63_spill] sm:$0xff] %v4825_v63  ;;  %1905 = vmatpush.bf16.msrb.mxu1 %v6160_v27  ;;  %1919 = vmatpush.bf16.msrb.mxu2 %v6161_v51  ;;  %v6166_v63 = vld [vmem:[#allocation46_spill] sm:$0xff] }
  0xd9   : > { %1933 = vmatpush.bf16.msrb.mxu3 %v6162_v52  ;;  %v573_v45 = vpop.f32.mrf.mxu2 }
  0xda   : > { %v574_v60 = vadd.f32 %v573_v45, %v4726_v0  ;;  %v602_v61 = vpop.f32.mrf.mxu3  ;;  %v517_v24 = vpop.f32.mrf.mxu0 }
  0xdb   : > { %1892 = vmatpush.bf16.msrb.mxu0 %v6163_v42  ;;  %v603_v9 = vadd.f32 %v602_v61, %v4728_v34  ;;  %v518_v48 = vadd.f32 %v517_v24, %v4718_v46  ;;  %v546_v5 = vpop.f32.mrf.mxu1  ;;  %v651_v42 = vld [vmem:[%s5990_s7] sm:$0xf]  ;;  %v6169_v61 = vld [vmem:[#allocation50_spill] sm:$0xff] }
  0xdc   : > { %1906 = vmatpush.bf16.msrb.mxu1 %v6164_v13  ;;  %1920 = vmatpush.bf16.msrb.mxu2 %v6165_v19  ;;  %v547_v62 = vadd.f32 %v546_v5, %v4720_v49  ;;  %v4848_v24 = vperm.slane %v651_v42, 0  ;;  %v6170_v19 = vld [vmem:[#allocation51_spill] sm:$0xff]  ;;  %v4867_v51 = vperm.slane %v651_v42, 3 }
  0xdd   : > { %1934 = vmatpush.bf16.msrb.mxu3 %v6166_v63  ;;  %v4841_v45 = vpack.c.bf16 %v603_v9, %v574_v60  ;;  %v4851_v63 = vperm.slane %v651_v42, 1 }
  0xde   : > { %v4844_v13 = vpack.c.bf16 %v547_v62, %v518_v48  ;;  %v6172_v62 = vld [vmem:[#allocation53_spill] sm:$0xff] }
  0xdf   : > { %6167 = vst [vmem:[#allocation64_spill] sm:$0xff] %v4841_v45  ;;  %1893 = vmatpush.bf16.msrb.mxu0 %v4653_v4  ;;  %v6171_v4 = vld [vmem:[#allocation52_spill] sm:$0xff] }
  0xe0   : > { %6168 = vst [vmem:[#allocation65_spill] sm:$0xff] %v4844_v13  ;;  %1907 = vmatpush.bf16.msrb.mxu1 %v4664_v29  ;;  %1921 = vmatpush.bf16.msrb.mxu2 %v4666_v16  ;;  %v6173_v29 = vld [vmem:[#allocation54_spill] sm:$0xff] }
  0xe1   : > { %1935 = vmatpush.bf16.msrb.mxu3 %v6169_v61  ;;  %v575_v5 = vpop.f32.mrf.mxu2 }
  0xe2   : > { %v576_v60 = vadd.f32 %v575_v5, %v4726_v0  ;;  %v604_v9 = vpop.f32.mrf.mxu3  ;;  %v722_v45 = vpop.f32.mrf.mxu0  ;;  %v4865_v5 = vperm.slane %v651_v42, 2 }
  0xe3   : > { %1894 = vmatpush.bf16.msrb.mxu0 %v6170_v19  ;;  %v605_v48 = vadd.f32 %v604_v9, %v4728_v34  ;;  %v723_v13 = vadd.f32 %v722_v45, %v4848_v24  ;;  %v751_v16 = vpop.f32.mrf.mxu1 }
  0xe4   : > { %1908 = vmatpush.bf16.msrb.mxu1 %v6171_v4  ;;  %1922 = vmatpush.bf16.msrb.mxu2 %v6172_v62  ;;  %v752_v61 = vadd.f32 %v751_v16, %v4851_v63 }
  0xe5   : > { %1936 = vmatpush.bf16.msrb.mxu3 %v6173_v29  ;;  %v4861_v52 = vpack.c.bf16 %v605_v48, %v576_v60 }
  0xe6   : > { %v4863_v19 = vpack.c.bf16 %v752_v61, %v723_v13 }
  0xe7   : > { %6174 = vst [vmem:[#allocation66_spill] sm:$0xff] %v4861_v52 }
  0xe8   : > { %6175 = vst [vmem:[#allocation67_spill] sm:$0xff] %v4863_v19 }
  0xe9   : > { %v780_v4 = vpop.f32.mrf.mxu2 }
  0xea   : > { %v781_v62 = vadd.f32 %v780_v4, %v4865_v5  ;;  %v809_v27 = vpop.f32.mrf.mxu3  ;;  %v724_v9 = vpop.f32.mrf.mxu0 }
  0xeb   : > { %v810_v45 = vadd.f32 %v809_v27, %v4867_v51  ;;  %v725_v32 = vadd.f32 %v724_v9, %v4848_v24  ;;  %v753_v29 = vpop.f32.mrf.mxu1 }
  0xec   : > { %v754_v16 = vadd.f32 %v753_v29, %v4851_v63 }
  0xed   : > { %v4873_v60 = vpack.c.bf16 %v810_v45, %v781_v62 }
  0xee   : > { %v4875_v13 = vpack.c.bf16 %v754_v16, %v725_v32 }
  0xef   : > { %6176 = vst [vmem:[#allocation68_spill] sm:$0xff] %v4873_v60 }
  0xf0   : > { %6177 = vst [vmem:[#allocation69_spill] sm:$0xff] %v4875_v13 }
  0xf1   : > { %v782_v61 = vpop.f32.mrf.mxu2 }
  0xf2   : > { %v783_v42 = vadd.f32 %v782_v61, %v4865_v5  ;;  %v811_v48 = vpop.f32.mrf.mxu3  ;;  %v727_v19 = vpop.f32.mrf.mxu0 }
  0xf3   : > { %v812_v4 = vadd.f32 %v811_v48, %v4867_v51  ;;  %v728_v52 = vadd.f32 %v727_v19, %v4848_v24  ;;  %v756_v18 = vpop.f32.mrf.mxu1 }
  0xf4   : > { %v757_v27 = vadd.f32 %v756_v18, %v4851_v63 }
  0xf5   : > { %v4881_v9 = vpack.c.bf16 %v812_v4, %v783_v42 }
  0xf6   : > { %v4883_v12 = vpack.c.bf16 %v757_v27, %v728_v52 }
  0xf7   : > { %6178 = vst [vmem:[#allocation70_spill] sm:$0xff] %v4881_v9 }
  0xf8   : > { %6179 = vst [vmem:[#allocation71_spill] sm:$0xff] %v4883_v12 }
  0xf9   : > { %v785_v29 = vpop.f32.mrf.mxu2 }
  0xfa   : > { %v786_v32 = vadd.f32 %v785_v29, %v4865_v5  ;;  %v814_v62 = vpop.f32.mrf.mxu3  ;;  %v729_v45 = vpop.f32.mrf.mxu0 }
  0xfb   : > { %v815_v16 = vadd.f32 %v814_v62, %v4867_v51  ;;  %v730_v61 = vadd.f32 %v729_v45, %v4848_v24  ;;  %v758_v60 = vpop.f32.mrf.mxu1 }
  0xfc   : > { %v759_v48 = vadd.f32 %v758_v60, %v4851_v63 }
  0xfd   : > { %v4889_v19 = vpack.c.bf16 %v815_v16, %v786_v32 }
  0xfe   : > { %v4891_v13 = vpack.c.bf16 %v759_v48, %v730_v61 }
  0xff   : > { %6180 = vst [vmem:[#allocation72_spill] sm:$0xff] %v4889_v19 }
 0x100   : > { %6181 = vst [vmem:[#allocation73_spill] sm:$0xff] %v4891_v13 }
 0x101   : > { %v787_v18 = vpop.f32.mrf.mxu2 }
 0x102   : > { %v788_v52 = vadd.f32 %v787_v18, %v4865_v5  ;;  %v816_v42 = vpop.f32.mrf.mxu3  ;;  %v732_v4 = vpop.f32.mrf.mxu0 }
 0x103   : > { %v817_v27 = vadd.f32 %v816_v42, %v4867_v51  ;;  %v733_v29 = vadd.f32 %v732_v4, %v4848_v24  ;;  %v761_v9 = vpop.f32.mrf.mxu1 }
 0x104   : > { %v762_v62 = vadd.f32 %v761_v9, %v4851_v63 }
 0x105   : > { %v4897_v45 = vpack.c.bf16 %v817_v27, %v788_v52 }
 0x106   : > { %v4899_v12 = vpack.c.bf16 %v762_v62, %v733_v29 }
 0x107   : > { %6182 = vst [vmem:[#allocation74_spill] sm:$0xff] %v4897_v45 }
 0x108   : > { %6183 = vst [vmem:[#allocation75_spill] sm:$0xff] %v4899_v12 }
 0x109   : > { %v790_v60 = vpop.f32.mrf.mxu2 }
 0x10a   : > { %v791_v32 = vadd.f32 %v790_v60, %v4865_v5  ;;  %v819_v16 = vpop.f32.mrf.mxu3  ;;  %v734_v61 = vpop.f32.mrf.mxu0 }
 0x10b   : > { %v820_v48 = vadd.f32 %v819_v16, %v4867_v51  ;;  %v735_v18 = vadd.f32 %v734_v61, %v4848_v24  ;;  %v763_v19 = vpop.f32.mrf.mxu1 }
 0x10c   : > { %v764_v42 = vadd.f32 %v763_v19, %v4851_v63  ;;  %v503_v19 = vadd.f32 %v4735_v33, %v4718_v46  ;;  %v561_v46 = vadd.f32 %v4749_v41, %v4726_v0  ;;  %v942_v33 = vunpack.c.l.bf16 %v4743_v25 }
 0x10d   : > { %v4905_v4 = vpack.c.bf16 %v820_v48, %v791_v32  ;;  %v532_v32 = vadd.f32 %v4738_v6, %v4720_v49  ;;  %v590_v49 = vadd.f32 %v4752_v44, %v4728_v34 }
 0x10e   : > { %v4907_v13 = vpack.c.bf16 %v764_v42, %v735_v18  ;;  %v940_v18 = vunpack.c.l.bf16 %v4724_v14 }
 0x10f   : > { %6184 = vst [vmem:[#allocation76_spill] sm:$0xff] %v4905_v4 }
 0x110   : > { %6185 = vst [vmem:[#allocation77_spill] sm:$0xff] %v4907_v13 }
 0x111   : > { %v792_v9 = vpop.f32.mrf.mxu2 }
 0x112   : > { %v793_v52 = vadd.f32 %v792_v9, %v4865_v5  ;;  %v821_v27 = vpop.f32.mrf.mxu3  ;;  %v737_v29 = vpop.f32.mrf.mxu0  ;;  %v941_v9 = vunpack.c.h.bf16 %v4724_v14 }
 0x113   : > { %v822_v62 = vadd.f32 %v821_v27, %v4867_v51  ;;  %v766_v60 = vpop.f32.mrf.mxu1  ;;  %v738_v14 = vadd.f32 %v737_v29, %v4848_v24 }
 0x114   : > { %v767_v6 = vadd.f32 %v766_v60, %v4851_v63 }
 0x115   : > { %v4911_v45 = vpack.c.bf16 %v822_v62, %v793_v52 }
 0x116   : > { %v841_v44 = vpack.c.bf16 %v767_v6, %v738_v14 }
 0x117   : > { %6186 = vst [vmem:[#allocation78_spill] sm:$0xff] %v4911_v45  ;;  %v609_v45 = vpack.c.bf16 %v532_v32, %v503_v19 }
 0x118   : > { %v1306_v6 = vunpack.c.l.bf16 %v841_v44 }
 0x119   : > { %v795_v16 = vpop.f32.mrf.mxu2  ;;  %v944_v19 = vunpack.c.l.bf16 %v609_v45 }
 0x11a   : > { %v739_v12 = vpop.f32.mrf.mxu0  ;;  %v824_v11 = vpop.f32.mrf.mxu3 }
 0x11b   : > { %v768_v61 = vpop.f32.mrf.mxu1  ;;  %v825_v29 = vadd.f32 %v824_v11, %v4867_v51  ;;  %v943_v11 = vunpack.c.h.bf16 %v4743_v25 }
 0x121   : > { %v4917_v48 = vpop.f32.mrf.mxu2 }
 0x122   : > { %v1118_v42 = vpop.f32.mrf.mxu0  ;;  %v4921_v4 = vpop.f32.mrf.mxu3 }
 0x123   : > { %v1165_v27 = vadd.f32 %v1118_v42, %v940_v18  ;;  %v1132_v52 = vpop.f32.mrf.mxu1 }
 0x124   : > { %v1166_v62 = vadd.f32 %v1132_v52, %v941_v9  ;;  %v945_v9 = vunpack.c.h.bf16 %v609_v45  ;;  %v4930_v52 = vpack.c.bf16 %v590_v49, %v561_v46  ;;  %v740_v45 = vadd.f32 %v739_v12, %v4848_v24 }
 0x125   : > { %v3354_v13 = vmul.f32 -1.442695, %v1165_v27  ;;  %v1307_v12 = vunpack.c.h.bf16 %v841_v44 }
 0x126   : > { %v3355_v54 = vmul.f32 -1.442695, %v1166_v62  ;;  %v947_v25 = vunpack.c.h.bf16 %v4930_v52 }
 0x127   : > { %3702 = vpow2.f32 %v3354_v13 }
 0x128   : > { %3704 = vpow2.f32 %v3355_v54  ;;  %v796_v54 = vadd.f32 %v795_v16, %v4865_v5  ;;  %v946_v16 = vunpack.c.l.bf16 %v4930_v52 }
 0x129   : > { %v1146_v18 = vpop.f32.mrf.mxu2 }
 0x12a   : > { %v1167_v32 = vadd.f32 %v1146_v18, %v942_v33  ;;  %v1120_v42 = vpop.f32.mrf.mxu0  ;;  %v769_v18 = vadd.f32 %v768_v61, %v4851_v63  ;;  %v1160_v49 = vpop.f32.mrf.mxu3  ;;  %v4944_v24 = vpack.c.bf16 %v825_v29, %v796_v54 }
 0x12b   : > { %v1169_v27 = vadd.f32 %v1120_v42, %v944_v19  ;;  %v1134_v13 = vpop.f32.mrf.mxu1  ;;  %v1168_v63 = vadd.f32 %v1160_v49, %v943_v11 }
 0x12c   : > { %v3356_v0 = vmul.f32 -1.442695, %v1167_v32  ;;  %v1170_v41 = vadd.f32 %v1134_v13, %v945_v9  ;;  %v1308_v54 = vunpack.c.l.bf16 %v4944_v24 }
 0x12d   : > { %v3703_v62 = vpop.eup %3702  ;;  %v3357_v34 = vmul.f32 -1.442695, %v1169_v27 }
 0x12e   : > { %v3705_v47 = vpop.eup %3704  ;;  %v4934_v60 = vadd.f32 1.0, %v3703_v62  ;;  %3706 = vpow2.f32 %v3356_v0  ;;  %v3358_v33 = vmul.f32 -1.442695, %v1170_v41 }
 0x12f   : > { %v4938_v46 = vadd.f32 1.0, %v3705_v47  ;;  %3708 = vpow2.f32 %v3357_v34  ;;  %v4946_v47 = vpack.c.bf16 %v769_v18, %v740_v45  ;;  %v4956_v18 = vadd.f32 %v4917_v48, %v4865_v5 }
 0x130   : > { %3710 = vrcp.f32 %v4934_v60  ;;  %v1208_v11 = vand.u32 2147483648, %v4934_v60  ;;  %vm1202_vm3 = vweird.f32 %v4934_v60 }
 0x131   : > { %3712 = vrcp.f32 %v4938_v46  ;;  %v1148_v14 = vpop.f32.mrf.mxu2  ;;  %vm1217_vm4 = vweird.f32 %v4938_v46 }
 0x132   : > { %3714 = vpow2.f32 %v3358_v33  ;;  %v1171_v19 = vadd.f32 %v1148_v14, %v946_v16  ;;  %v1484_v32 = vpop.f32.mrf.mxu0  ;;  %v1206_v16 = vand.u32 2147483647, %v4934_v60 }
 0x133   : > { %v1531_v61 = vadd.f32 %v1484_v32, %v1306_v6  ;;  %v1498_v42 = vpop.f32.mrf.mxu1  ;;  %v1223_v32 = vand.u32 2147483648, %v4938_v46 }
 0x134   : > { %v3707_v9 = vpop.eup %3706  ;;  %v3359_v27 = vmul.f32 -1.442695, %v1171_v19  ;;  %v1532_v0 = vadd.f32 %v1498_v42, %v1307_v12  ;;  %v1221_v12 = vand.u32 2147483647, %v4938_v46  ;;  %vm1207_vm6 = vcmp.eq.f32.partialorder %v1206_v16, 8.507059e+37 }
 0x135   : > { %v3709_v13 = vpop.eup %3708  ;;  %v3488_v34 = vmul.f32 -1.442695, %v1531_v61  ;;  %v4966_v5 = vadd.f32 1.0, %v3707_v9  ;;  %v827_v61 = vadd.f32 %v4921_v4, %v4867_v51  ;;  %v1162_v9 = vpop.f32.mrf.mxu3  ;;  %v927_v51 = vld [vmem:[#allocation5 + $0x8] sm:$0xff] }
 0x136   : > { %v3711_v41 = vpop.eup %3710  ;;  %v4948_v62 = vadd.f32 1.0, %v3709_v13  ;;  %3716 = vpow2.f32 %v3359_v27  ;;  %v3489_v6 = vmul.f32 -1.442695, %v1532_v0  ;;  %vm1222_vm8 = vcmp.eq.f32.partialorder %v1221_v12, 8.507059e+37 }
 0x137   : > { %v3713_v33 = vpop.eup %3712  ;;  %v1198_v44 = vmul.f32 %v3711_v41, %v4934_v60  ;;  %3718 = vtanh.f32 %v1168_v63  ;;  %vm1203_vm1 = vweird.f32 %v3711_v41 }
 0x138   : > { %v3715_v45 = vpop.eup %3714  ;;  %v1213_v49 = vmul.f32 %v3713_v33, %v4938_v46  ;;  %3720 = vrcp.f32 %v4948_v62  ;;  %vm1218_vm2 = vweird.f32 %v3713_v33  ;;  %vm1204_vm5 = vmor %vm1202_vm3, %vm1203_vm1  ;;  %vm1247_vm10 = vweird.f32 %v4948_v62 }
 0x139   : > { %v1199_v52 = vsub.f32 1.0, %v1198_v44  ;;  %v4962_v14 = vadd.f32 1.0, %v3715_v45  ;;  %3722 = vpow2.f32 %v3488_v34  ;;  %v1224_v44 = vor.u32 1.1754944e-38, %v1223_v32  ;;  %vm1219_vm7 = vmor %vm1217_vm4, %vm1218_vm2  ;;  %v1512_v46 = vpop.f32.mrf.mxu2 }
 0x13a   : > { %v1214_v19 = vsub.f32 1.0, %v1213_v49  ;;  %v1209_v45 = vor.u32 1.1754944e-38, %v1208_v11  ;;  %v1533_v12 = vadd.f32 %v1512_v46, %v1308_v54  ;;  %v1486_v46 = vpop.f32.mrf.mxu0  ;;  %vm1232_vm1 = vweird.f32 %v4966_v5 }
 0x13b   : > { %v1200_v48 = vmul.f32 %v3711_v41, %v1199_v52  ;;  %3724 = vrcp.f32 %v4962_v14  ;;  %v1268_v37 = vand.u32 2147483648, %v4962_v14  ;;  %vm1262_vm13 = vweird.f32 %v4962_v14 }
 0x13c   : > { %v3717_v63 = vpop.eup %3716  ;;  %v1215_v42 = vmul.f32 %v3713_v33, %v1214_v19  ;;  %3726 = vpow2.f32 %v3489_v6  ;;  %v1172_v6 = vadd.f32 %v1162_v9, %v947_v25 }
 0x13d   : > { %v3719_v27 = vpop.eup %3718  ;;  %v1201_v13 = vadd.f32 %v3711_v41, %v1200_v48  ;;  %v4973_v0 = vadd.f32 1.0, %v3717_v63  ;;  %3728 = vrcp.f32 %v4966_v5 }
 0x13e   : > { %v3721_v34 = vpop.eup %3720  ;;  %v1216_v49 = vadd.f32 %v3713_v33, %v1215_v42 }
 0x13f   : > { %v1205_v4 = vsel %vm1204_vm5, %v3711_v41, %v1201_v13  ;;  %v1243_v60 = vmul.f32 %v3721_v34, %v4948_v62  ;;  %v3723_v52 = vpop.eup %3722  ;;  %3730 = vrcp.f32 %v4973_v0  ;;  %v1251_v41 = vand.u32 2147483647, %v4948_v62 }
 0x140   : > { %v1210_v19 = vsel %vm1207_vm6, %v1209_v45, %v1205_v4  ;;  %v1220_v48 = vsel %vm1219_vm7, %v3713_v33, %v1216_v49  ;;  %v4979_v42 = vadd.f32 1.0, %v3723_v52  ;;  %vm1248_vm9 = vweird.f32 %v3721_v34 }
 0x141   : > { %v3725_v32 = vpop.eup %3724  ;;  %v1225_v63 = vsel %vm1222_vm8, %v1224_v44, %v1220_v48  ;;  %v1291_v16 = vmul.f32 %v3719_v27, %v1210_v19  ;;  %v1244_v11 = vsub.f32 1.0, %v1243_v60  ;;  %v1253_v33 = vand.u32 2147483648, %v4948_v62  ;;  %vm4998_vm12 = vmor %vm1247_vm10, %vm1248_vm9 }
 0x142   : > { %v1289_v29 = vmul.f32 %v1225_v63, %v927_v51  ;;  %v1258_v39 = vmul.f32 %v3725_v32, %v4962_v14  ;;  %v3727_v13 = vpop.eup %3726  ;;  %3732 = vrcp.f32 %v4979_v42  ;;  %v4993_v49 = vpack.c.bf16 %v827_v61, %v4956_v18  ;;  %v928_v63 = vld [vmem:[#allocation5] sm:$0xff] }
 0x143   : > { %v1245_v45 = vmul.f32 %v3721_v34, %v1244_v11  ;;  %v4988_v27 = vadd.f32 1.0, %v3727_v13  ;;  %v4990_v44 = vpop.eup %3728  ;;  %3734 = vtanh.f32 %v1172_v6  ;;  %vm1263_vm11 = vweird.f32 %v3725_v32  ;;  %v1514_v13 = vpop.f32.mrf.mxu2 }
 0x144   : > { %v4985_v25 = vadd.f32 %v1291_v16, %v1289_v29  ;;  %v1259_v9 = vsub.f32 1.0, %v1258_v39  ;;  %v1266_v39 = vand.u32 2147483647, %v4962_v14  ;;  %v3490_v60 = vmul.f32 -1.442695, %v1533_v12  ;;  %vm1264_vm15 = vmor %vm1262_vm13, %vm1263_vm11  ;;  %v1500_v12 = vpop.f32.mrf.mxu1 }
 0x145   : > { %v1246_v54 = vadd.f32 %v3721_v34, %v1245_v45  ;;  %v4996_v51 = vpop.eup %3730  ;;  %v1254_v61 = vor.u32 1.1754944e-38, %v1253_v33  ;;  %3736 = vrcp.f32 %v4988_v27  ;;  %v1311_v62 = vunpack.c.h.bf16 %v4946_v47 }
 0x146   : > { %v1260_v4 = vmul.f32 %v3725_v32, %v1259_v9  ;;  %v1269_v52 = vor.u32 1.1754944e-38, %v1268_v37  ;;  %vm1252_vm14 = vcmp.eq.f32.partialorder %v1251_v41, 8.507059e+37  ;;  %v1228_v48 = vmul.f32 %v4990_v44, %v4966_v5 }
 0x147   : > { %v1250_v18 = vsel %vm4998_vm12, %v3721_v34, %v1246_v54  ;;  %v1273_v6 = vmul.f32 %v4996_v51, %v4973_v0  ;;  %v6189_v34 = vunpack.c.l.bf16 %v4946_v47  ;;  %vm1267_vm0 = vcmp.eq.f32.partialorder %v1266_v39, 8.507059e+37 }
 0x148   : > { %v1261_v19 = vadd.f32 %v3725_v32, %v1260_v4  ;;  %v1255_v16 = vsel %vm1252_vm14, %v1254_v61, %v1250_v18  ;;  %v5014_v45 = vpop.eup %3732  ;;  %3738 = vpow2.f32 %v3490_v60  ;;  %v1312_v37 = vunpack.c.l.bf16 %v4993_v49 }
 0x149   : > { %v1535_v11 = vadd.f32 %v1486_v46, %v6189_v34  ;;  %v3735_v41 = vpop.eup %3734  ;;  %v1536_v29 = vadd.f32 %v1500_v12, %v1311_v62  ;;  %v1229_v47 = vsub.f32 1.0, %v1228_v48  ;;  %v1274_v46 = vsub.f32 1.0, %v1273_v6  ;;  %v1526_v6 = vpop.f32.mrf.mxu3 }
 0x14a   : > { %v1265_v14 = vsel %vm1264_vm15, %v3725_v32, %v1261_v19  ;;  %v1292_v4 = vmul.f32 %v3735_v41, %v1255_v16  ;;  %v1537_v28 = vadd.f32 %v1514_v13, %v1312_v37  ;;  %v1564_v61 = vmul.f32 %v5014_v45, %v4979_v42 }
 0x14b   : > { %v1270_v33 = vsel %vm1267_vm0, %v1269_v52, %v1265_v14  ;;  %v3491_v9 = vmul.f32 -1.442695, %v1535_v11  ;;  %v5017_v18 = vpop.eup %3736  ;;  %v3492_v39 = vmul.f32 -1.442695, %v1536_v29  ;;  %v1230_v62 = vmul.f32 %v4990_v44, %v1229_v47 }
 0x14c   : > { %v1290_v54 = vmul.f32 %v1270_v33, %v928_v63  ;;  %v1579_v32 = vmul.f32 %v5017_v18, %v4988_v27  ;;  %v3493_v60 = vmul.f32 -1.442695, %v1537_v28  ;;  %v1309_v63 = vunpack.c.h.bf16 %v4944_v24 }
 0x14d   : > { %3740 = vpow2.f32 %v3491_v9  ;;  %v1275_v16 = vmul.f32 %v4996_v51, %v1274_v46  ;;  %v1565_v48 = vsub.f32 1.0, %v1564_v61  ;;  %v1313_v11 = vunpack.c.h.bf16 %v4993_v49 }
 0x14e   : > { %v3739_v19 = vpop.eup %3738  ;;  %v5023_v52 = vadd.f32 %v1292_v4, %v1290_v54  ;;  %3742 = vpow2.f32 %v3492_v39  ;;  %v1580_v34 = vsub.f32 1.0, %v1579_v32  ;;  %vm1277_vm2 = vweird.f32 %v4973_v0 }
 0x14f   : > { %3744 = vpow2.f32 %v3493_v60  ;;  %v5032_v28 = vadd.f32 1.0, %v3739_v19  ;;  %v1236_v24 = vand.u32 2147483647, %v4966_v5  ;;  %v1534_v12 = vadd.f32 %v1526_v6, %v1309_v63 }
 0x150   : > { %3746 = vtanh.f32 %v4985_v25  ;;  %vm1568_vm3 = vweird.f32 %v4979_v42  ;;  %vm1233_vm4 = vweird.f32 %v4990_v44  ;;  %v1566_v14 = vmul.f32 %v5014_v45, %v1565_v48 }
 0x151   : > { %3748 = vtanh.f32 %v5023_v52  ;;  %v1231_v49 = vadd.f32 %v4990_v44, %v1230_v62  ;;  %v1276_v37 = vadd.f32 %v4996_v51, %v1275_v16  ;;  %vm1278_vm5 = vweird.f32 %v4996_v51  ;;  %vm5052_vm6 = vmor %vm1232_vm1, %vm1233_vm4 }
 0x152   : > { %v1581_v41 = vmul.f32 %v5017_v18, %v1580_v34  ;;  %v1238_v9 = vand.u32 2147483648, %v4966_v5  ;;  %v1283_v54 = vand.u32 2147483648, %v4973_v0  ;;  %3750 = vrcp.f32 %v5032_v28  ;;  %vm5066_vm9 = vmor %vm1277_vm2, %vm1278_vm5 }
 0x153   : > { %v3741_v13 = vpop.eup %3740  ;;  %v1572_v29 = vand.u32 2147483647, %v4979_v42  ;;  %v1574_v47 = vand.u32 2147483648, %v4979_v42  ;;  %v1281_v61 = vand.u32 2147483647, %v4973_v0  ;;  %vm1584_vm7 = vweird.f32 %v5017_v18 }
 0x154   : > { %v5043_v33 = vadd.f32 1.0, %v3741_v13  ;;  %v3743_v4 = vpop.eup %3742  ;;  %vm1569_vm8 = vweird.f32 %v5014_v45  ;;  %v1567_v19 = vadd.f32 %v5014_v45, %v1566_v14  ;;  %v1235_v62 = vsel %vm5052_vm6, %v4990_v44, %v1231_v49  ;;  %v1528_v14 = vpop.f32.mrf.mxu3 }
 0x155   : > { %v3745_v32 = vpop.eup %3744  ;;  %v5060_v39 = vadd.f32 1.0, %v3743_v4  ;;  %v1280_v16 = vsel %vm5066_vm9, %v4996_v51, %v1276_v37  ;;  %v1582_v0 = vadd.f32 %v5017_v18, %v1581_v41  ;;  %v1239_v6 = vor.u32 1.1754944e-38, %v1238_v9  ;;  %vm5088_vm13 = vmor %vm1568_vm3, %vm1569_vm8 }
 0x156   : > { %3752 = vrcp.f32 %v5043_v33  ;;  %v3747_v60 = vpop.eup %3746  ;;  %v5071_v63 = vadd.f32 1.0, %v3745_v32  ;;  %v1284_v34 = vor.u32 1.1754944e-38, %v1283_v54  ;;  %v1589_v13 = vand.u32 2147483648, %v4988_v27 }
 0x157   : > { %v3749_v48 = vpop.eup %3748  ;;  %3754 = vrcp.f32 %v5060_v39  ;;  %vm1237_vm10 = vcmp.eq.f32.partialorder %v1236_v24, 8.507059e+37  ;;  %vm1282_vm11 = vcmp.eq.f32.partialorder %v1281_v61, 8.507059e+37  ;;  %vm1583_vm12 = vweird.f32 %v4988_v27 }
 0x158   : > { %3756 = vrcp.f32 %v5071_v63  ;;  %v1587_v51 = vand.u32 2147483647, %v4988_v27  ;;  %v1240_v49 = vsel %vm1237_vm10, %v1239_v6, %v1235_v62  ;;  %v1285_v37 = vsel %vm1282_vm11, %v1284_v34, %v1280_v16  ;;  %v5093_v41 = vpop.eup %3750  ;;  %vm5097_vm14 = vmor %vm1583_vm12, %vm1584_vm7 }
 0x159   : > { %3758 = vtanh.f32 %v1534_v12  ;;  %v1297_v9 = vmul.f32 %v3747_v60, %v1240_v49  ;;  %v1298_v54 = vmul.f32 %v3749_v48, %v1285_v37  ;;  %v1571_v4 = vsel %vm5088_vm13, %v5014_v45, %v1567_v19  ;;  %v931_v60 = vld [vmem:[#allocation7] sm:$0xff] }
 0x15a   : > { %v1586_v27 = vsel %vm5097_vm14, %v5017_v18, %v1582_v0  ;;  %v1538_v46 = vadd.f32 %v1528_v14, %v1313_v11  ;;  %v1590_v61 = vor.u32 1.1754944e-38, %v1589_v13  ;;  %v1575_v32 = vor.u32 1.1754944e-38, %v1574_v47  ;;  %v6198_v49 = vld [vmem:[#allocation10_spill] sm:$0xff] }
 0x15b   : > { %v1680_v62 = vpack.c.bf16 %v1298_v54, %v1297_v9  ;;  %vm1573_vm15 = vcmp.eq.f32.partialorder %v1572_v29, 8.507059e+37  ;;  %vm1588_vm0 = vcmp.eq.f32.partialorder %v1587_v51, 8.507059e+37  ;;  %v1594_v18 = vmul.f32 %v5093_v41, %v5032_v28 }
 0x15c   : > { %v3753_v42 = vpop.eup %3752  ;;  %v1576_v48 = vsel %vm1573_vm15, %v1575_v32, %v1571_v4  ;;  %v1591_v6 = vsel %vm1588_vm0, %v1590_v61, %v1586_v27  ;;  %v1619_v47 = vand.u32 2147483648, %v5043_v33  ;;  %3760 = vtanh.f32 %v1538_v46 }
 0x15d   : > { %v1609_v5 = vmul.f32 %v3753_v42, %v5043_v33  ;;  %v3755_v16 = vpop.eup %3754  ;;  %1689 = vmatmul.bf16.vlgmr.msra.gmra.mxu0 %v1680_v62  ;;  %1703 = vmatmul.bf16.vlgmr.msra.gmra.mxu1 %v1680_v62  ;;  %vm1614_vm1 = vweird.f32 %v3753_v42  ;;  %v1617_v13 = vand.u32 2147483647, %v5043_v33  ;;  %v1655_v14 = vmul.f32 %v1591_v6, %v931_v60  ;;  %v6201_v6 = vld [vmem:[#allocation11_spill] sm:$0xff] }
 0x15e   : > { %v5108_v12 = vpop.eup %3756  ;;  %v1624_v45 = vmul.f32 %v3755_v16, %v5060_v39  ;;  %1717 = vmatmul.bf16.vlgmr.msra.gmra.mxu2 %v1680_v62  ;;  %1731 = vmatmul.bf16.vlgmr.msra.gmra.mxu3 %v1680_v62  ;;  %v1634_v51 = vand.u32 2147483648, %v5060_v39  ;;  %vm1613_vm2 = vweird.f32 %v5043_v33  ;;  %vm1629_vm3 = vweird.f32 %v3755_v16  ;;  %v6199_v33 = vld [vmem:[#allocation8_spill] sm:$0xff]  ;;  %v932_v62 = vld [vmem:[#allocation7 + $0x8] sm:$0xff] }
 0x15f   : > { %v1610_v34 = vsub.f32 1.0, %v1609_v5  ;;  %v1639_v11 = vmul.f32 %v5108_v12, %v5071_v63  ;;  %v3759_v29 = vpop.eup %3758  ;;  %2092 = vmatpush.bf16.msra.mxu0 %v4123_v31  ;;  %2106 = vmatpush.bf16.msra.mxu1 %v4134_v35  ;;  %v1632_v9 = vand.u32 2147483647, %v5060_v39  ;;  %v1595_v54 = vsub.f32 1.0, %v1594_v18  ;;  %vm1615_vm4 = vmor %vm1613_vm2, %vm1614_vm1 }
 0x160   : > { %v1625_v19 = vsub.f32 1.0, %v1624_v45  ;;  %v1657_v44 = vmul.f32 %v3759_v29, %v1576_v48  ;;  %2120 = vmatpush.bf16.msra.mxu2 %v4136_v36  ;;  %2134 = vmatpush.bf16.msra.mxu3 %v6198_v49  ;;  %v1620_v27 = vor.u32 1.1754944e-38, %v1619_v47  ;;  %vm1628_vm5 = vweird.f32 %v5060_v39  ;;  %v6200_v48 = vld [vmem:[#allocation9_spill] sm:$0xff] }
 0x161   : > { %v1611_v0 = vmul.f32 %v3753_v42, %v1610_v34  ;;  %v1640_v4 = vsub.f32 1.0, %v1639_v11  ;;  %vm1618_vm6 = vcmp.eq.f32.partialorder %v1617_v13, 8.507059e+37  ;;  %vm1630_vm7 = vmor %vm1628_vm5, %vm1629_vm3  ;;  %v1635_v5 = vor.u32 1.1754944e-38, %v1634_v51 }
 0x162   : > { %v1626_v37 = vmul.f32 %v3755_v16, %v1625_v19  ;;  %v3761_v32 = vpop.eup %3760  ;;  %v5130_v34 = vadd.f32 %v1657_v44, %v1655_v14  ;;  %vm1633_vm8 = vcmp.eq.f32.partialorder %v1632_v9, 8.507059e+37  ;;  %vm1599_vm9 = vweird.f32 %v5093_v41  ;;  %v6219_v14 = vld [vmem:[#allocation37_spill] sm:$0xff] }
 0x163   : > { %v1612_v24 = vadd.f32 %v3753_v42, %v1611_v0  ;;  %2093 = vmatpush.bf16.msra.mxu0 %v4148_v40  ;;  %2107 = vmatpush.bf16.msra.mxu1 %v6199_v33  ;;  %v1641_v18 = vmul.f32 %v5108_v12, %v1640_v4  ;;  %vm1644_vm10 = vweird.f32 %v5108_v12  ;;  %vm1598_vm11 = vweird.f32 %v5032_v28 }
 0x164   : > { %v1627_v61 = vadd.f32 %v3755_v16, %v1626_v37  ;;  %2121 = vmatpush.bf16.msra.mxu2 %v6200_v48  ;;  %2135 = vmatpush.bf16.msra.mxu3 %v6201_v6  ;;  %3762 = vtanh.f32 %v5130_v34  ;;  %v1604_v0 = vand.u32 2147483648, %v5032_v28  ;;  %v1649_v13 = vand.u32 2147483648, %v5071_v63  ;;  %vm5152_vm13 = vmor %vm1598_vm11, %vm1599_vm9  ;;  %v6204_v37 = vld [vmem:[#allocation12_spill] sm:$0xff] }
 0x165   : > { %v1616_v46 = vsel %vm1615_vm4, %v3753_v42, %v1612_v24  ;;  %v1596_v42 = vmul.f32 %v5093_v41, %v1595_v54  ;;  %v1642_v19 = vadd.f32 %v5108_v12, %v1641_v18  ;;  %vm1643_vm12 = vweird.f32 %v5071_v63  ;;  %v6205_v24 = vld [vmem:[#allocation13_spill] sm:$0xff]  ;;  %v6212_v18 = vld [vmem:[#allocation30_spill] sm:$0xff] }
 0x166   : > { %v1621_v60 = vsel %vm1618_vm6, %v1620_v27, %v1616_v46  ;;  %v1631_v45 = vsel %vm1630_vm7, %v3755_v16, %v1627_v61  ;;  %v1602_v44 = vand.u32 2147483647, %v5032_v28  ;;  %v1647_v51 = vand.u32 2147483647, %v5071_v63  ;;  %vm1645_vm14 = vmor %vm1643_vm12, %vm1644_vm10 }
 0x167   : > { %v1658_v39 = vmul.f32 %v3761_v32, %v1621_v60  ;;  %v1636_v11 = vsel %vm1633_vm8, %v1635_v5, %v1631_v45  ;;  %2094 = vmatpush.bf16.msra.mxu0 %v4191_v53  ;;  %2108 = vmatpush.bf16.msra.mxu1 %v4202_v57  ;;  %v1597_v16 = vadd.f32 %v5093_v41, %v1596_v42  ;;  %v1605_v27 = vor.u32 1.1754944e-38, %v1604_v0  ;;  %v6208_v60 = vld [vmem:[#allocation26_spill] sm:$0xff]  ;;  %v6209_v45 = vld [vmem:[#allocation27_spill] sm:$0xff]  ;;  %v6211_v42 = vld [vmem:[#allocation29_spill] sm:$0xff] }
 0x168   : > { %v1656_v47 = vmul.f32 %v1636_v11, %v932_v62  ;;  %2122 = vmatpush.bf16.msra.mxu2 %v4204_v58  ;;  %2136 = vmatpush.bf16.msra.mxu3 %v4243_v7  ;;  %v1646_v54 = vsel %vm1645_vm14, %v5108_v12, %v1642_v19  ;;  %v1650_v46 = vor.u32 1.1754944e-38, %v1649_v13  ;;  %vm1603_vm15 = vcmp.eq.f32.partialorder %v1602_v44, 8.507059e+37  ;;  %v6206_v12 = vld [vmem:[#allocation14_spill] sm:$0xff]  ;;  %v6207_v62 = vld [vmem:[#allocation25_spill] sm:$0xff]  ;;  %v6213_v11 = vld [vmem:[#allocation31_spill] sm:$0xff] }
 0x169   : > { %v1601_v9 = vsel %vm5152_vm13, %v5093_v41, %v1597_v16  ;;  %vm1648_vm0 = vcmp.eq.f32.partialorder %v1647_v51, 8.507059e+37  ;;  %v6215_v16 = vld [vmem:[#allocation33_spill] sm:$0xff]  ;;  %v6216_v19 = vld [vmem:[#allocation34_spill] sm:$0xff]  ;;  %v6217_v0 = vld [vmem:[#allocation35_spill] sm:$0xff] }
 0x16a   : > { %v5139_v29 = vadd.f32 %v1658_v39, %v1656_v47  ;;  %v3763_v4 = vpop.eup %3762  ;;  %v1606_v63 = vsel %vm1603_vm15, %v1605_v27, %v1601_v9  ;;  %v1651_v61 = vsel %vm1648_vm0, %v1650_v46, %v1646_v54  ;;  %v6210_v39 = vld [vmem:[#allocation28_spill] sm:$0xff]  ;;  %v6220_v44 = vld [vmem:[#allocation38_spill] sm:$0xff]  ;;  %v6221_v51 = vld [vmem:[#allocation39_spill] sm:$0xff] }
 0x16b   : > { %2095 = vmatpush.bf16.msra.mxu0 %v4229_v2  ;;  %2109 = vmatpush.bf16.msra.mxu1 %v4231_v3  ;;  %v1663_v32 = vmul.f32 %v3763_v4, %v1606_v63  ;;  %v6214_v47 = vld [vmem:[#allocation32_spill] sm:$0xff]  ;;  %v6223_v54 = vld [vmem:[#allocation41_spill] sm:$0xff]  ;;  %v6224_v4 = vld [vmem:[#allocation42_spill] sm:$0xff] }
 0x16c   : > { %3764 = vtanh.f32 %v5139_v29  ;;  %2123 = vmatpush.bf16.msra.mxu2 %v6204_v37  ;;  %2137 = vmatpush.bf16.msra.mxu3 %v6205_v24  ;;  %v6218_v13 = vld [vmem:[#allocation36_spill] sm:$0xff]  ;;  %v6225_v27 = vld [vmem:[#allocation43_spill] sm:$0xff]  ;;  %v6228_v63 = vld [vmem:[#allocation46_spill] sm:$0xff] }
 0x16d   : > { %v6222_v9 = vld [vmem:[#allocation40_spill] sm:$0xff] }
 0x16e   : > { %v6226_v46 = vld [vmem:[#allocation44_spill] sm:$0xff] }
 0x16f   : > { %2096 = vmatpush.bf16.msra.mxu0 %v4276_v17  ;;  %2110 = vmatpush.bf16.msra.mxu1 %v4288_v21 }
 0x170   : > { %2124 = vmatpush.bf16.msra.mxu2 %v4290_v22  ;;  %2138 = vmatpush.bf16.msra.mxu3 %v4302_v26 }
 0x172   : > { %v3765_v28 = vpop.eup %3764 }
 0x173   : > { %v1664_v41 = vmul.f32 %v3765_v28, %v1651_v61  ;;  %2097 = vmatpush.bf16.msra.mxu0 %v4315_v30  ;;  %2111 = vmatpush.bf16.msra.mxu1 %v6206_v12  ;;  %v6227_v28 = vld [vmem:[#allocation45_spill] sm:$0xff]  ;;  %v6229_v61 = vld [vmem:[#allocation47_spill] sm:$0xff] }
 0x174   : > { %2125 = vmatpush.bf16.msra.mxu2 %v4329_v38  ;;  %2139 = vmatpush.bf16.msra.mxu3 %v4340_v43 }
 0x175   : > { %v1886_v5 = vpack.c.bf16 %v1664_v41, %v1663_v32  ;;  %v6230_v32 = vld [vmem:[#allocation48_spill] sm:$0xff]  ;;  %v6231_v41 = vld [vmem:[#allocation49_spill] sm:$0xff] }
 0x177   : > { %1895 = vmatmul.bf16.vlgmr.msrb.gmra.mxu0 %v1886_v5  ;;  %1909 = vmatmul.bf16.vlgmr.msrb.gmra.mxu1 %v1886_v5 }
 0x178   : > { %1923 = vmatmul.bf16.vlgmr.msrb.gmra.mxu2 %v1886_v5  ;;  %1937 = vmatmul.bf16.vlgmr.msrb.gmra.mxu3 %v1886_v5  ;;  %v6232_v5 = vld [vmem:[#allocation50_spill] sm:$0xff] }
 0x179   : > { %2098 = vmatpush.bf16.msra.mxu0 %v4352_v50  ;;  %2112 = vmatpush.bf16.msra.mxu1 %v4365_v55 }
 0x17a   : > { %2126 = vmatpush.bf16.msra.mxu2 %v4367_v56  ;;  %2140 = vmatpush.bf16.msra.mxu3 %v4370_v59 }
 0x17d   : > { %2099 = vmatpush.bf16.msra.mxu0 %v4387_v1  ;;  %2113 = vmatpush.bf16.msra.mxu1 %v4400_v8 }
 0x17e   : > { %2127 = vmatpush.bf16.msra.mxu2 %v4402_v10  ;;  %2141 = vmatpush.bf16.msra.mxu3 %v4415_v15 }
 0x181   : > { %2297 = vmatpush.bf16.msrb.mxu0 %v4428_v20  ;;  %2311 = vmatpush.bf16.msrb.mxu1 %v4430_v23  ;;  %v6244_v23 = vld [vmem:[#allocation78_spill] sm:$0xff] }
 0x182   : > { %2325 = vmatpush.bf16.msrb.mxu2 %v6207_v62  ;;  %2339 = vmatpush.bf16.msrb.mxu3 %v6208_v60 }
 0x185   : > { %2298 = vmatpush.bf16.msrb.mxu0 %v6209_v45  ;;  %2312 = vmatpush.bf16.msrb.mxu1 %v6210_v39 }
 0x186   : > { %2326 = vmatpush.bf16.msrb.mxu2 %v6211_v42  ;;  %2340 = vmatpush.bf16.msrb.mxu3 %v6212_v18 }
 0x189   : > { %2299 = vmatpush.bf16.msrb.mxu0 %v6213_v11  ;;  %2313 = vmatpush.bf16.msrb.mxu1 %v6214_v47 }
 0x18a   : > { %2327 = vmatpush.bf16.msrb.mxu2 %v6215_v16  ;;  %2341 = vmatpush.bf16.msrb.mxu3 %v6216_v19 }
 0x18d   : > { %2300 = vmatpush.bf16.msrb.mxu0 %v6217_v0  ;;  %2314 = vmatpush.bf16.msrb.mxu1 %v6218_v13 }
 0x18e   : > { %2328 = vmatpush.bf16.msrb.mxu2 %v6219_v14  ;;  %2342 = vmatpush.bf16.msrb.mxu3 %v6220_v44 }
 0x191   : > { %2301 = vmatpush.bf16.msrb.mxu0 %v6221_v51  ;;  %2315 = vmatpush.bf16.msrb.mxu1 %v6222_v9  ;;  %v6233_v9 = vld [vmem:[#allocation51_spill] sm:$0xff] }
 0x192   : > { %2329 = vmatpush.bf16.msrb.mxu2 %v6223_v54  ;;  %2343 = vmatpush.bf16.msrb.mxu3 %v6224_v4  ;;  %v6234_v54 = vld [vmem:[#allocation52_spill] sm:$0xff]  ;;  %v6235_v4 = vld [vmem:[#allocation53_spill] sm:$0xff] }
 0x195   : > { %2302 = vmatpush.bf16.msrb.mxu0 %v6225_v27  ;;  %2316 = vmatpush.bf16.msrb.mxu1 %v6226_v46  ;;  %v6236_v27 = vld [vmem:[#allocation54_spill] sm:$0xff]  ;;  %v6237_v46 = vld [vmem:[#allocation55_spill] sm:$0xff] }
 0x196   : > { %2330 = vmatpush.bf16.msrb.mxu2 %v6227_v28  ;;  %2344 = vmatpush.bf16.msrb.mxu3 %v6228_v63  ;;  %v1672_v28 = vunpack.c.l.bf16 %v6237_v46  ;;  %v1673_v63 = vunpack.c.h.bf16 %v6237_v46 }
 0x199   : > { %2303 = vmatpush.bf16.msrb.mxu0 %v6229_v61  ;;  %2317 = vmatpush.bf16.msrb.mxu1 %v6230_v32 }
 0x19a   : > { %2331 = vmatpush.bf16.msrb.mxu2 %v6231_v41  ;;  %2345 = vmatpush.bf16.msrb.mxu3 %v6232_v5  ;;  %v6238_v5 = vld [vmem:[#allocation56_spill] sm:$0xff] }
 0x19d   : > { %2304 = vmatpush.bf16.msrb.mxu0 %v6233_v9  ;;  %2318 = vmatpush.bf16.msrb.mxu1 %v6234_v54  ;;  %v1674_v9 = vunpack.c.l.bf16 %v6238_v5  ;;  %v6239_v54 = vld [vmem:[#allocation57_spill] sm:$0xff] }
 0x19e   : > { %2332 = vmatpush.bf16.msrb.mxu2 %v6235_v4  ;;  %2346 = vmatpush.bf16.msrb.mxu3 %v6236_v27  ;;  %v1676_v0 = vunpack.c.l.bf16 %v6239_v54  ;;  %v1677_v4 = vunpack.c.h.bf16 %v6239_v54 }
 0x1da   : > { %v1690_v51 = vpop.f32.mrf.mxu0  ;;  %v1704_v61 = vpop.f32.mrf.mxu1 }
 0x1db   : > { %v1737_v44 = vadd.f32 %v1690_v51, %v1672_v28  ;;  %v1738_v32 = vadd.f32 %v1704_v61, %v1673_v63 }
 0x1dd   : > { %v3494_v14 = vmul.f32 -1.442695, %v1737_v44  ;;  %v3495_v41 = vmul.f32 -1.442695, %v1738_v32  ;;  %v6240_v32 = vld [vmem:[#allocation58_spill] sm:$0xff] }
 0x1df   : > { %3766 = vpow2.f32 %v3494_v14 }
 0x1e0   : > { %3768 = vpow2.f32 %v3495_v41  ;;  %v1678_v41 = vunpack.c.l.bf16 %v6240_v32 }
 0x1e1   : > { %v1718_v13 = vpop.f32.mrf.mxu2  ;;  %v1732_v61 = vpop.f32.mrf.mxu3 }
 0x1e2   : > { %v1739_v27 = vadd.f32 %v1718_v13, %v1674_v9  ;;  %v1692_v19 = vpop.f32.mrf.mxu0  ;;  %v1706_v16 = vpop.f32.mrf.mxu1 }
 0x1e3   : > { %v1741_v47 = vadd.f32 %v1692_v19, %v1676_v0  ;;  %v1742_v46 = vadd.f32 %v1706_v16, %v1677_v4  ;;  %v1675_v19 = vunpack.c.h.bf16 %v6238_v5 }
 0x1e4   : > { %v3496_v11 = vmul.f32 -1.442695, %v1739_v27  ;;  %v1679_v27 = vunpack.c.h.bf16 %v6240_v32 }
 0x1e5   : > { %v3767_v18 = vpop.eup %3766  ;;  %v3497_v51 = vmul.f32 -1.442695, %v1741_v47  ;;  %v3498_v14 = vmul.f32 -1.442695, %v1742_v46  ;;  %v1740_v47 = vadd.f32 %v1732_v61, %v1675_v19  ;;  %v6243_v19 = vld [vmem:[#allocation77_spill] sm:$0xff] }
 0x1e6   : > { %v3769_v28 = vpop.eup %3768  ;;  %v1763_v44 = vadd.f32 1.0, %v3767_v18  ;;  %3770 = vpow2.f32 %v3496_v11 }
 0x1e7   : > { %v5217_v63 = vadd.f32 1.0, %v3769_v28  ;;  %3772 = vpow2.f32 %v3497_v51  ;;  %v6241_v28 = vld [vmem:[#allocation75_spill] sm:$0xff] }
 0x1e8   : > { %3774 = vrcp.f32 %v1763_v44  ;;  %v1878_v42 = vunpack.c.l.bf16 %v6241_v28  ;;  %vm1774_vm4 = vweird.f32 %v1763_v44 }
 0x1e9   : > { %3776 = vrcp.f32 %v5217_v63  ;;  %v1720_v13 = vpop.f32.mrf.mxu2  ;;  %v1734_v39 = vpop.f32.mrf.mxu3  ;;  %v1795_v5 = vand.u32 2147483648, %v5217_v63  ;;  %vm1789_vm3 = vweird.f32 %v5217_v63 }
 0x1ea   : > { %3778 = vpow2.f32 %v3498_v14  ;;  %v1743_v16 = vadd.f32 %v1720_v13, %v1678_v41  ;;  %v6242_v14 = vld [vmem:[#allocation76_spill] sm:$0xff]  ;;  %v1780_v41 = vand.u32 2147483648, %v1763_v44  ;;  %v1744_v62 = vadd.f32 %v1734_v39, %v1679_v27 }
 0x1eb   : > { %v1796_v10 = vor.u32 1.1754944e-38, %v1795_v5 }
 0x1ec   : > { %v3771_v0 = vpop.eup %3770  ;;  %v3499_v9 = vmul.f32 -1.442695, %v1743_v16  ;;  %v1781_v8 = vor.u32 1.1754944e-38, %v1780_v41 }
 0x1ed   : > { %v3773_v18 = vpop.eup %3772  ;;  %v5222_v54 = vadd.f32 1.0, %v3771_v0 }
 0x1ee   : > { %v3775_v11 = vpop.eup %3774  ;;  %v5224_v4 = vadd.f32 1.0, %v3773_v18  ;;  %3780 = vpow2.f32 %v3499_v9  ;;  %v1778_v9 = vand.u32 2147483647, %v1763_v44 }
 0x1ef   : > { %v3777_v46 = vpop.eup %3776  ;;  %v1770_v51 = vmul.f32 %v3775_v11, %v1763_v44  ;;  %3782 = vtanh.f32 %v1740_v47  ;;  %vm1775_vm1 = vweird.f32 %v3775_v11  ;;  %v1793_v47 = vand.u32 2147483647, %v5217_v63 }
 0x1f0   : > { %v3779_v13 = vpop.eup %3778  ;;  %v1785_v61 = vmul.f32 %v3777_v46, %v5217_v63  ;;  %3784 = vrcp.f32 %v5224_v4  ;;  %vm1790_vm2 = vweird.f32 %v3777_v46  ;;  %vm1776_vm5 = vmor %vm1774_vm4, %vm1775_vm1  ;;  %vm1779_vm6 = vcmp.eq.f32.partialorder %v1778_v9, 8.507059e+37 }
 0x1f1   : > { %v1771_v18 = vsub.f32 1.0, %v1770_v51  ;;  %v5234_v32 = vadd.f32 1.0, %v3779_v13  ;;  %3786 = vrcp.f32 %v5222_v54  ;;  %vm1791_vm7 = vmor %vm1789_vm3, %vm1790_vm2  ;;  %vm1794_vm8 = vcmp.eq.f32.partialorder %v1793_v47, 8.507059e+37 }
 0x1f2   : > { %v1786_v45 = vsub.f32 1.0, %v1785_v61  ;;  %v1823_v39 = vand.u32 2147483647, %v5224_v4  ;;  %vm1819_vm9 = vweird.f32 %v5224_v4  ;;  %vm1804_vm2 = vweird.f32 %v5222_v54 }
 0x1f3   : > { %v1772_v60 = vmul.f32 %v3775_v11, %v1771_v18  ;;  %3788 = vrcp.f32 %v5234_v32  ;;  %vm1834_vm10 = vweird.f32 %v5234_v32 }
 0x1f4   : > { %v1896_v0 = vpop.f32.mrf.mxu0  ;;  %v3781_v51 = vpop.eup %3780  ;;  %v1787_v16 = vmul.f32 %v3777_v46, %v1786_v45  ;;  %vm5256_vm11 = vcmp.eq.f32.partialorder %v1823_v39, 8.507059e+37 }
 0x1f5   : > { %v1910_v13 = vpop.f32.mrf.mxu1  ;;  %v1773_v61 = vadd.f32 %v3775_v11, %v1772_v60  ;;  %v5242_v15 = vadd.f32 1.0, %v3781_v51  ;;  %v3783_v18 = vpop.eup %3782 }
 0x1f6   : > { %v1788_v1 = vadd.f32 %v3777_v46, %v1787_v16  ;;  %v3785_v59 = vpop.eup %3784  ;;  %v1943_v16 = vadd.f32 %v1896_v0, %v1878_v42 }
 0x1f7   : > { %v1777_v45 = vsel %vm1776_vm5, %v3775_v11, %v1773_v61  ;;  %3790 = vrcp.f32 %v5242_v15  ;;  %v5248_v60 = vpop.eup %3786  ;;  %v1815_v27 = vmul.f32 %v3785_v59, %v5224_v4  ;;  %v1840_v61 = vand.u32 2147483648, %v5234_v32 }
 0x1f8   : > { %v1782_v44 = vsel %vm1779_vm6, %v1781_v8, %v1777_v45  ;;  %v1792_v63 = vsel %vm1791_vm7, %v3777_v46, %v1788_v1  ;;  %3792 = vtanh.f32 %v1744_v62  ;;  %v1825_v8 = vand.u32 2147483648, %v5224_v4 }
 0x1f9   : > { %v3789_v5 = vpop.eup %3788  ;;  %v1797_v9 = vsel %vm1794_vm8, %v1796_v10, %v1792_v63  ;;  %v1863_v41 = vmul.f32 %v3783_v18, %v1782_v44  ;;  %v1816_v47 = vsub.f32 1.0, %v1815_v27  ;;  %v1838_v10 = vand.u32 2147483647, %v5234_v32 }
 0x1fa   : > { %v1861_v11 = vmul.f32 %v1797_v9, %v4985_v25  ;;  %v1830_v51 = vmul.f32 %v3789_v5, %v5234_v32  ;;  %v1800_v62 = vmul.f32 %v5248_v60, %v5222_v54  ;;  %vm1820_vm12 = vweird.f32 %v3785_v59 }
 0x1fb   : > { %v1924_v20 = vpop.f32.mrf.mxu2  ;;  %v1817_v46 = vmul.f32 %v3785_v59, %v1816_v47  ;;  %v3500_v18 = vmul.f32 -1.442695, %v1943_v16  ;;  %v6247_v45 = vunpack.c.h.bf16 %v6241_v28  ;;  %v6248_v44 = vunpack.c.l.bf16 %v6242_v14  ;;  %vm1821_vm14 = vmor %vm1819_vm9, %vm1820_vm12 }
 0x1fc   : > { %v5264_v25 = vadd.f32 %v1863_v41, %v1861_v11  ;;  %v1831_v42 = vsub.f32 1.0, %v1830_v51  ;;  %v1898_v27 = vpop.f32.mrf.mxu0  ;;  %vm1835_vm13 = vweird.f32 %v3789_v5  ;;  %v1841_v55 = vor.u32 1.1754944e-38, %v1840_v61 }
 0x1fd   : > { %v5266_v0 = vpop.eup %3790  ;;  %v1944_v39 = vadd.f32 %v1910_v13, %v6247_v45  ;;  %v1945_v63 = vadd.f32 %v1924_v20, %v6248_v44  ;;  %v1912_v11 = vpop.f32.mrf.mxu1  ;;  %v1818_v47 = vadd.f32 %v3785_v59, %v1817_v46  ;;  %3794 = vpow2.f32 %v3500_v18  ;;  %vm1836_vm15 = vmor %vm1834_vm10, %vm1835_vm13 }
 0x1fe   : > { %v3793_v9 = vpop.eup %3792  ;;  %v1832_v56 = vmul.f32 %v3789_v5, %v1831_v42  ;;  %v1845_v41 = vmul.f32 %v5266_v0, %v5242_v15  ;;  %v1801_v16 = vsub.f32 1.0, %v1800_v62  ;;  %v1826_v28 = vor.u32 1.1754944e-38, %v1825_v8  ;;  %v1938_v13 = vpop.f32.mrf.mxu3 }
 0x1ff   : > { %v3501_v51 = vmul.f32 -1.442695, %v1944_v39  ;;  %v3502_v50 = vmul.f32 -1.442695, %v1945_v63  ;;  %v6249_v42 = vunpack.c.l.bf16 %v6243_v19  ;;  %v1822_v61 = vsel %vm1821_vm14, %v3785_v59, %v1818_v47 }
 0x200   : > { %v1833_v20 = vadd.f32 %v3789_v5, %v1832_v56  ;;  %vm1839_vm0 = vcmp.eq.f32.partialorder %v1838_v10, 8.507059e+37  ;;  %v6250_v46 = vunpack.c.h.bf16 %v6243_v19  ;;  %v1846_v62 = vsub.f32 1.0, %v1845_v41 }
 0x201   : > { %v1947_v45 = vadd.f32 %v1898_v27, %v6249_v42  ;;  %3796 = vpow2.f32 %v3501_v51  ;;  %v1827_v4 = vsel %vm5256_vm11, %v1826_v28, %v1822_v61  ;;  %v1802_v59 = vmul.f32 %v5248_v60, %v1801_v16 }
 0x202   : > { %v1948_v18 = vadd.f32 %v1912_v11, %v6250_v46  ;;  %v1837_v39 = vsel %vm1836_vm15, %v3789_v5, %v1833_v20  ;;  %3798 = vpow2.f32 %v3502_v50  ;;  %v1864_v44 = vmul.f32 %v3793_v9, %v1827_v4 }
 0x203   : > { %v1926_v56 = vpop.f32.mrf.mxu2  ;;  %v1842_v8 = vsel %vm1839_vm0, %v1841_v55, %v1837_v39  ;;  %v3503_v63 = vmul.f32 -1.442695, %v1947_v45  ;;  %v3795_v42 = vpop.eup %3794  ;;  %v6251_v19 = vunpack.c.l.bf16 %v6244_v23  ;;  %v1881_v50 = vunpack.c.h.bf16 %v6242_v14 }
 0x204   : > { %v3504_v27 = vmul.f32 -1.442695, %v1948_v18  ;;  %v1862_v32 = vmul.f32 %v1842_v8, %v5023_v52  ;;  %v5291_v1 = vadd.f32 1.0, %v3795_v42  ;;  %v1808_v5 = vand.u32 2147483647, %v5222_v54 }
 0x205   : > { %3800 = vpow2.f32 %v3503_v63  ;;  %v1949_v10 = vadd.f32 %v1926_v56, %v6251_v19  ;;  %v1810_v9 = vand.u32 2147483648, %v5222_v54  ;;  %v1847_v52 = vmul.f32 %v5266_v0, %v1846_v62 }
 0x206   : > { %v5289_v41 = vadd.f32 %v1864_v44, %v1862_v32  ;;  %3802 = vpow2.f32 %v3504_v27  ;;  %vm1805_vm1 = vweird.f32 %v5248_v60  ;;  %v1885_v51 = vunpack.c.h.bf16 %v6244_v23  ;;  %v1940_v61 = vpop.f32.mrf.mxu3 }
 0x207   : > { %v3797_v55 = vpop.eup %3796  ;;  %3804 = vtanh.f32 %v5264_v25  ;;  %v1803_v14 = vadd.f32 %v5248_v60, %v1802_v59  ;;  %v3505_v28 = vmul.f32 -1.442695, %v1949_v10  ;;  %v1853_v20 = vand.u32 2147483647, %v5242_v15  ;;  %vm5319_vm5 = vmor %vm1804_vm2, %vm1805_vm1 }
 0x208   : > { %v3799_v11 = vpop.eup %3798  ;;  %3806 = vtanh.f32 %v5289_v41  ;;  %v5300_v47 = vadd.f32 1.0, %v3797_v55  ;;  %v1855_v45 = vand.u32 2147483648, %v5242_v15  ;;  %vm5311_vm3 = vcmp.eq.f32.partialorder %v1808_v5, 8.507059e+37 }
 0x209   : > { %3808 = vrcp.f32 %v5291_v1  ;;  %v5305_v16 = vadd.f32 1.0, %v3799_v11  ;;  %v1811_v23 = vor.u32 1.1754944e-38, %v1810_v9  ;;  %v1848_v62 = vadd.f32 %v5266_v0, %v1847_v52 }
 0x20a   : > { %3810 = vrcp.f32 %v5300_v47  ;;  %vm1850_vm4 = vweird.f32 %v5266_v0  ;;  %vm1849_vm6 = vweird.f32 %v5242_v15  ;;  %v1946_v39 = vadd.f32 %v1938_v13, %v1881_v50 }
 0x20b   : > { %v3801_v46 = vpop.eup %3800  ;;  %3812 = vrcp.f32 %v5305_v16  ;;  %v1950_v63 = vadd.f32 %v1940_v61, %v1885_v51  ;;  %v1807_v27 = vsel %vm5319_vm5, %v5248_v60, %v1803_v14  ;;  %vm5332_vm7 = vmor %vm1849_vm6, %vm1850_vm4  ;;  %vm5336_vm8 = vcmp.eq.f32.partialorder %v1853_v20, 8.507059e+37 }
 0x20c   : > { %v3803_v4 = vpop.eup %3802  ;;  %v5325_v56 = vadd.f32 1.0, %v3801_v46  ;;  %3814 = vpow2.f32 %v3505_v28  ;;  %v1856_v13 = vor.u32 1.1754944e-38, %v1855_v45  ;;  %v1984_v59 = vand.u32 2147483647, %v5291_v1 }
 0x20d   : > { %v3805_v8 = vpop.eup %3804  ;;  %v5327_v44 = vadd.f32 1.0, %v3803_v4  ;;  %v2001_v10 = vand.u32 2147483648, %v5300_v47  ;;  %v1986_v50 = vand.u32 2147483648, %v5291_v1  ;;  %v1852_v60 = vsel %vm5332_vm7, %v5266_v0, %v1848_v62 }
 0x20e   : > { %v3807_v32 = vpop.eup %3806  ;;  %3816 = vrcp.f32 %v5325_v56  ;;  %v1999_v9 = vand.u32 2147483647, %v5300_v47  ;;  %v1812_v52 = vsel %vm5311_vm3, %v1811_v23, %v1807_v27  ;;  %vm1980_vm9 = vweird.f32 %v5291_v1 }
 0x20f   : > { %v3809_v19 = vpop.eup %3808  ;;  %3818 = vrcp.f32 %v5327_v44  ;;  %v1869_v51 = vmul.f32 %v3805_v8, %v1812_v52  ;;  %vm1995_vm10 = vweird.f32 %v5300_v47  ;;  %vm5357_vm11 = vcmp.eq.f32.partialorder %v1984_v59, 8.507059e+37 }
 0x210   : > { %v3811_v55 = vpop.eup %3810  ;;  %v1976_v5 = vmul.f32 %v3809_v19, %v5291_v1  ;;  %3820 = vtanh.f32 %v1946_v39  ;;  %v1857_v20 = vsel %vm5336_vm8, %v1856_v13, %v1852_v60  ;;  %v2002_v46 = vor.u32 1.1754944e-38, %v2001_v10 }
 0x211   : > { %v1991_v11 = vmul.f32 %v3811_v55, %v5300_v47  ;;  %3822 = vtanh.f32 %v1950_v63  ;;  %v5354_v14 = vpop.eup %3812  ;;  %v1987_v18 = vor.u32 1.1754944e-38, %v1986_v50  ;;  %v1870_v23 = vmul.f32 %v3807_v32, %v1857_v20 }
 0x212   : > { %v1977_v28 = vsub.f32 1.0, %v1976_v5  ;;  %v3815_v45 = vpop.eup %3814  ;;  %vm1981_vm12 = vweird.f32 %v3809_v19  ;;  %vm5363_vm13 = vcmp.eq.f32.partialorder %v1999_v9, 8.507059e+37  ;;  %vm1996_vm14 = vweird.f32 %v3811_v55 }
 0x213   : > { %v1992_v61 = vsub.f32 1.0, %v1991_v11  ;;  %v5367_v39 = vadd.f32 1.0, %v3815_v45  ;;  %v2091_v42 = vpack.c.bf16 %v1870_v23, %v1869_v51  ;;  %v2046_v32 = vand.u32 2147483648, %v5327_v44  ;;  %vm1982_vm15 = vmor %vm1980_vm9, %vm1981_vm12 }
 0x214   : > { %v3817_v62 = vpop.eup %3816  ;;  %v1978_v4 = vmul.f32 %v3809_v19, %v1977_v28  ;;  %v2029_v10 = vand.u32 2147483647, %v5325_v56  ;;  %v2006_v60 = vmul.f32 %v5354_v14, %v5305_v16  ;;  %vm1997_vm0 = vmor %vm1995_vm10, %vm1996_vm14  ;;  %v2031_v51 = vand.u32 2147483648, %v5325_v56 }
 0x215   : > { %v3819_v8 = vpop.eup %3818  ;;  %v1993_v63 = vmul.f32 %v3811_v55, %v1992_v61  ;;  %v2021_v27 = vmul.f32 %v3817_v62, %v5325_v56  ;;  %3824 = vrcp.f32 %v5367_v39  ;;  %2100 = vmatmul.bf16.vlgmr.msra.gmra.mxu0 %v2091_v42  ;;  %2114 = vmatmul.bf16.vlgmr.msra.gmra.mxu1 %v2091_v42  ;;  %v2044_v28 = vand.u32 2147483647, %v5327_v44 }
 0x216   : > { %v3821_v15 = vpop.eup %3820  ;;  %v1979_v13 = vadd.f32 %v3809_v19, %v1978_v4  ;;  %v2036_v59 = vmul.f32 %v3819_v8, %v5327_v44  ;;  %2128 = vmatmul.bf16.vlgmr.msra.gmra.mxu2 %v2091_v42  ;;  %2142 = vmatmul.bf16.vlgmr.msra.gmra.mxu3 %v2091_v42  ;;  %vm2026_vm1 = vweird.f32 %v3817_v62  ;;  %vm2041_vm2 = vweird.f32 %v3819_v8 }
 0x217   : > { %v3823_v50 = vpop.eup %3822  ;;  %v1994_v5 = vadd.f32 %v3811_v55, %v1993_v63  ;;  %v2022_v9 = vsub.f32 1.0, %v2021_v27  ;;  %2502 = vmatpush.bf16.msra.mxu0 %v4123_v31  ;;  %2516 = vmatpush.bf16.msra.mxu1 %v4134_v35  ;;  %v2007_v23 = vsub.f32 1.0, %v2006_v60  ;;  %vm2025_vm3 = vweird.f32 %v5325_v56  ;;  %v6278_v60 = vld [vmem:[#allocation27_spill] sm:$0xff] }
 0x218   : > { %v1983_v52 = vsel %vm1982_vm15, %v3809_v19, %v1979_v13  ;;  %v2037_v11 = vsub.f32 1.0, %v2036_v59  ;;  %2530 = vmatpush.bf16.msra.mxu2 %v4136_v36  ;;  %2544 = vmatpush.bf16.msra.mxu3 %v6198_v49  ;;  %vm2040_vm4 = vweird.f32 %v5327_v44  ;;  %vm2027_vm5 = vmor %vm2025_vm3, %vm2026_vm1  ;;  %v2032_v31 = vor.u32 1.1754944e-38, %v2031_v51  ;;  %v6270_v59 = vld [vmem:[#allocation19_spill] sm:$0xff]  ;;  %v6283_v51 = vld [vmem:[#allocation32_spill] sm:$0xff] }
 0x219   : > { %v1988_v1 = vsel %vm5357_vm11, %v1987_v18, %v1983_v52  ;;  %v1998_v20 = vsel %vm1997_vm0, %v3811_v55, %v1994_v5  ;;  %v2023_v45 = vmul.f32 %v3817_v62, %v2022_v9  ;;  %vm2042_vm6 = vmor %vm2040_vm4, %vm2041_vm2  ;;  %v2047_v4 = vor.u32 1.1754944e-38, %v2046_v32  ;;  %v6275_v32 = vld [vmem:[#allocation24_spill] sm:$0xff]  ;;  %v6280_v9 = vld [vmem:[#allocation29_spill] sm:$0xff] }
 0x21a   : > { %v2003_v47 = vsel %vm5363_vm13, %v2002_v46, %v1998_v20  ;;  %v2069_v19 = vmul.f32 %v3821_v15, %v1988_v1  ;;  %v2038_v61 = vmul.f32 %v3819_v8, %v2037_v11  ;;  %vm2030_vm7 = vcmp.eq.f32.partialorder %v2029_v10, 8.507059e+37  ;;  %v6276_v10 = vld [vmem:[#allocation25_spill] sm:$0xff]  ;;  %v6279_v5 = vld [vmem:[#allocation28_spill] sm:$0xff]  ;;  %v6281_v52 = vld [vmem:[#allocation30_spill] sm:$0xff] }
 0x21b   : > { %v2067_v0 = vmul.f32 %v2003_v47, %v5130_v34  ;;  %v2024_v55 = vadd.f32 %v3817_v62, %v2023_v45  ;;  %v3825_v18 = vpop.eup %3824  ;;  %2503 = vmatpush.bf16.msra.mxu0 %v4148_v40  ;;  %2517 = vmatpush.bf16.msra.mxu1 %v6199_v33  ;;  %vm2045_vm8 = vcmp.eq.f32.partialorder %v2044_v28, 8.507059e+37  ;;  %v2008_v56 = vmul.f32 %v5354_v14, %v2007_v23  ;;  %v6282_v11 = vld [vmem:[#allocation31_spill] sm:$0xff]  ;;  %v6284_v28 = vld [vmem:[#allocation33_spill] sm:$0xff]  ;;  %v6285_v1 = vld [vmem:[#allocation34_spill] sm:$0xff] }
 0x21c   : > { %v2039_v35 = vadd.f32 %v3819_v8, %v2038_v61  ;;  %v2051_v36 = vmul.f32 %v3825_v18, %v5367_v39  ;;  %2531 = vmatpush.bf16.msra.mxu2 %v6200_v48  ;;  %2545 = vmatpush.bf16.msra.mxu3 %v6201_v6  ;;  %vm2011_vm9 = vweird.f32 %v5354_v14  ;;  %vm2010_vm10 = vweird.f32 %v5305_v16  ;;  %v6286_v20 = vld [vmem:[#allocation35_spill] sm:$0xff]  ;;  %v6287_v45 = vld [vmem:[#allocation36_spill] sm:$0xff]  ;;  %v6288_v47 = vld [vmem:[#allocation37_spill] sm:$0xff] }
 0x21d   : > { %v5395_v46 = vadd.f32 %v2069_v19, %v2067_v0  ;;  %v2028_v54 = vsel %vm2027_vm5, %v3817_v62, %v2024_v55  ;;  %v2009_v48 = vadd.f32 %v5354_v14, %v2008_v56  ;;  %vm2056_vm11 = vweird.f32 %v3825_v18  ;;  %vm5417_vm12 = vmor %vm2010_vm10, %vm2011_vm9  ;;  %v6289_v19 = vld [vmem:[#allocation38_spill] sm:$0xff]  ;;  %v6290_v61 = vld [vmem:[#allocation39_spill] sm:$0xff] }
 0x21e   : > { %v2033_v49 = vsel %vm2030_vm7, %v2032_v31, %v2028_v54  ;;  %v2043_v34 = vsel %vm2042_vm6, %v3819_v8, %v2039_v35  ;;  %v2052_v27 = vsub.f32 1.0, %v2051_v36  ;;  %vm2055_vm13 = vweird.f32 %v5367_v39  ;;  %v6291_v23 = vld [vmem:[#allocation40_spill] sm:$0xff]  ;;  %v6292_v0 = vld [vmem:[#allocation41_spill] sm:$0xff]  ;;  %v6293_v55 = vld [vmem:[#allocation42_spill] sm:$0xff] }
 0x21f   : > { %v2048_v44 = vsel %vm2045_vm8, %v2047_v4, %v2043_v34  ;;  %v2070_v63 = vmul.f32 %v3823_v50, %v2033_v49  ;;  %2504 = vmatpush.bf16.msra.mxu0 %v4191_v53  ;;  %2518 = vmatpush.bf16.msra.mxu1 %v4202_v57  ;;  %3826 = vtanh.f32 %v5395_v46  ;;  %v2016_v53 = vand.u32 2147483648, %v5305_v16  ;;  %vm2057_vm14 = vmor %vm2055_vm13, %vm2056_vm11  ;;  %v6277_v50 = vld [vmem:[#allocation26_spill] sm:$0xff]  ;;  %v6294_v31 = vld [vmem:[#allocation43_spill] sm:$0xff] }
 0x220   : > { %v2068_v62 = vmul.f32 %v2048_v44, %v5139_v29  ;;  %v2053_v40 = vmul.f32 %v3825_v18, %v2052_v27  ;;  %2532 = vmatpush.bf16.msra.mxu2 %v4204_v58  ;;  %2546 = vmatpush.bf16.msra.mxu3 %v4243_v7  ;;  %v2061_v57 = vand.u32 2147483648, %v5367_v39  ;;  %v2014_v58 = vand.u32 2147483647, %v5305_v16  ;;  %v6295_v35 = vld [vmem:[#allocation44_spill] sm:$0xff]  ;;  %v6297_v4 = vld [vmem:[#allocation46_spill] sm:$0xff]  ;;  %v6298_v54 = vld [vmem:[#allocation47_spill] sm:$0xff] }
 0x221   : > { %v2059_v7 = vand.u32 2147483647, %v5367_v39  ;;  %v2013_v8 = vsel %vm5417_vm12, %v5354_v14, %v2009_v48  ;;  %v2017_v16 = vor.u32 1.1754944e-38, %v2016_v53  ;;  %v6299_v36 = vld [vmem:[#allocation48_spill] sm:$0xff]  ;;  %v6300_v49 = vld [vmem:[#allocation49_spill] sm:$0xff]  ;;  %v6301_v34 = vld [vmem:[#allocation50_spill] sm:$0xff] }
 0x222   : > { %v5408_v33 = vadd.f32 %v2070_v63, %v2068_v62  ;;  %v2054_v6 = vadd.f32 %v3825_v18, %v2053_v40  ;;  %v2062_v13 = vor.u32 1.1754944e-38, %v2061_v57  ;;  %vm2015_vm15 = vcmp.eq.f32.partialorder %v2014_v58, 8.507059e+37  ;;  %v6302_v56 = vld [vmem:[#allocation51_spill] sm:$0xff]  ;;  %v6303_v44 = vld [vmem:[#allocation52_spill] sm:$0xff]  ;;  %v6304_v63 = vld [vmem:[#allocation53_spill] sm:$0xff] }
 0x223   : > { %2505 = vmatpush.bf16.msra.mxu0 %v4229_v2  ;;  %2519 = vmatpush.bf16.msra.mxu1 %v4231_v3  ;;  %vm2060_vm0 = vcmp.eq.f32.partialorder %v2059_v7, 8.507059e+37  ;;  %v2018_v3 = vsel %vm2015_vm15, %v2017_v16, %v2013_v8  ;;  %v6305_v27 = vld [vmem:[#allocation54_spill] sm:$0xff]  ;;  %v6306_v62 = vld [vmem:[#allocation59_spill] sm:$0xff]  ;;  %v6307_v8 = vld [vmem:[#allocation60_spill] sm:$0xff] }
 0x224   : > { %3828 = vtanh.f32 %v5408_v33  ;;  %2533 = vmatpush.bf16.msra.mxu2 %v6204_v37  ;;  %2547 = vmatpush.bf16.msra.mxu3 %v6205_v24  ;;  %v2058_v42 = vsel %vm2057_vm14, %v3825_v18, %v2054_v6  ;;  %v6296_v18 = vld [vmem:[#allocation45_spill] sm:$0xff]  ;;  %v2083_v40 = vunpack.c.l.bf16 %v6306_v62  ;;  %v2084_v48 = vunpack.c.h.bf16 %v6306_v62 }
 0x225   : > { %v3827_v15 = vpop.eup %3826  ;;  %v2063_v39 = vsel %vm2060_vm0, %v2062_v13, %v2058_v42  ;;  %v2085_v42 = vunpack.c.l.bf16 %v6307_v8  ;;  %v6308_v16 = vld [vmem:[#allocation61_spill] sm:$0xff] }
 0x226   : > { %v2075_v37 = vmul.f32 %v3827_v15, %v2018_v3  ;;  %v2087_v13 = vunpack.c.l.bf16 %v6308_v16 }
 0x227   : > { %2506 = vmatpush.bf16.msra.mxu0 %v4276_v17  ;;  %2520 = vmatpush.bf16.msra.mxu1 %v4288_v21  ;;  %v6266_v17 = vld [vmem:[#allocation15_spill] sm:$0xff]  ;;  %v6267_v21 = vld [vmem:[#allocation16_spill] sm:$0xff] }
 0x228   : > { %2534 = vmatpush.bf16.msra.mxu2 %v4290_v22  ;;  %2548 = vmatpush.bf16.msra.mxu3 %v4302_v26  ;;  %v6268_v22 = vld [vmem:[#allocation17_spill] sm:$0xff]  ;;  %v6269_v26 = vld [vmem:[#allocation18_spill] sm:$0xff] }
 0x22a   : > { %v3829_v2 = vpop.eup %3828 }
 0x22b   : > { %v2076_v24 = vmul.f32 %v3829_v2, %v2063_v39  ;;  %2507 = vmatpush.bf16.msra.mxu0 %v4315_v30  ;;  %2521 = vmatpush.bf16.msra.mxu1 %v6206_v12  ;;  %v6271_v30 = vld [vmem:[#allocation20_spill] sm:$0xff]  ;;  %v6272_v12 = vld [vmem:[#allocation21_spill] sm:$0xff]  ;;  %v2088_v2 = vunpack.c.h.bf16 %v6308_v16 }
 0x22c   : > { %2535 = vmatpush.bf16.msra.mxu2 %v4329_v38  ;;  %2549 = vmatpush.bf16.msra.mxu3 %v4340_v43  ;;  %v6273_v38 = vld [vmem:[#allocation22_spill] sm:$0xff]  ;;  %v6274_v43 = vld [vmem:[#allocation23_spill] sm:$0xff] }
 0x22d   : > { %v2296_v14 = vpack.c.bf16 %v2076_v24, %v2075_v37 }
 0x22f   : > { %2305 = vmatmul.bf16.vlgmr.msrb.gmra.mxu0 %v2296_v14  ;;  %2319 = vmatmul.bf16.vlgmr.msrb.gmra.mxu1 %v2296_v14 }
 0x230   : > { %2333 = vmatmul.bf16.vlgmr.msrb.gmra.mxu2 %v2296_v14  ;;  %2347 = vmatmul.bf16.vlgmr.msrb.gmra.mxu3 %v2296_v14 }
 0x231   : > { %2508 = vmatpush.bf16.msra.mxu0 %v6266_v17  ;;  %2522 = vmatpush.bf16.msra.mxu1 %v6267_v21 }
 0x232   : > { %2536 = vmatpush.bf16.msra.mxu2 %v6268_v22  ;;  %2550 = vmatpush.bf16.msra.mxu3 %v6269_v26 }
 0x235   : > { %2509 = vmatpush.bf16.msra.mxu0 %v6270_v59  ;;  %2523 = vmatpush.bf16.msra.mxu1 %v6271_v30 }
 0x236   : > { %2537 = vmatpush.bf16.msra.mxu2 %v6272_v12  ;;  %2551 = vmatpush.bf16.msra.mxu3 %v6273_v38 }
 0x239   : > { %2707 = vmatpush.bf16.msrb.mxu0 %v6274_v43  ;;  %2721 = vmatpush.bf16.msrb.mxu1 %v6275_v32  ;;  %v6309_v43 = vld [vmem:[#allocation62_spill] sm:$0xff] }
 0x23a   : > { %2735 = vmatpush.bf16.msrb.mxu2 %v6276_v10  ;;  %2749 = vmatpush.bf16.msrb.mxu3 %v6277_v50  ;;  %v2089_v32 = vunpack.c.l.bf16 %v6309_v43  ;;  %v2086_v50 = vunpack.c.h.bf16 %v6307_v8 }
 0x23d   : > { %2708 = vmatpush.bf16.msrb.mxu0 %v6278_v60  ;;  %2722 = vmatpush.bf16.msrb.mxu1 %v6279_v5 }
 0x23e   : > { %2736 = vmatpush.bf16.msrb.mxu2 %v6280_v9  ;;  %2750 = vmatpush.bf16.msrb.mxu3 %v6281_v52 }
 0x241   : > { %2709 = vmatpush.bf16.msrb.mxu0 %v6282_v11  ;;  %2723 = vmatpush.bf16.msrb.mxu1 %v6283_v51 }
 0x242   : > { %2737 = vmatpush.bf16.msrb.mxu2 %v6284_v28  ;;  %2751 = vmatpush.bf16.msrb.mxu3 %v6285_v1 }
 0x245   : > { %2710 = vmatpush.bf16.msrb.mxu0 %v6286_v20  ;;  %2724 = vmatpush.bf16.msrb.mxu1 %v6287_v45  ;;  %v2090_v20 = vunpack.c.h.bf16 %v6309_v43 }
 0x246   : > { %2738 = vmatpush.bf16.msrb.mxu2 %v6288_v47  ;;  %2752 = vmatpush.bf16.msrb.mxu3 %v6289_v19  ;;  %v6310_v19 = vld [vmem:[#allocation71_spill] sm:$0xff] }
 0x249   : > { %2711 = vmatpush.bf16.msrb.mxu0 %v6290_v61  ;;  %2725 = vmatpush.bf16.msrb.mxu1 %v6291_v23  ;;  %v2288_v61 = vunpack.c.l.bf16 %v6310_v19  ;;  %v2289_v23 = vunpack.c.h.bf16 %v6310_v19 }
 0x24a   : > { %2739 = vmatpush.bf16.msrb.mxu2 %v6292_v0  ;;  %2753 = vmatpush.bf16.msrb.mxu3 %v6293_v55  ;;  %v6311_v0 = vld [vmem:[#allocation73_spill] sm:$0xff] }
 0x24b   : > { %v2292_v55 = vunpack.c.l.bf16 %v6311_v0 }
 0x24d   : > { %2712 = vmatpush.bf16.msrb.mxu0 %v6294_v31  ;;  %2726 = vmatpush.bf16.msrb.mxu1 %v6295_v35 }
 0x24e   : > { %2740 = vmatpush.bf16.msrb.mxu2 %v6296_v18  ;;  %2754 = vmatpush.bf16.msrb.mxu3 %v6297_v4  ;;  %v6312_v18 = vld [vmem:[#allocation72_spill] sm:$0xff] }
 0x24f   : > { %v2290_v4 = vunpack.c.l.bf16 %v6312_v18 }
 0x251   : > { %2713 = vmatpush.bf16.msrb.mxu0 %v6298_v54  ;;  %2727 = vmatpush.bf16.msrb.mxu1 %v6299_v36  ;;  %v2293_v54 = vunpack.c.h.bf16 %v6311_v0 }
 0x252   : > { %2741 = vmatpush.bf16.msrb.mxu2 %v6300_v49  ;;  %2755 = vmatpush.bf16.msrb.mxu3 %v6301_v34 }
 0x255   : > { %2714 = vmatpush.bf16.msrb.mxu0 %v6302_v56  ;;  %2728 = vmatpush.bf16.msrb.mxu1 %v6303_v44 }
 0x256   : > { %2742 = vmatpush.bf16.msrb.mxu2 %v6304_v63  ;;  %2756 = vmatpush.bf16.msrb.mxu3 %v6305_v27 }
 0x292   : > { %v2101_v53 = vpop.f32.mrf.mxu0  ;;  %v2115_v6 = vpop.f32.mrf.mxu1 }
 0x293   : > { %v2148_v57 = vadd.f32 %v2101_v53, %v2083_v40  ;;  %v2149_v29 = vadd.f32 %v2115_v6, %v2084_v48 }
 0x295   : > { %v3506_v58 = vmul.f32 -1.442695, %v2148_v57  ;;  %v3507_v7 = vmul.f32 -1.442695, %v2149_v29 }
 0x297   : > { %3830 = vpow2.f32 %v3506_v58  ;;  %v6313_v58 = vld [vmem:[#allocation74_spill] sm:$0xff] }
 0x298   : > { %3832 = vpow2.f32 %v3507_v7  ;;  %v2294_v7 = vunpack.c.l.bf16 %v6313_v58 }
 0x299   : > { %v2129_v15 = vpop.f32.mrf.mxu2  ;;  %v2143_v38 = vpop.f32.mrf.mxu3 }
 0x29a   : > { %v2150_v3 = vadd.f32 %v2129_v15, %v2085_v42  ;;  %v2103_v39 = vpop.f32.mrf.mxu0  ;;  %v2117_v37 = vpop.f32.mrf.mxu1  ;;  %v2151_v9 = vadd.f32 %v2143_v38, %v2086_v50 }
 0x29b   : > { %v2152_v24 = vadd.f32 %v2103_v39, %v2087_v13  ;;  %v2153_v14 = vadd.f32 %v2117_v37, %v2088_v2 }
 0x29c   : > { %v3508_v17 = vmul.f32 -1.442695, %v2150_v3 }
 0x29d   : > { %v3831_v21 = vpop.eup %3830  ;;  %v3509_v22 = vmul.f32 -1.442695, %v2152_v24  ;;  %v3510_v30 = vmul.f32 -1.442695, %v2153_v14 }
 0x29e   : > { %v3833_v26 = vpop.eup %3832  ;;  %v2174_v59 = vadd.f32 1.0, %v3831_v21  ;;  %3834 = vpow2.f32 %v3508_v17 }
 0x29f   : > { %v5484_v12 = vadd.f32 1.0, %v3833_v26  ;;  %3836 = vpow2.f32 %v3509_v22 }
 0x2a0   : > { %3838 = vrcp.f32 %v2174_v59  ;;  %v2189_v49 = vand.u32 2147483647, %v2174_v59  ;;  %v2191_v27 = vand.u32 2147483648, %v2174_v59  ;;  %vm2185_vm4 = vweird.f32 %v2174_v59 }
 0x2a1   : > { %3840 = vrcp.f32 %v5484_v12  ;;  %v2131_v10 = vpop.f32.mrf.mxu2  ;;  %v2145_v56 = vpop.f32.mrf.mxu3  ;;  %v2206_v63 = vand.u32 2147483648, %v5484_v12  ;;  %v2204_v40 = vand.u32 2147483647, %v5484_v12  ;;  %vm2200_vm3 = vweird.f32 %v5484_v12 }
 0x2a2   : > { %3842 = vpow2.f32 %v3510_v30  ;;  %v2154_v60 = vadd.f32 %v2131_v10, %v2089_v32  ;;  %v2155_v57 = vadd.f32 %v2145_v56, %v2090_v20  ;;  %vm2190_vm6 = vcmp.eq.f32.partialorder %v2189_v49, 8.507059e+37 }
 0x2a3   : > { %v2207_v16 = vor.u32 1.1754944e-38, %v2206_v63  ;;  %v2192_v13 = vor.u32 1.1754944e-38, %v2191_v27  ;;  %vm2205_vm8 = vcmp.eq.f32.partialorder %v2204_v40, 8.507059e+37 }
 0x2a4   : > { %v3835_v5 = vpop.eup %3834  ;;  %v3511_v52 = vmul.f32 -1.442695, %v2154_v60 }
 0x2a5   : > { %v3837_v11 = vpop.eup %3836  ;;  %v5489_v28 = vadd.f32 1.0, %v3835_v5 }
 0x2a6   : > { %v3839_v51 = vpop.eup %3838  ;;  %v5491_v1 = vadd.f32 1.0, %v3837_v11  ;;  %3844 = vpow2.f32 %v3511_v52 }
 0x2a7   : > { %v3841_v45 = vpop.eup %3840  ;;  %v2181_v47 = vmul.f32 %v3839_v51, %v2174_v59  ;;  %3846 = vtanh.f32 %v2151_v9  ;;  %vm2186_vm1 = vweird.f32 %v3839_v51 }
 0x2a8   : > { %v3843_v31 = vpop.eup %3842  ;;  %v2196_v35 = vmul.f32 %v3841_v45, %v5484_v12  ;;  %3848 = vrcp.f32 %v5491_v1  ;;  %vm2201_vm2 = vweird.f32 %v3841_v45  ;;  %vm2187_vm5 = vmor %vm2185_vm4, %vm2186_vm1  ;;  %v2234_v37 = vand.u32 2147483647, %v5491_v1 }
 0x2a9   : > { %v2182_v36 = vsub.f32 1.0, %v2181_v47  ;;  %v5501_v34 = vadd.f32 1.0, %v3843_v31  ;;  %3850 = vrcp.f32 %v5489_v28  ;;  %vm2202_vm7 = vmor %vm2200_vm3, %vm2201_vm2  ;;  %vm2230_vm9 = vweird.f32 %v5491_v1 }
 0x2aa   : > { %v2197_v44 = vsub.f32 1.0, %v2196_v35  ;;  %vm5523_vm11 = vcmp.eq.f32.partialorder %v2234_v37, 8.507059e+37  ;;  %v2236_v60 = vand.u32 2147483648, %v5491_v1  ;;  %vm2215_vm2 = vweird.f32 %v5489_v28 }
 0x2ab   : > { %v2183_v62 = vmul.f32 %v3839_v51, %v2182_v36  ;;  %3852 = vrcp.f32 %v5501_v34  ;;  %v2251_v10 = vand.u32 2147483648, %v5501_v34  ;;  %vm2245_vm10 = vweird.f32 %v5501_v34 }
 0x2ac   : > { %v2306_v48 = vpop.f32.mrf.mxu0  ;;  %v3845_v53 = vpop.eup %3844  ;;  %v2198_v6 = vmul.f32 %v3841_v45, %v2197_v44  ;;  %v2249_v5 = vand.u32 2147483647, %v5501_v34  ;;  %v2237_v19 = vor.u32 1.1754944e-38, %v2236_v60 }
 0x2ad   : > { %v2320_v29 = vpop.f32.mrf.mxu1  ;;  %v2184_v8 = vadd.f32 %v3839_v51, %v2183_v62  ;;  %v5509_v42 = vadd.f32 1.0, %v3845_v53  ;;  %v3847_v15 = vpop.eup %3846  ;;  %v2353_v30 = vadd.f32 %v2306_v48, %v2288_v61  ;;  %v2252_v36 = vor.u32 1.1754944e-38, %v2251_v10 }
 0x2ae   : > { %v2199_v2 = vadd.f32 %v3841_v45, %v2198_v6  ;;  %v3849_v3 = vpop.eup %3848  ;;  %vm2250_vm0 = vcmp.eq.f32.partialorder %v2249_v5, 8.507059e+37 }
 0x2af   : > { %v2188_v39 = vsel %vm2187_vm5, %v3839_v51, %v2184_v8  ;;  %3854 = vrcp.f32 %v5509_v42  ;;  %v5515_v24 = vpop.eup %3850  ;;  %v2226_v21 = vmul.f32 %v3849_v3, %v5491_v1  ;;  %vm2231_vm12 = vweird.f32 %v3849_v3 }
 0x2b0   : > { %v2193_v14 = vsel %vm2190_vm6, %v2192_v13, %v2188_v39  ;;  %v2203_v17 = vsel %vm2202_vm7, %v3841_v45, %v2199_v2  ;;  %3856 = vtanh.f32 %v2155_v57  ;;  %v2211_v9 = vmul.f32 %v5515_v24, %v5489_v28  ;;  %vm2232_vm14 = vmor %vm2230_vm9, %vm2231_vm12 }
 0x2b1   : > { %v3853_v22 = vpop.eup %3852  ;;  %v2208_v26 = vsel %vm2205_vm8, %v2207_v16, %v2203_v17  ;;  %v2274_v59 = vmul.f32 %v3847_v15, %v2193_v14  ;;  %v2227_v43 = vsub.f32 1.0, %v2226_v21  ;;  %v3512_v20 = vmul.f32 -1.442695, %v2353_v30 }
 0x2b2   : > { %v2272_v38 = vmul.f32 %v2208_v26, %v5264_v25  ;;  %v2241_v32 = vmul.f32 %v3853_v22, %v5501_v34  ;;  %v2354_v45 = vadd.f32 %v2320_v29, %v2289_v23  ;;  %vm2246_vm13 = vweird.f32 %v3853_v22 }
 0x2b3   : > { %v2334_v12 = vpop.f32.mrf.mxu2  ;;  %v2228_v11 = vmul.f32 %v3849_v3, %v2227_v43  ;;  %3858 = vpow2.f32 %v3512_v20  ;;  %v2212_v62 = vsub.f32 1.0, %v2211_v9  ;;  %vm2247_vm15 = vmor %vm2245_vm10, %vm2246_vm13  ;;  %v2291_v39 = vunpack.c.h.bf16 %v6312_v18 }
 0x2b4   : > { %v5531_v52 = vadd.f32 %v2274_v59, %v2272_v38  ;;  %v2242_v25 = vsub.f32 1.0, %v2241_v32  ;;  %v2355_v47 = vadd.f32 %v2334_v12, %v2290_v4  ;;  %v2308_v61 = vpop.f32.mrf.mxu0  ;;  %v3513_v63 = vmul.f32 -1.442695, %v2354_v45  ;;  %v2348_v4 = vpop.f32.mrf.mxu3 }
 0x2b5   : > { %v5533_v51 = vpop.eup %3854  ;;  %v2322_v56 = vpop.f32.mrf.mxu1  ;;  %v2229_v44 = vadd.f32 %v3849_v3, %v2228_v11  ;;  %v2357_v40 = vadd.f32 %v2308_v61, %v2292_v55  ;;  %v2213_v2 = vmul.f32 %v5515_v24, %v2212_v62  ;;  %v2219_v14 = vand.u32 2147483647, %v5489_v28 }
 0x2b6   : > { %v3857_v31 = vpop.eup %3856  ;;  %v2243_v35 = vmul.f32 %v3853_v22, %v2242_v25  ;;  %v2256_v49 = vmul.f32 %v5533_v51, %v5509_v42  ;;  %v3514_v27 = vmul.f32 -1.442695, %v2355_v47  ;;  %3860 = vpow2.f32 %v3513_v63 }
 0x2b7   : > { %v2233_v48 = vsel %vm2232_vm14, %v3849_v3, %v2229_v44  ;;  %v2358_v53 = vadd.f32 %v2322_v56, %v2293_v54  ;;  %v3515_v16 = vmul.f32 -1.442695, %v2357_v40  ;;  %v2221_v17 = vand.u32 2147483648, %v5489_v28 }
 0x2b8   : > { %v2244_v23 = vadd.f32 %v3853_v22, %v2243_v35  ;;  %v2257_v6 = vsub.f32 1.0, %v2256_v49  ;;  %v2238_v1 = vsel %vm5523_vm11, %v2237_v19, %v2233_v48  ;;  %3862 = vpow2.f32 %v3514_v27 }
 0x2b9   : > { %v2275_v15 = vmul.f32 %v3857_v31, %v2238_v1  ;;  %v3516_v55 = vmul.f32 -1.442695, %v2358_v53  ;;  %v3859_v13 = vpop.eup %3858  ;;  %3864 = vpow2.f32 %v3515_v16  ;;  %vm2216_vm1 = vweird.f32 %v5515_v24 }
 0x2ba   : > { %v2248_v57 = vsel %vm2247_vm15, %v3853_v22, %v2244_v23  ;;  %v5558_v3 = vadd.f32 1.0, %v3859_v13  ;;  %v2295_v22 = vunpack.c.h.bf16 %v6313_v58  ;;  %v2214_v18 = vadd.f32 %v5515_v24, %v2213_v2  ;;  %vm5586_vm5 = vmor %vm2215_vm2, %vm2216_vm1 }
 0x2bb   : > { %v2336_v29 = vpop.f32.mrf.mxu2  ;;  %v2253_v8 = vsel %vm2250_vm0, %v2252_v36, %v2248_v57  ;;  %3866 = vpow2.f32 %v3516_v55  ;;  %v2264_v30 = vand.u32 2147483647, %v5509_v42  ;;  %v2266_v12 = vand.u32 2147483648, %v5509_v42 }
 0x2bc   : > { %v2273_v34 = vmul.f32 %v2253_v8, %v5289_v41  ;;  %v2359_v0 = vadd.f32 %v2336_v29, %v2294_v7  ;;  %v3861_v37 = vpop.eup %3860  ;;  %3868 = vtanh.f32 %v5531_v52  ;;  %v2258_v41 = vmul.f32 %v5533_v51, %v2257_v6  ;;  %v2350_v38 = vpop.f32.mrf.mxu3 }
 0x2bd   : > { %v5567_v7 = vadd.f32 1.0, %v3861_v37  ;;  %vm5578_vm3 = vcmp.eq.f32.partialorder %v2219_v14, 8.507059e+37  ;;  %v2222_v58 = vor.u32 1.1754944e-38, %v2221_v17  ;;  %vm2261_vm4 = vweird.f32 %v5533_v51 }
 0x2be   : > { %v5556_v54 = vadd.f32 %v2275_v15, %v2273_v34  ;;  %v3863_v21 = vpop.eup %3862  ;;  %v3517_v59 = vmul.f32 -1.442695, %v2359_v0  ;;  %v2259_v10 = vadd.f32 %v5533_v51, %v2258_v41  ;;  %vm2260_vm6 = vweird.f32 %v5509_v42 }
 0x2bf   : > { %v5572_v26 = vadd.f32 1.0, %v3863_v21  ;;  %v3865_v43 = vpop.eup %3864  ;;  %v2356_v60 = vadd.f32 %v2348_v4, %v2291_v39  ;;  %v2360_v11 = vadd.f32 %v2350_v38, %v2295_v22  ;;  %v2218_v20 = vsel %vm5586_vm5, %v5515_v24, %v2214_v18  ;;  %vm5599_vm7 = vmor %vm2260_vm6, %vm2261_vm4 }
 0x2c0   : > { %3870 = vtanh.f32 %v5556_v54  ;;  %v5592_v5 = vadd.f32 1.0, %v3865_v43  ;;  %vm5603_vm8 = vcmp.eq.f32.partialorder %v2264_v30, 8.507059e+37  ;;  %v2267_v61 = vor.u32 1.1754944e-38, %v2266_v12 }
 0x2c1   : > { %3872 = vrcp.f32 %v5558_v3  ;;  %v3867_v50 = vpop.eup %3866  ;;  %v2394_v31 = vand.u32 2147483647, %v5558_v3  ;;  %v2411_v36 = vand.u32 2147483648, %v5567_v7  ;;  %v2396_v49 = vand.u32 2147483648, %v5558_v3 }
 0x2c2   : > { %3874 = vrcp.f32 %v5567_v7  ;;  %v3869_v9 = vpop.eup %3868  ;;  %v5594_v25 = vadd.f32 1.0, %v3867_v50  ;;  %v2263_v24 = vsel %vm5599_vm7, %v5533_v51, %v2259_v10  ;;  %v2409_v63 = vand.u32 2147483647, %v5567_v7 }
 0x2c3   : > { %3876 = vrcp.f32 %v5572_v26  ;;  %v2223_v27 = vsel %vm5578_vm3, %v2222_v58, %v2218_v20  ;;  %vm2390_vm9 = vweird.f32 %v5558_v3  ;;  %vm2405_vm10 = vweird.f32 %v5567_v7 }
 0x2c4   : > { %3878 = vpow2.f32 %v3517_v59  ;;  %v2280_v19 = vmul.f32 %v3869_v9, %v2223_v27  ;;  %vm5624_vm11 = vcmp.eq.f32.partialorder %v2394_v31, 8.507059e+37  ;;  %v2268_v40 = vsel %vm5603_vm8, %v2267_v61, %v2263_v24 }
 0x2c5   : > { %3880 = vrcp.f32 %v5592_v5  ;;  %v2412_v6 = vor.u32 1.1754944e-38, %v2411_v36  ;;  %v2397_v1 = vor.u32 1.1754944e-38, %v2396_v49  ;;  %vm5630_vm13 = vcmp.eq.f32.partialorder %v2409_v63, 8.507059e+37 }
 0x2c6   : > { %v3871_v45 = vpop.eup %3870  ;;  %3882 = vrcp.f32 %v5594_v25  ;;  %v2456_v14 = vand.u32 2147483648, %v5594_v25  ;;  %v2439_v17 = vand.u32 2147483647, %v5592_v5  ;;  %v2441_v12 = vand.u32 2147483648, %v5592_v5 }
 0x2c7   : > { %v3873_v35 = vpop.eup %3872  ;;  %3884 = vtanh.f32 %v2356_v60  ;;  %v2281_v57 = vmul.f32 %v3871_v45, %v2268_v40  ;;  %v2454_v38 = vand.u32 2147483647, %v5594_v25  ;;  %vm2435_vm3 = vweird.f32 %v5592_v5 }
 0x2c8   : > { %v3875_v56 = vpop.eup %3874  ;;  %v2386_v44 = vmul.f32 %v3873_v35, %v5558_v3  ;;  %3886 = vtanh.f32 %v2360_v11  ;;  %vm2391_vm12 = vweird.f32 %v3873_v35  ;;  %vm2450_vm4 = vweird.f32 %v5594_v25 }
 0x2c9   : > { %v2401_v62 = vmul.f32 %v3875_v56, %v5567_v7  ;;  %v5621_v23 = vpop.eup %3876  ;;  %vm2406_vm14 = vweird.f32 %v3875_v56  ;;  %v2501_v2 = vpack.c.bf16 %v2281_v57, %v2280_v19  ;;  %vm2392_vm15 = vmor %vm2390_vm9, %vm2391_vm12  ;;  %v2442_v9 = vor.u32 1.1754944e-38, %v2441_v12 }
 0x2ca   : > { %v2387_v4 = vsub.f32 1.0, %v2386_v44  ;;  %v3879_v48 = vpop.eup %3878  ;;  %v2416_v21 = vmul.f32 %v5621_v23, %v5572_v26  ;;  %vm2407_vm0 = vmor %vm2405_vm10, %vm2406_vm14  ;;  %v2457_v47 = vor.u32 1.1754944e-38, %v2456_v14  ;;  %vm2440_vm7 = vcmp.eq.f32.partialorder %v2439_v17, 8.507059e+37 }
 0x2cb   : > { %v2402_v53 = vsub.f32 1.0, %v2401_v62  ;;  %v3881_v29 = vpop.eup %3880  ;;  %v5634_v16 = vadd.f32 1.0, %v3879_v48  ;;  %2510 = vmatmul.bf16.vlgmr.msra.gmra.mxu0 %v2501_v2  ;;  %2524 = vmatmul.bf16.vlgmr.msra.gmra.mxu1 %v2501_v2  ;;  %vm2455_vm8 = vcmp.eq.f32.partialorder %v2454_v38, 8.507059e+37  ;;  %vm2421_vm9 = vweird.f32 %v5621_v23 }
 0x2cc   : > { %v2388_v8 = vmul.f32 %v3873_v35, %v2387_v4  ;;  %v3883_v55 = vpop.eup %3882  ;;  %v2431_v13 = vmul.f32 %v3881_v29, %v5592_v5  ;;  %2538 = vmatmul.bf16.vlgmr.msra.gmra.mxu2 %v2501_v2  ;;  %2552 = vmatmul.bf16.vlgmr.msra.gmra.mxu3 %v2501_v2  ;;  %vm2436_vm1 = vweird.f32 %v3881_v29  ;;  %v2417_v50 = vsub.f32 1.0, %v2416_v21 }
 0x2cd   : > { %v2403_v34 = vmul.f32 %v3875_v56, %v2402_v53  ;;  %v3885_v0 = vpop.eup %3884  ;;  %v2446_v37 = vmul.f32 %v3883_v55, %v5594_v25  ;;  %3888 = vrcp.f32 %v5634_v16  ;;  %vm2451_vm2 = vweird.f32 %v3883_v55  ;;  %vm2437_vm5 = vmor %vm2435_vm3, %vm2436_vm1 }
 0x2ce   : > { %v2389_v39 = vadd.f32 %v3873_v35, %v2388_v8  ;;  %v3887_v41 = vpop.eup %3886  ;;  %v2432_v18 = vsub.f32 1.0, %v2431_v13  ;;  %vm2452_vm6 = vmor %vm2450_vm4, %vm2451_vm2  ;;  %vm2420_vm10 = vweird.f32 %v5572_v26  ;;  %v2426_v63 = vand.u32 2147483648, %v5572_v26 }
 0x2cf   : > { %v2404_v22 = vadd.f32 %v3875_v56, %v2403_v34  ;;  %v2447_v30 = vsub.f32 1.0, %v2446_v37  ;;  %v2471_v62 = vand.u32 2147483648, %v5634_v16  ;;  %vm2422_vm12 = vmor %vm2420_vm10, %vm2421_vm9  ;;  %v2469_v19 = vand.u32 2147483647, %v5634_v16  ;;  %v6329_v37 = vld [vmem:[#allocation64_spill] sm:$0xff] }
 0x2d0   : > { %v2393_v59 = vsel %vm2392_vm15, %v3873_v35, %v2389_v39  ;;  %v2433_v32 = vmul.f32 %v3881_v29, %v2432_v18  ;;  %v2427_v48 = vor.u32 1.1754944e-38, %v2426_v63  ;;  %v2495_v14 = vunpack.c.l.bf16 %v6329_v37 }
 0x2d1   : > { %v2398_v3 = vsel %vm5624_vm11, %v2397_v1, %v2393_v59  ;;  %v2408_v43 = vsel %vm2407_vm0, %v3875_v56, %v2404_v22  ;;  %v2448_v7 = vmul.f32 %v3883_v55, %v2447_v30  ;;  %v2472_v53 = vor.u32 1.1754944e-38, %v2471_v62 }
 0x2d2   : > { %v2413_v58 = vsel %vm5630_vm13, %v2412_v6, %v2408_v43  ;;  %v2479_v10 = vmul.f32 %v3885_v0, %v2398_v3  ;;  %v2434_v60 = vadd.f32 %v3881_v29, %v2433_v32  ;;  %vm2465_vm13 = vweird.f32 %v5634_v16 }
 0x2d3   : > { %v2477_v28 = vmul.f32 %v2413_v58, %v5395_v46  ;;  %v2449_v11 = vadd.f32 %v3883_v55, %v2448_v7  ;;  %v3889_v20 = vpop.eup %3888  ;;  %v2418_v46 = vmul.f32 %v5621_v23, %v2417_v50  ;;  %vm2470_vm0 = vcmp.eq.f32.partialorder %v2469_v19, 8.507059e+37 }
 0x2d4   : > { %v2438_v42 = vsel %vm2437_vm5, %v3881_v29, %v2434_v60  ;;  %v2461_v61 = vmul.f32 %v3889_v20, %v5634_v16  ;;  %vm2466_vm11 = vweird.f32 %v3889_v20  ;;  %v2496_v60 = vunpack.c.h.bf16 %v6329_v37 }
 0x2d5   : > { %v5658_v45 = vadd.f32 %v2479_v10, %v2477_v28  ;;  %v2443_v31 = vsel %vm2440_vm7, %v2442_v9, %v2438_v42  ;;  %v2453_v35 = vsel %vm2452_vm6, %v3883_v55, %v2449_v11  ;;  %v2419_v44 = vadd.f32 %v5621_v23, %v2418_v46  ;;  %vm2467_vm14 = vmor %vm2465_vm13, %vm2466_vm11  ;;  %v6331_v9 = vld [vmem:[#allocation66_spill] sm:$0xff]  ;;  %v6332_v46 = vld [vmem:[#allocation67_spill] sm:$0xff] }
 0x2d6   : > { %v2458_v5 = vsel %vm2455_vm8, %v2457_v47, %v2453_v35  ;;  %v2480_v36 = vmul.f32 %v3887_v41, %v2443_v31  ;;  %v2462_v25 = vsub.f32 1.0, %v2461_v61  ;;  %v6330_v41 = vld [vmem:[#allocation65_spill] sm:$0xff]  ;;  %v2499_v11 = vunpack.c.l.bf16 %v6331_v9 }
 0x2d7   : > { %v2478_v49 = vmul.f32 %v2458_v5, %v5408_v33  ;;  %3890 = vtanh.f32 %v5658_v45  ;;  %v2424_v33 = vand.u32 2147483647, %v5572_v26  ;;  %v2423_v4 = vsel %vm2422_vm12, %v5621_v23, %v2419_v44  ;;  %v6328_v26 = vld [vmem:[#allocation63_spill] sm:$0xff] }
 0x2d8   : > { %v2463_v24 = vmul.f32 %v3889_v20, %v2462_v25  ;;  %v2493_v16 = vunpack.c.l.bf16 %v6328_v26  ;;  %v2494_v23 = vunpack.c.h.bf16 %v6328_v26  ;;  %v2497_v21 = vunpack.c.l.bf16 %v6330_v41 }
 0x2d9   : > { %v5665_v56 = vadd.f32 %v2480_v36, %v2478_v49  ;;  %vm2425_vm15 = vcmp.eq.f32.partialorder %v2424_v33, 8.507059e+37  ;;  %v2498_v22 = vunpack.c.h.bf16 %v6330_v41  ;;  %v2500_v35 = vunpack.c.h.bf16 %v6331_v9 }
 0x2da   : > { %v2464_v27 = vadd.f32 %v3889_v20, %v2463_v24  ;;  %v2428_v1 = vsel %vm2425_vm15, %v2427_v48, %v2423_v4  ;;  %v2698_v5 = vunpack.c.l.bf16 %v6332_v46  ;;  %v2699_v36 = vunpack.c.h.bf16 %v6332_v46  ;;  %v6333_v24 = vld [vmem:[#allocation69_spill] sm:$0xff]  ;;  %v6334_v4 = vld [vmem:[#allocation68_spill] sm:$0xff] }
 0x2db   : > { %3892 = vtanh.f32 %v5665_v56  ;;  %v2702_v44 = vunpack.c.l.bf16 %v6333_v24  ;;  %v2703_v63 = vunpack.c.h.bf16 %v6333_v24 }
 0x2dc   : > { %v2468_v51 = vsel %vm2467_vm14, %v3889_v20, %v2464_v27 }
 0x2dd   : > { %v3891_v40 = vpop.eup %3890  ;;  %v2473_v57 = vsel %vm2470_vm0, %v2472_v53, %v2468_v51  ;;  %v2700_v51 = vunpack.c.l.bf16 %v6334_v4 }
 0x2de   : > { %v2485_v29 = vmul.f32 %v3891_v40, %v2428_v1 }
 0x2e1   : > { %v3893_v6 = vpop.eup %3892 }
 0x2e2   : > { %v2486_v8 = vmul.f32 %v3893_v6, %v2473_v57  ;;  %v6335_v6 = vld [vmem:[#allocation70_spill] sm:$0xff] }
 0x2e3   : > { %v2704_v1 = vunpack.c.l.bf16 %v6335_v6 }
 0x2e4   : > { %v2706_v15 = vpack.c.bf16 %v2486_v8, %v2485_v29 }
 0x2e6   : > { %2715 = vmatmul.bf16.vlgmr.msrb.gmra.mxu0 %v2706_v15  ;;  %2729 = vmatmul.bf16.vlgmr.msrb.gmra.mxu1 %v2706_v15 }
 0x2e7   : > { %2743 = vmatmul.bf16.vlgmr.msrb.gmra.mxu2 %v2706_v15  ;;  %2757 = vmatmul.bf16.vlgmr.msrb.gmra.mxu3 %v2706_v15 }
 0x348   : > { %v2511_v55 = vpop.f32.mrf.mxu0  ;;  %v2525_v34 = vpop.f32.mrf.mxu1 }
 0x349   : > { %v2558_v13 = vadd.f32 %v2511_v55, %v2493_v16  ;;  %v2559_v2 = vadd.f32 %v2525_v34, %v2494_v23 }
 0x34b   : > { %v3518_v0 = vmul.f32 -1.442695, %v2558_v13  ;;  %v3519_v39 = vmul.f32 -1.442695, %v2559_v2 }
 0x34d   : > { %3894 = vpow2.f32 %v3518_v0 }
 0x34e   : > { %3896 = vpow2.f32 %v3519_v39 }
 0x34f   : > { %v2539_v17 = vpop.f32.mrf.mxu2  ;;  %v2553_v43 = vpop.f32.mrf.mxu3 }
 0x350   : > { %v2560_v18 = vadd.f32 %v2539_v17, %v2495_v14  ;;  %v2513_v59 = vpop.f32.mrf.mxu0  ;;  %v2527_v30 = vpop.f32.mrf.mxu1  ;;  %v2561_v20 = vadd.f32 %v2553_v43, %v2496_v60 }
 0x351   : > { %v2562_v12 = vadd.f32 %v2513_v59, %v2497_v21  ;;  %v2563_v38 = vadd.f32 %v2527_v30, %v2498_v22 }
 0x352   : > { %v3520_v3 = vmul.f32 -1.442695, %v2560_v18 }
 0x353   : > { %v3895_v32 = vpop.eup %3894  ;;  %v3521_v58 = vmul.f32 -1.442695, %v2562_v12  ;;  %v3522_v50 = vmul.f32 -1.442695, %v2563_v38 }
 0x354   : > { %v3897_v10 = vpop.eup %3896  ;;  %v5681_v7 = vadd.f32 1.0, %v3895_v32  ;;  %3898 = vpow2.f32 %v3520_v3 }
 0x355   : > { %v5683_v28 = vadd.f32 1.0, %v3897_v10  ;;  %3900 = vpow2.f32 %v3521_v58 }
 0x356   : > { %3902 = vrcp.f32 %v5681_v7  ;;  %v2599_v62 = vand.u32 2147483647, %v5681_v7  ;;  %v2601_v53 = vand.u32 2147483648, %v5681_v7  ;;  %vm2595_vm1 = vweird.f32 %v5681_v7 }
 0x357   : > { %3904 = vrcp.f32 %v5683_v28  ;;  %v2541_v47 = vpop.f32.mrf.mxu2  ;;  %v2555_v19 = vpop.f32.mrf.mxu3  ;;  %v2616_v8 = vand.u32 2147483648, %v5683_v28  ;;  %v2614_v15 = vand.u32 2147483647, %v5683_v28  ;;  %vm2610_vm2 = vweird.f32 %v5683_v28 }
 0x358   : > { %3906 = vpow2.f32 %v3522_v50  ;;  %v2564_v42 = vadd.f32 %v2541_v47, %v2499_v11  ;;  %v2565_v23 = vadd.f32 %v2555_v19, %v2500_v35  ;;  %vm5713_vm3 = vcmp.eq.f32.partialorder %v2599_v62, 8.507059e+37 }
 0x359   : > { %3908 = vtanh.f32 %v2561_v20  ;;  %v2602_v39 = vor.u32 1.1754944e-38, %v2601_v53  ;;  %v2617_v17 = vor.u32 1.1754944e-38, %v2616_v8  ;;  %vm5718_vm6 = vcmp.eq.f32.partialorder %v2614_v15, 8.507059e+37 }
 0x35a   : > { %v3899_v61 = vpop.eup %3898  ;;  %v3523_v31 = vmul.f32 -1.442695, %v2564_v42 }
 0x35b   : > { %v3901_v25 = vpop.eup %3900  ;;  %v5692_v49 = vadd.f32 1.0, %v3899_v61 }
 0x35c   : > { %v3903_v27 = vpop.eup %3902  ;;  %v5697_v33 = vadd.f32 1.0, %v3901_v25  ;;  %3910 = vpow2.f32 %v3523_v31 }
 0x35d   : > { %v3905_v40 = vpop.eup %3904  ;;  %v2591_v48 = vmul.f32 %v3903_v27, %v5681_v7  ;;  %3912 = vrcp.f32 %v5692_v49  ;;  %v2631_v34 = vand.u32 2147483648, %v5692_v49  ;;  %vm2596_vm4 = vweird.f32 %v3903_v27 }
 0x35e   : > { %v3907_v57 = vpop.eup %3906  ;;  %v2606_v29 = vmul.f32 %v3905_v40, %v5683_v28  ;;  %3914 = vrcp.f32 %v5697_v33  ;;  %vm2611_vm5 = vweird.f32 %v3905_v40  ;;  %v2644_v12 = vand.u32 2147483647, %v5697_v33  ;;  %vm2597_vm8 = vmor %vm2595_vm1, %vm2596_vm4 }
 0x35f   : > { %v2592_v26 = vsub.f32 1.0, %v2591_v48  ;;  %v5709_v16 = vadd.f32 1.0, %v3907_v57  ;;  %v3909_v2 = vpop.eup %3908  ;;  %vm2625_vm7 = vweird.f32 %v5692_v49  ;;  %v2629_v3 = vand.u32 2147483647, %v5692_v49  ;;  %vm2612_vm9 = vmor %vm2610_vm2, %vm2611_vm5 }
 0x360   : > { %v2607_v55 = vsub.f32 1.0, %v2606_v29  ;;  %v5731_v43 = vor.u32 1.1754944e-38, %v2631_v34  ;;  %vm2640_vm10 = vweird.f32 %v5697_v33  ;;  %vm5751_vm12 = vcmp.eq.f32.partialorder %v2644_v12, 8.507059e+37 }
 0x361   : > { %v2593_v0 = vmul.f32 %v3903_v27, %v2592_v26  ;;  %3916 = vrcp.f32 %v5709_v16  ;;  %v2661_v50 = vand.u32 2147483648, %v5709_v16  ;;  %vm2655_vm11 = vweird.f32 %v5709_v16 }
 0x362   : > { %v3911_v37 = vpop.eup %3910  ;;  %v2608_v14 = vmul.f32 %v3905_v40, %v2607_v55  ;;  %3918 = vtanh.f32 %v2565_v23  ;;  %vm5761_vm14 = vcmp.eq.f32.partialorder %v2629_v3, 8.507059e+37  ;;  %v2646_v53 = vand.u32 2147483648, %v5697_v33 }
 0x363   : > { %v2716_v21 = vpop.f32.mrf.mxu0  ;;  %v2730_v22 = vpop.f32.mrf.mxu1  ;;  %v2594_v59 = vadd.f32 %v3903_v27, %v2593_v0  ;;  %v5724_v30 = vadd.f32 1.0, %v3911_v37  ;;  %v2662_v48 = vor.u32 1.1754944e-38, %v2661_v50 }
 0x364   : > { %v5722_v18 = vpop.eup %3912  ;;  %v2609_v32 = vadd.f32 %v3905_v40, %v2608_v14  ;;  %v2763_v61 = vadd.f32 %v2716_v21, %v2698_v5  ;;  %v2659_v5 = vand.u32 2147483647, %v5709_v16  ;;  %v2764_v23 = vadd.f32 %v2730_v22, %v2699_v36 }
 0x365   : > { %v2621_v38 = vmul.f32 %v5722_v18, %v5692_v49  ;;  %v5736_v58 = vpop.eup %3914  ;;  %v2598_v10 = vsel %vm2597_vm8, %v3903_v27, %v2594_v59  ;;  %3920 = vrcp.f32 %v5724_v30  ;;  %vm2626_vm13 = vweird.f32 %v5722_v18 }
 0x366   : > { %v2603_v9 = vsel %vm5713_vm3, %v2602_v39, %v2598_v10  ;;  %v2613_v7 = vsel %vm2612_vm9, %v3905_v40, %v2609_v32  ;;  %v2636_v11 = vmul.f32 %v5736_v58, %v5697_v33  ;;  %vm2641_vm15 = vweird.f32 %v5736_v58  ;;  %vm5782_vm1 = vmor %vm2625_vm7, %vm2626_vm13 }
 0x367   : > { %v2622_v60 = vsub.f32 1.0, %v2621_v38  ;;  %v3917_v20 = vpop.eup %3916  ;;  %v2618_v28 = vsel %vm5718_vm6, %v2617_v17, %v2613_v7  ;;  %v2684_v47 = vmul.f32 %v3909_v2, %v2603_v9  ;;  %v3524_v26 = vmul.f32 -1.442695, %v2763_v61  ;;  %vm2642_vm3 = vmor %vm2640_vm10, %vm2641_vm15 }
 0x368   : > { %v2682_v25 = vmul.f32 %v2618_v28, %v5531_v52  ;;  %v2637_v27 = vsub.f32 1.0, %v2636_v11  ;;  %v2651_v62 = vmul.f32 %v3917_v20, %v5709_v16  ;;  %v3919_v19 = vpop.eup %3918  ;;  %vm2656_vm0 = vweird.f32 %v3917_v20 }
 0x369   : > { %v2623_v35 = vmul.f32 %v5722_v18, %v2622_v60  ;;  %v2647_v36 = vor.u32 1.1754944e-38, %v2646_v53  ;;  %vm5787_vm2 = vcmp.eq.f32.partialorder %v2659_v5, 8.507059e+37  ;;  %v3525_v49 = vmul.f32 -1.442695, %v2764_v23  ;;  %vm2657_vm4 = vmor %vm2655_vm11, %vm2656_vm0 }
 0x36a   : > { %v2744_v31 = vpop.f32.mrf.mxu2  ;;  %v2686_v57 = vadd.f32 %v2684_v47, %v2682_v25  ;;  %v2652_v29 = vsub.f32 1.0, %v2651_v62  ;;  %v2638_v8 = vmul.f32 %v5736_v58, %v2637_v27  ;;  %v2758_v22 = vpop.f32.mrf.mxu3  ;;  %v2676_v28 = vand.u32 2147483648, %v5724_v30 }
 0x36b   : > { %v5769_v52 = vpop.eup %3920  ;;  %v2624_v15 = vadd.f32 %v5722_v18, %v2623_v35  ;;  %v2765_v55 = vadd.f32 %v2744_v31, %v2700_v51  ;;  %v2718_v2 = vpop.f32.mrf.mxu0  ;;  %vm2670_vm6 = vweird.f32 %v5724_v30  ;;  %v2674_v47 = vand.u32 2147483647, %v5724_v30 }
 0x36c   : > { %3922 = vtanh.f32 %v2686_v57  ;;  %2899 = vst [vmem:[#allocation5 + $0x8] sm:$0xff] %v2686_v57  ;;  %v2653_v34 = vmul.f32 %v3917_v20, %v2652_v29  ;;  %v2666_v13 = vmul.f32 %v5769_v52, %v5724_v30  ;;  %v2732_v0 = vpop.f32.mrf.mxu1  ;;  %v2639_v46 = vadd.f32 %v5736_v58, %v2638_v8 }
 0x36d   : > { %3924 = vpow2.f32 %v3524_v26  ;;  %v3526_v17 = vmul.f32 -1.442695, %v2765_v55  ;;  %v2628_v41 = vsel %vm5782_vm1, %v5722_v18, %v2624_v15  ;;  %v2767_v59 = vadd.f32 %v2718_v2, %v2702_v44 }
 0x36e   : > { %v2667_v37 = vsub.f32 1.0, %v2666_v13  ;;  %v2654_v14 = vadd.f32 %v3917_v20, %v2653_v34  ;;  %v2643_v21 = vsel %vm2642_vm3, %v5736_v58, %v2639_v46  ;;  %v2768_v33 = vadd.f32 %v2732_v0, %v2703_v63 }
 0x36f   : > { %v2648_v3 = vsel %vm5751_vm12, %v2647_v36, %v2643_v21  ;;  %3926 = vpow2.f32 %v3525_v49  ;;  %v3527_v58 = vmul.f32 -1.442695, %v2767_v59  ;;  %v2633_v24 = vsel %vm5761_vm14, %v5731_v43, %v2628_v41 }
 0x370   : > { %v2668_v38 = vmul.f32 %v5769_v52, %v2667_v37  ;;  %v2658_v18 = vsel %vm2657_vm4, %v3917_v20, %v2654_v14  ;;  %v2685_v32 = vmul.f32 %v3919_v19, %v2648_v3  ;;  %3928 = vpow2.f32 %v3526_v17 }
 0x371   : > { %v2663_v16 = vsel %vm5787_vm2, %v2662_v48, %v2658_v18  ;;  %v3528_v63 = vmul.f32 -1.442695, %v2768_v33  ;;  %3930 = vpow2.f32 %v3527_v58  ;;  %vm2671_vm5 = vweird.f32 %v5769_v52 }
 0x372   : > { %v2746_v12 = vpop.f32.mrf.mxu2  ;;  %v3923_v10 = vpop.eup %3922  ;;  %v2683_v44 = vmul.f32 %v2663_v16, %v5556_v54  ;;  %v2669_v20 = vadd.f32 %v5769_v52, %v2668_v38  ;;  %vm5830_vm7 = vmor %vm2670_vm6, %vm2671_vm5  ;;  %v2701_v30 = vunpack.c.h.bf16 %v6334_v4  ;;  %v2677_v19 = vor.u32 1.1754944e-38, %v2676_v28 }
 0x373   : > { %v2769_v50 = vadd.f32 %v2746_v12, %v2704_v1  ;;  %v3925_v60 = vpop.eup %3924  ;;  %v5817_v9 = vmul.f32 %v3923_v10, %v2633_v24  ;;  %3932 = vpow2.f32 %v3528_v63  ;;  %v2760_v27 = vpop.f32.mrf.mxu3  ;;  %v2705_v40 = vunpack.c.h.bf16 %v6335_v6 }
 0x374   : > { %v2687_v7 = vadd.f32 %v2685_v32, %v2683_v44  ;;  %v5819_v11 = vadd.f32 1.0, %v3925_v60  ;;  %v2673_v25 = vsel %vm5830_vm7, %v5769_v52, %v2669_v20  ;;  %vm2675_vm8 = vcmp.eq.f32.partialorder %v2674_v47, 8.507059e+37 }
 0x375   : > { %2897 = vst [vmem:[#allocation4] sm:$0xff] %v5817_v9  ;;  %v3529_v43 = vmul.f32 -1.442695, %v2769_v50  ;;  %v3927_v54 = vpop.eup %3926  ;;  %v2766_v48 = vadd.f32 %v2758_v22, %v2701_v30  ;;  %v2678_v29 = vsel %vm2675_vm8, %v2677_v19, %v2673_v25  ;;  %v2770_v8 = vadd.f32 %v2760_v27, %v2705_v40 }
 0x376   : > { %3934 = vtanh.f32 %v2687_v7  ;;  %2900 = vst [vmem:[#allocation5] sm:$0xff] %v2687_v7  ;;  %v3929_v1 = vpop.eup %3928  ;;  %v5828_v42 = vadd.f32 1.0, %v3927_v54  ;;  %v2804_v23 = vand.u32 2147483647, %v5819_v11  ;;  %v2806_v34 = vand.u32 2147483648, %v5819_v11 }
 0x377   : > { %3936 = vrcp.f32 %v5819_v11  ;;  %v5834_v31 = vadd.f32 1.0, %v3929_v1  ;;  %v3931_v35 = vpop.eup %3930  ;;  %vm2800_vm9 = vweird.f32 %v5819_v11 }
 0x378   : > { %3938 = vpow2.f32 %v3529_v43  ;;  %v5843_v53 = vadd.f32 1.0, %v3931_v35  ;;  %v2821_v55 = vand.u32 2147483648, %v5828_v42  ;;  %v2819_v36 = vand.u32 2147483647, %v5828_v42 }
 0x379   : > { %3940 = vrcp.f32 %v5828_v42  ;;  %v3933_v62 = vpop.eup %3932  ;;  %vm5866_vm11 = vcmp.eq.f32.partialorder %v2804_v23, 8.507059e+37  ;;  %vm2815_vm12 = vweird.f32 %v5828_v42  ;;  %v2807_v21 = vor.u32 1.1754944e-38, %v2806_v34 }
 0x37a   : > { %3942 = vrcp.f32 %v5834_v31  ;;  %v5845_v5 = vadd.f32 1.0, %v3933_v62  ;;  %v2822_v17 = vor.u32 1.1754944e-38, %v2821_v55  ;;  %vm5874_vm15 = vcmp.eq.f32.partialorder %v2819_v36, 8.507059e+37 }
 0x37b   : > { %3944 = vrcp.f32 %v5843_v53  ;;  %v2849_v32 = vand.u32 2147483647, %v5843_v53  ;;  %v2851_v63 = vand.u32 2147483648, %v5843_v53  ;;  %v2836_v61 = vand.u32 2147483648, %v5834_v31 }
 0x37c   : > { %v3935_v57 = vpop.eup %3934  ;;  %3946 = vrcp.f32 %v5845_v5  ;;  %v2866_v16 = vand.u32 2147483648, %v5845_v5  ;;  %v2864_v20 = vand.u32 2147483647, %v5845_v5  ;;  %vm2860_vm3 = vweird.f32 %v5845_v5 }
 0x37d   : > { %v3937_v52 = vpop.eup %3936  ;;  %v5847_v15 = vmul.f32 %v3935_v57, %v2678_v29  ;;  %3948 = vtanh.f32 %v2766_v48  ;;  %vm2845_vm5 = vweird.f32 %v5843_v53  ;;  %vm2850_vm8 = vcmp.eq.f32.partialorder %v2849_v32, 8.507059e+37 }
 0x37e   : > { %v3939_v4 = vpop.eup %3938  ;;  %v2796_v26 = vmul.f32 %v3937_v52, %v5819_v11  ;;  %3950 = vtanh.f32 %v2770_v8  ;;  %vm2801_vm10 = vweird.f32 %v3937_v52  ;;  %v2867_v27 = vor.u32 1.1754944e-38, %v2866_v16 }
 0x37f   : > { %v3941_v6 = vpop.eup %3940  ;;  %2898 = vst [vmem:[#allocation4 + $0x8] sm:$0xff] %v5847_v15  ;;  %v5856_v13 = vadd.f32 1.0, %v3939_v4  ;;  %vm2802_vm14 = vmor %vm2800_vm9, %vm2801_vm10  ;;  %v2852_v48 = vor.u32 1.1754944e-38, %v2851_v63  ;;  %vm2865_vm9 = vcmp.eq.f32.partialorder %v2864_v20, 8.507059e+37  ;;  %vm2830_vm10 = vweird.f32 %v5834_v31 }
 0x380   : > { %v5858_v2 = vpop.eup %3942  ;;  %v2797_v0 = vsub.f32 1.0, %v2796_v26  ;;  %v2811_v39 = vmul.f32 %v3941_v6, %v5828_v42  ;;  %vm2816_vm13 = vweird.f32 %v3941_v6  ;;  %v2837_v55 = vor.u32 1.1754944e-38, %v2836_v61 }
 0x381   : > { %v2826_v46 = vmul.f32 %v5858_v2, %v5834_v31  ;;  %3952 = vrcp.f32 %v5856_v13  ;;  %v3945_v49 = vpop.eup %3944  ;;  %vm2817_vm0 = vmor %vm2815_vm12, %vm2816_vm13  ;;  %vm2831_vm6 = vweird.f32 %v5858_v2 }
 0x382   : > { %v2812_v51 = vsub.f32 1.0, %v2811_v39  ;;  %v2798_v37 = vmul.f32 %v3937_v52, %v2797_v0  ;;  %v3947_v22 = vpop.eup %3946  ;;  %v2841_v12 = vmul.f32 %v3945_v49, %v5843_v53  ;;  %vm2846_vm2 = vweird.f32 %v3945_v49 }
 0x383   : > { %v2827_v41 = vsub.f32 1.0, %v2826_v46  ;;  %v3949_v38 = vpop.eup %3948  ;;  %v2856_v18 = vmul.f32 %v3947_v22, %v5845_v5  ;;  %vm2861_vm1 = vweird.f32 %v3947_v22  ;;  %vm2847_vm7 = vmor %vm2845_vm5, %vm2846_vm2  ;;  %v2881_v0 = vand.u32 2147483648, %v5856_v13 }
 0x384   : > { %v2813_v59 = vmul.f32 %v3941_v6, %v2812_v51  ;;  %v2799_v33 = vadd.f32 %v3937_v52, %v2798_v37  ;;  %v3951_v58 = vpop.eup %3950  ;;  %v2842_v44 = vsub.f32 1.0, %v2841_v12  ;;  %vm5898_vm4 = vmor %vm2860_vm3, %vm2861_vm1 }
 0x385   : > { %v2828_v60 = vmul.f32 %v5858_v2, %v2827_v41  ;;  %v2857_v11 = vsub.f32 1.0, %v2856_v18  ;;  %v2882_v36 = vor.u32 1.1754944e-38, %v2881_v0 }
 0x386   : > { %v2803_v10 = vsel %vm2802_vm14, %v3937_v52, %v2799_v33  ;;  %v2814_v24 = vadd.f32 %v3941_v6, %v2813_v59  ;;  %v2843_v42 = vmul.f32 %v3945_v49, %v2842_v44  ;;  %v2834_v52 = vand.u32 2147483647, %v5834_v31 }
 0x387   : > { %v5882_v50 = vpop.eup %3952  ;;  %v2808_v7 = vsel %vm5866_vm11, %v2807_v21, %v2803_v10  ;;  %v2858_v47 = vmul.f32 %v3947_v22, %v2857_v11  ;;  %vm2832_vm11 = vmor %vm2830_vm10, %vm2831_vm6  ;;  %vm2875_vm14 = vweird.f32 %v5856_v13 }
 0x388   : > { %v2818_v43 = vsel %vm2817_vm0, %v3941_v6, %v2814_v24  ;;  %v2889_v54 = vmul.f32 %v3949_v38, %v2808_v7  ;;  %v2871_v28 = vmul.f32 %v5882_v50, %v5856_v13  ;;  %v2844_v62 = vadd.f32 %v3945_v49, %v2843_v42 }
 0x389   : > { %v2823_v1 = vsel %vm5874_vm15, %v2822_v17, %v2818_v43  ;;  %v2859_v19 = vadd.f32 %v3947_v22, %v2858_v47  ;;  %vm2876_vm12 = vweird.f32 %v5882_v50  ;;  %vm2835_vm13 = vcmp.eq.f32.partialorder %v2834_v52, 8.507059e+37 }
 0x38a   : > { %v2887_v35 = vmul.f32 %v2823_v1, %v5658_v45  ;;  %v2872_v25 = vsub.f32 1.0, %v2871_v28  ;;  %v2829_v45 = vadd.f32 %v5858_v2, %v2828_v60  ;;  %v2848_v57 = vsel %vm2847_vm7, %v3945_v49, %v2844_v62  ;;  %vm2877_vm15 = vmor %vm2875_vm14, %vm2876_vm12 }
 0x38b   : > { %v2863_v5 = vsel %vm5898_vm4, %v3947_v22, %v2859_v19  ;;  %v2853_v8 = vsel %vm2850_vm8, %v2852_v48, %v2848_v57 }
 0x38c   : > { %v2891_v40 = vadd.f32 %v2889_v54, %v2887_v35  ;;  %v2873_v29 = vmul.f32 %v5882_v50, %v2872_v25  ;;  %v2868_v53 = vsel %vm2865_vm9, %v2867_v27, %v2863_v5  ;;  %v2890_v26 = vmul.f32 %v3951_v58, %v2853_v8 }
 0x38d   : > { %v2888_v4 = vmul.f32 %v2868_v53, %v5665_v56  ;;  %v2833_v23 = vsel %vm2832_vm11, %v5858_v2, %v2829_v45  ;;  %v2879_v56 = vand.u32 2147483647, %v5856_v13 }
 0x38e   : > { %3954 = vtanh.f32 %v2891_v40  ;;  %2903 = vst [vmem:[#allocation7] sm:$0xff] %v2891_v40  ;;  %v2874_v34 = vadd.f32 %v5882_v50, %v2873_v29  ;;  %v2838_v39 = vsel %vm2835_vm13, %v2837_v55, %v2833_v23 }
 0x38f   : > { %v2892_v6 = vadd.f32 %v2890_v26, %v2888_v4  ;;  %vm2880_vm0 = vcmp.eq.f32.partialorder %v2879_v56, 8.507059e+37 }
 0x390   : > { %v2878_v2 = vsel %vm2877_vm15, %v5882_v50, %v2874_v34 }
 0x391   : > { %3956 = vtanh.f32 %v2892_v6  ;;  %2904 = vst [vmem:[#allocation7 + $0x8] sm:$0xff] %v2892_v6  ;;  %v2883_v37 = vsel %vm2880_vm0, %v2882_v36, %v2878_v2 }
 0x394   : > { %v3955_v31 = vpop.eup %3954 }
 0x395   : > { %v2895_v46 = vmul.f32 %v3955_v31, %v2838_v39 }
 0x396   : > { %2908 = sbr.rel (%p3530_p6) target bundleno = 1095 (0x447), region = 72 }
 0x397   : > { %2901 = vst [vmem:[#allocation6 + $0x8] sm:$0xff] %v2895_v46  ;;  %v3957_v51 = vpop.eup %3956 }
 0x398   : > { %v2896_v14 = vmul.f32 %v3957_v51, %v2883_v37 }
 0x39a   : > { %2902 = vst [vmem:[#allocation6] sm:$0xff] %v2896_v14 }
 0x39b   : > { %v3692_v49 = vld [vmem:[%s5992_s9 + $0x38] sm:$0xff]  ;;  %v3691_v17 = vld [vmem:[%s5992_s9 + $0x30] sm:$0xff]  ;;  %v3690_v21 = vld [vmem:[%s5992_s9 + $0x28] sm:$0xff]  ;;  %v2926_v24 = vpack.c.bf16 %v2896_v14, %v2895_v46  ;;  %v2909_v44 = vpack.c.bf16 %v5847_v15, %v5817_v9 }
 0x39c   : > { %v3684_v13 = vld [vmem:[%s5991_s8 + $0x38] sm:$0xff]  ;;  %2991 = vmatpush.bf16.msra.mxu0 %v3692_v49  ;;  %v3683_v41 = vld [vmem:[%s5991_s8 + $0x30] sm:$0xff]  ;;  %v3682_v22 = vld [vmem:[%s5991_s8 + $0x28] sm:$0xff] }
 0x39d   : > { %3053 = vmatpush.bf16.msra.mxu1 %v3684_v13  ;;  %v3689_v59 = vld [vmem:[%s5992_s9 + $0x20] sm:$0xff]  ;;  %v3688_v12 = vld [vmem:[%s5992_s9 + $0x18] sm:$0xff]  ;;  %v3687_v3 = vld [vmem:[%s5992_s9 + $0x10] sm:$0xff] }
 0x39e   : > { %v3681_v33 = vld [vmem:[%s5991_s8 + $0x20] sm:$0xff]  ;;  %v3680_v38 = vld [vmem:[%s5991_s8 + $0x18] sm:$0xff]  ;;  %v3679_v18 = vld [vmem:[%s5991_s8 + $0x10] sm:$0xff] }
 0x39f   : > { %v3686_v16 = vld [vmem:[%s5992_s9 + $0x8] sm:$0xff]  ;;  %v3685_v58 = vld [vmem:[%s5992_s9] sm:$0xff] }
 0x3a0   : > { %2992 = vmatpush.bf16.msra.mxu0 %v3691_v17  ;;  %v3678_v32 = vld [vmem:[%s5991_s8 + $0x8] sm:$0xff]  ;;  %v3677_v10 = vld [vmem:[%s5991_s8] sm:$0xff] }
 0x3a1   : > { %3054 = vmatpush.bf16.msra.mxu1 %v3683_v41  ;;  %v3958_v63 = vld [vmem:[%s5993_s10] ss:$0 sm:$0xff] }
 0x3a4   : > { %2993 = vmatpush.bf16.msra.mxu0 %v3690_v21 }
 0x3a5   : > { %3055 = vmatpush.bf16.msra.mxu1 %v3682_v22 }
 0x3a8   : > { %2994 = vmatpush.bf16.msra.mxu0 %v3689_v59 }
 0x3a9   : > { %3056 = vmatpush.bf16.msra.mxu1 %v3681_v33 }
 0x3ac   : > { %2995 = vmatpush.bf16.msra.mxu0 %v3688_v12 }
 0x3ad   : > { %3057 = vmatpush.bf16.msra.mxu1 %v3680_v38 }
 0x3b0   : > { %2996 = vmatpush.bf16.msra.mxu0 %v3687_v3 }
 0x3b1   : > { %3058 = vmatpush.bf16.msra.mxu1 %v3679_v18 }
 0x3b4   : > { %2997 = vmatpush.bf16.msra.mxu0 %v3686_v16 }
 0x3b5   : > { %3059 = vmatpush.bf16.msra.mxu1 %v3678_v32 }
 0x3b8   : > { %2998 = vmatpush.bf16.msra.mxu0 %v3685_v58 }
 0x3b9   : > { %3060 = vmatpush.bf16.msra.mxu1 %v3677_v10 }
 0x3bb   : > { %2999 = vmatmul.bf16.vlgmr.msra.gmra.mxu0 %v2926_v24 }
 0x3bc   : > { %3061 = vmatmul.bf16.vlgmr.msra.gmra.mxu1 %v2909_v44 }
 0x438   : > { %v3000_v50 = vpop.f32.mrf.mxu0 }
 0x439   : > { %v3062_v60 = vpop.f32.mrf.mxu1 }
 0x43a   : > { %v3063_v7 = vadd.f32 %v3062_v60, %v3000_v50 }
 0x43c   : > { %v3071_v11 = vadd.f32 %v3958_v63, %v3063_v7 }
 0x43e   : > { %3073 = vst [vmem:[%s5994_s11] sm:$0xff] %v3071_v11 }
 0x440   : > { %v3002_v20 = vpop.f32.mrf.mxu0 }
 0x441   : > { %v3064_v43 = vpop.f32.mrf.mxu1 }
 0x442   : > { %v3065_v54 = vadd.f32 %v3064_v43, %v3002_v20 }
 0x444   : > { %v3072_v9 = vadd.f32 %v3958_v63, %v3065_v54 }
 0x446   : > { %3074 = vst [vmem:[%s5994_s11 + $0x8] sm:$0xff] %v3072_v9 }
 0x447 PF: > { %s21_s17 = sadd.s32 1, %s3965_s17  }
 0x448   : > { %p18_p7 = scmp.ge.s32.totalorder %s21_s17, 4  }
 0x44a   :  { %20 = sbr.rel (!%p18_p7) target bundleno = 1 (0x1), region = 109 }

</bundles_post_ra>
